<compile_context>
chip_gen: v5e
topology: v5e:2x2
jax: 0.10.0
libtpu: 0.0.40
codegen_flags: <defaults>
</compile_context>

<pallas_src>
import functools
import math

import numpy as np
import jax
import jax.numpy as jnp
from jax import lax
from jax.experimental import pallas as pl
from jax.experimental.pallas import tpu as pltpu

LRELU_SLOPE = 0.2
ACT_GAIN = math.sqrt(2.0)


# ----------------------------------------------------------------------------
# Pallas kernel: fused modulated ("styled") conv, one (batch, HW-tile) per step
# ----------------------------------------------------------------------------
def _styled_conv_kernel(style_ref, modw_ref, modb_ref, b2_ref, w_ref, actb_ref,
                        patches_ref, out_ref, *, mod_scale, cin):
    # style_ref  : (1, 1, S)          per-batch style row              (f32)
    # modw_ref   : (S, 9*Cin)         EqualLinear weight^T, tap-tiled  (f32)
    # modb_ref   : (1, 9*Cin)         EqualLinear bias, tap-tiled      (f32)
    # b2_ref     : (Cin, NOUT)        scale^2*sum_k w^2, phase-tiled   (f32)
    # w_ref      : (9*Cin, NOUT)      blur-folded conv weights         (bf16)
    # actb_ref   : (1, NOUT)          FusedLeakyReLU bias, phase-tiled (f32)
    # patches_ref: (1, TILE, 9*Cin)   fused im2col input tile          (bf16)
    # out_ref    : (1, TILE, NOUT)
    #
    # NOUT = n_phase * Cout (phase-major, cout-minor).

    # EqualLinear modulation, already replicated across the 9 taps: (1, 9*Cin)
    s_full = (jnp.dot(style_ref[0], modw_ref[...],
                      preferred_element_type=jnp.float32) * mod_scale
              + modb_ref[...])
    # demodulation per output channel (same for every phase): (1, NOUT)
    ss = s_full[:, :cin]                                   # one tap block of s
    d = lax.rsqrt(jnp.dot(ss * ss, b2_ref[...],
                          preferred_element_type=jnp.float32) + 1e-8)

    # rank-1 modulation of the fused input tile (single VPU pass, no temps per tap)
    xm = patches_ref[0] * s_full.astype(patches_ref.dtype)           # (TILE, 9*Cin) bf16

    # single fused MXU matmul: taps along K, phases*Cout along N
    acc = jnp.dot(xm, w_ref[...], preferred_element_type=jnp.float32)  # (TILE, NOUT) f32

    # f32 epilogue: demod + bias + LeakyReLU * sqrt(2)
    y = acc * d + actb_ref[...]
    out_ref[0] = (jnp.where(y >= 0.0, y, LRELU_SLOPE * y) * ACT_GAIN).astype(out_ref.dtype)


def _pick_tile(hw, k, nout, in_bytes, out_bytes, w_bytes, s, cin,
               budget=40 << 20):
    """Largest multiple-of-8 divisor of hw whose double-buffered tile fits the budget."""
    fixed = 2 * (s * k * 4 + k * 4 + cin * nout * 4 + k * nout * w_bytes + nout * 4)
    per_row = 2 * (k * in_bytes + nout * out_bytes)
    avail = max(budget - fixed, 0)
    cap = max(8, avail // per_row)
    cap = int(min(hw, cap, 2048))
    t = cap - (cap % 8)
    while t >= 8:
        if hw % t == 0:
            return t
        t -= 8
    return hw  # fall back to the full (always legal) block


def _run_styled_conv(style3, patches, modw_t, modb_t, b2_t, wflat, actb,
                     *, mod_scale, cin, out_dtype):
    B, HW, K = patches.shape
    NOUT = wflat.shape[1]
    S = style3.shape[2]
    in_it = patches.dtype.itemsize
    out_it = jnp.dtype(out_dtype).itemsize
    w_it = wflat.dtype.itemsize

    tile = _pick_tile(HW, K, NOUT, in_it, out_it, w_it, S, cin)
    n_tiles = HW // tile

    # explicit VMEM budget (scoped defaults are far below physical on v5e/v6e,
    # and v7x only has 64 MiB per TensorCore)
    fixed = 2 * (S * K * 4 + K * 4 + cin * NOUT * 4 + K * NOUT * w_it + NOUT * 4)
    per_tile = 2 * tile * (K * in_it + NOUT * out_it)
    vmem_limit = int(min(max(int(1.25 * (fixed + per_tile)) + (2 << 20), 32 << 20),
                         64 << 20))

    kernel = functools.partial(_styled_conv_kernel, mod_scale=mod_scale, cin=cin)
    return pl.pallas_call(
        kernel,
        out_shape=jax.ShapeDtypeStruct((B, HW, NOUT), out_dtype),
        grid_spec=pltpu.PrefetchScalarGridSpec(
            num_scalar_prefetch=0,
            grid=(B, n_tiles),
            in_specs=[
                pl.BlockSpec((1, 1, S), lambda b, t: (b, 0, 0)),      # style
                pl.BlockSpec((S, K), lambda b, t: (0, 0)),            # mod weight (tiled)
                pl.BlockSpec((1, K), lambda b, t: (0, 0)),            # mod bias (tiled)
                pl.BlockSpec((cin, NOUT), lambda b, t: (0, 0)),       # demod sums
                pl.BlockSpec((K, NOUT), lambda b, t: (0, 0)),         # conv weights (bf16)
                pl.BlockSpec((1, NOUT), lambda b, t: (0, 0)),         # act bias
                pl.BlockSpec((1, tile, K), lambda b, t: (b, t, 0)),   # input tile
            ],
            out_specs=pl.BlockSpec((1, tile, NOUT), lambda b, t: (b, t, 0)),
        ),
        compiler_params=pltpu.CompilerParams(
            dimension_semantics=("parallel", "parallel"),
            vmem_limit_bytes=vmem_limit),
    )(style3, modw_t, modb_t, b2_t, wflat, actb, patches)


# ----------------------------------------------------------------------------
# Glue (plain JAX): fused im2col, parameter re-arrangement, phase reassembly
# ----------------------------------------------------------------------------
def _make_patches_fused(x_nhwc):
    """3x3 neighborhood im2col, fused along K: (B,H,W,C) -> (B, H*W, 9*C).

    K ordering is tap-major / channel-minor: k = (3*a + b)*C + c with
    patch value xpad[h+a, w+b, c] (zero padding 1).
    """
    B, H, W, C = x_nhwc.shape
    xp = jnp.pad(x_nhwc, ((0, 0), (1, 1), (1, 1), (0, 0)))
    taps = [xp[:, a:a + H, b:b + W, :].reshape(B, H * W, C)
            for a in range(3) for b in range(3)]
    return jnp.concatenate(taps, axis=-1)


def _blur_phase_mats():
    """1D coefficient tables combining conv_transpose(stride 2, k=3) with the
    blur [1,3,3,1] (upfirdn pad (1,1)).  T[phase][tap_offset, kh]."""
    k = np.array([1.0, 3.0, 3.0, 1.0], np.float32) / 4.0
    k0, k1, k2, k3 = k
    T0 = np.array([[0.0, k0, k1],
                   [k1, k2, k3],
                   [k3, 0.0, 0.0]], np.float32)           # even output rows
    T1 = np.array([[0.0, 0.0, k0],
                   [k0, k1, k2],
                   [k2, k3, 0.0]], np.float32)            # odd output rows
    return jnp.asarray(np.stack([T0, T1]))                # (2, 3, 3)


def upsampling_block_forward(x_nchw, style, p):
    """Forward pass of UpsamplingBlock. x_nchw: (B, inch, H, W); style: (B, styledim)."""
    B, cin1, H, W = x_nchw.shape
    cout1 = p["w1"].shape[0]
    cout2 = p["w2"].shape[0]
    S = style.shape[1]
    style3 = style.reshape(B, 1, S)
    mod_scale = 1.0 / math.sqrt(S)

    x = jnp.transpose(x_nchw, (0, 2, 3, 1)).astype(jnp.bfloat16)      # NHWC bf16

    # ---- conv1: StyledConv(upsample=True) --------------------------------
    scale1 = 1.0 / math.sqrt(cin1 * 9)
    Tm = _blur_phase_mats()
    # blur-combined effective weights per (phase_row p, phase_col q, tap a, tap b)
    weff6 = scale1 * jnp.einsum("pak,qbl,oikl->pqabio", Tm, Tm, p["w1"])  # (2,2,3,3,Ci,Co)
    # fuse: K = (a,b,i), N = (p,q,o)
    wflat1 = jnp.transpose(weff6, (2, 3, 4, 0, 1, 5)).reshape(
        9 * cin1, 4 * cout1).astype(jnp.bfloat16)
    b2_1 = (scale1 ** 2) * jnp.sum(p["w1"] ** 2, axis=(2, 3)).T       # (Cin, Cout)
    b2_1t = jnp.tile(b2_1, (1, 4))                                     # phase-tiled
    actb1 = jnp.tile(p["act_b1"].reshape(1, cout1), (1, 4))
    modw1_t = jnp.tile(p["mod_w1"].T, (1, 9))                          # (S, 9*Cin)
    modb1_t = jnp.tile(p["mod_b1"].reshape(1, cin1), (1, 9))

    patches1 = _make_patches_fused(x)                                  # (B,HW,9*Cin) bf16
    out1 = _run_styled_conv(style3, patches1, modw1_t, modb1_t, b2_1t, wflat1, actb1,
                            mod_scale=mod_scale, cin=cin1,
                            out_dtype=jnp.bfloat16)                    # (B,HW,4*Cout1)

    # interleave the 4 phases into the (2H, 2W) upsampled grid (row=2h+p, col=2w+q)
    y = out1.reshape(B, H, W, 2, 2, cout1)
    y = jnp.transpose(y, (0, 1, 3, 2, 4, 5)).reshape(B, 2 * H, 2 * W, cout1)

    # ---- conv2: StyledConv(upsample=False) --------------------------------
    cin2 = cout1
    scale2 = 1.0 / math.sqrt(cin2 * 9)
    wflat2 = (scale2 * jnp.transpose(p["w2"], (2, 3, 1, 0))).reshape(
        9 * cin2, cout2).astype(jnp.bfloat16)
    b2_2 = (scale2 ** 2) * jnp.sum(p["w2"] ** 2, axis=(2, 3)).T        # (Cin2, Cout2)
    actb2 = p["act_b2"].reshape(1, cout2)
    modw2_t = jnp.tile(p["mod_w2"].T, (1, 9))
    modb2_t = jnp.tile(p["mod_b2"].reshape(1, cin2), (1, 9))

    patches2 = _make_patches_fused(y)                                  # (B,4HW,9*Cin2) bf16
    out2 = _run_styled_conv(style3, patches2, modw2_t, modb2_t, b2_2, wflat2, actb2,
                            mod_scale=mod_scale, cin=cin2,
                            out_dtype=jnp.float32)                     # (B,4HW,Cout2)
    z = out2.reshape(B, 2 * H, 2 * W, cout2)
    return jnp.transpose(z, (0, 3, 1, 2))                              # back to NCHW


# ----------------------------------------------------------------------------
# Pure-JAX reference mirroring the PyTorch ops (for verification)
# ----------------------------------------------------------------------------
def _modulated_conv_ref(x, style, base_w, mod_w, mod_b, upsample):
    B, Cin, H, W = x.shape
    Cout = base_w.shape[0]
    S = style.shape[1]
    scale = 1.0 / math.sqrt(Cin * 9)
    s = style @ (mod_w * (1.0 / math.sqrt(S))).T + mod_b
    w = scale * base_w[None] * s[:, None, :, None, None]
    demod = lax.rsqrt(jnp.sum(w * w, axis=(2, 3, 4)) + 1e-8)
    w = w * demod[:, :, None, None, None]
    dn = ("NCHW", "OIHW", "NCHW")
    outs = []
    if upsample:
        k1 = jnp.array([1.0, 3.0, 3.0, 1.0], jnp.float32)
        k2d = jnp.outer(k1, k1)
        k2d = k2d / jnp.sum(k2d) * 4.0
        bk = jnp.broadcast_to(k2d[None, None], (Cout, 1, 4, 4))
        for b in range(B):
            wt = jnp.flip(w[b], axis=(2, 3))
            o = lax.conv_general_dilated(x[b:b + 1], wt, (1, 1),
                                         [(2, 2), (2, 2)], lhs_dilation=(2, 2),
                                         dimension_numbers=dn)
            o = lax.conv_general_dilated(o, bk, (1, 1), [(1, 1), (1, 1)],
                                         feature_group_count=Cout,
                                         dimension_numbers=dn)
            outs.append(o)
    else:
        for b in range(B):
            o = lax.conv_general_dilated(x[b:b + 1], w[b], (1, 1),
                                         [(1, 1), (1, 1)], dimension_numbers=dn)
            outs.append(o)
    return jnp.concatenate(outs, axis=0)


def _styled_conv_ref(x, style, base_w, mod_w, mod_b, act_b, upsample):
    o = _modulated_conv_ref(x, style, base_w, mod_w, mod_b, upsample)
    o = o + act_b[None, :, None, None]
    return jnp.where(o >= 0, o, LRELU_SLOPE * o) * ACT_GAIN


def upsampling_block_ref(x, style, p):
    y = _styled_conv_ref(x, style, p["w1"], p["mod_w1"], p["mod_b1"], p["act_b1"], True)
    return _styled_conv_ref(y, style, p["w2"], p["mod_w2"], p["mod_b2"], p["act_b2"], False)


# ----------------------------------------------------------------------------
if __name__ == "__main__":
    def make_params(key, inch, outch, styledim):
        ks = jax.random.split(key, 6)
        return dict(
            w1=jax.random.normal(ks[0], (outch, inch, 3, 3), jnp.float32),
            mod_w1=jax.random.normal(ks[1], (inch, styledim), jnp.float32),
            mod_b1=jnp.ones((inch,), jnp.float32),                    # EqualLinear bias_init=1
            act_b1=0.1 * jax.random.normal(ks[2], (outch,), jnp.float32),
            w2=jax.random.normal(ks[3], (outch, outch, 3, 3), jnp.float32),
            mod_w2=jax.random.normal(ks[4], (outch, styledim), jnp.float32),
            mod_b2=jnp.ones((outch,), jnp.float32),
            act_b2=0.1 * jax.random.normal(ks[5], (outch,), jnp.float32),
        )

    key = jax.random.PRNGKey(0)
    k1, k2, k3, k4, k5, k6 = jax.random.split(key, 6)
    fwd = jax.jit(upsampling_block_forward)

    # --- test 1: small shapes -------------------------------------------------
    B, inch, outch, styledim, H, W = 2, 4, 8, 8, 16, 16
    x = jax.random.normal(k1, (B, inch, H, W), jnp.float32)
    style = jax.random.normal(k2, (B, styledim), jnp.float32)
    params = make_params(k3, inch, outch, styledim)

    out = jax.block_until_ready(fwd(x, style, params))
    assert out.shape == (B, outch, 2 * H, 2 * W), out.shape
    ref = jax.block_until_ready(upsampling_block_ref(x, style, params))
    out_np, ref_np = np.asarray(out, np.float32), np.asarray(ref, np.float32)
    rel = np.linalg.norm(out_np - ref_np) / np.linalg.norm(ref_np)
    assert rel < 3e-2, f"relative error too large: {rel}"
    # bf16 MXU path over two stacked convs -> loose elementwise tolerance
    np.testing.assert_allclose(out_np, ref_np, rtol=1e-1, atol=1e-1)

    # --- test 2: lane-dense channels (exercises the fused 128-wide path) ------
    B2, inch2, outch2, sd2, H2, W2 = 1, 128, 128, 64, 8, 8
    x2 = jax.random.normal(k4, (B2, inch2, H2, W2), jnp.float32)
    style2 = jax.random.normal(k5, (B2, sd2), jnp.float32)
    params2 = make_params(k6, inch2, outch2, sd2)

    out2 = jax.block_until_ready(fwd(x2, style2, params2))
    assert out2.shape == (B2, outch2, 2 * H2, 2 * W2), out2.shape
    ref2 = jax.block_until_ready(upsampling_block_ref(x2, style2, params2))
    out2_np, ref2_np = np.asarray(out2, np.float32), np.asarray(ref2, np.float32)
    rel2 = np.linalg.norm(out2_np - ref2_np) / np.linalg.norm(ref2_np)
    assert rel2 < 3e-2, f"relative error too large: {rel2}"

    print("KERNEL_OK")
</pallas_src>

<mosaic_0001>
module attributes {stable_mosaic.version = 11 : i64} {
  func.func @_styled_conv_kernel(%arg0: i32, %arg1: i32, %arg2: memref<1x1x8xf32, #tpu.memory_space<vmem>>, %arg3: memref<8x36xf32, #tpu.memory_space<vmem>>, %arg4: memref<1x36xf32, #tpu.memory_space<vmem>>, %arg5: memref<4x32xf32, #tpu.memory_space<vmem>>, %arg6: memref<36x32xbf16, #tpu.memory_space<vmem>>, %arg7: memref<1x32xf32, #tpu.memory_space<vmem>>, %arg8: memref<1x256x36xbf16, #tpu.memory_space<vmem>>, %arg9: memref<1x256x32xbf16, #tpu.memory_space<vmem>>) attributes {dimension_semantics = [#tpu.dimension_semantics<parallel>, #tpu.dimension_semantics<parallel>], iteration_bounds = array<i64: 2, 1>, scalar_prefetch = 0 : i64, scratch_operands = 0 : i64, tpu.core_type = #tpu.core_type<tc>, window_params = [{transform_indices = @transform_0, window_bounds = array<i64: 1, 1, 8>}, {pipeline_mode = #tpu.pipeline_mode<synchronous>, transform_indices = @transform_1, window_bounds = array<i64: 8, 36>}, {pipeline_mode = #tpu.pipeline_mode<synchronous>, transform_indices = @transform_2, window_bounds = array<i64: 1, 36>}, {pipeline_mode = #tpu.pipeline_mode<synchronous>, transform_indices = @transform_3, window_bounds = array<i64: 4, 32>}, {pipeline_mode = #tpu.pipeline_mode<synchronous>, transform_indices = @transform_4, window_bounds = array<i64: 36, 32>}, {pipeline_mode = #tpu.pipeline_mode<synchronous>, transform_indices = @transform_5, window_bounds = array<i64: 1, 32>}, {transform_indices = @transform_6, window_bounds = array<i64: 1, 256, 36>}, {transform_indices = @transform_7, window_bounds = array<i64: 1, 256, 32>}]} {
    %c0 = arith.constant 0 : index
    %c0_0 = arith.constant 0 : index
    %c0_1 = arith.constant 0 : index
    %0 = vector.load %arg2[%c0, %c0_0, %c0_1] : memref<1x1x8xf32, #tpu.memory_space<vmem>>, vector<1x1x8xf32>
    %1 = vector.shape_cast %0 : vector<1x1x8xf32> to vector<1x8xf32>
    %c0_2 = arith.constant 0 : index
    %c0_3 = arith.constant 0 : index
    %2 = vector.load %arg3[%c0_2, %c0_3] : memref<8x36xf32, #tpu.memory_space<vmem>>, vector<8x36xf32>
    %cst = arith.constant dense<0.000000e+00> : vector<1x36xf32>
    %3 = tpu.matmul %1, %2, %cst {dimension_numbers = #tpu.dot_dimension_numbers<[1], [0], [0], [1], [0, 0, 1, 1], [], []>} : vector<1x8xf32>, vector<8x36xf32>, vector<1x36xf32> -> vector<1x36xf32>
    %cst_4 = arith.constant 0.353553385 : f32
    %4 = vector.broadcast %cst_4 : f32 to vector<1x36xf32>
    %5 = arith.mulf %3, %4 : vector<1x36xf32>
    %c0_5 = arith.constant 0 : index
    %c0_6 = arith.constant 0 : index
    %6 = vector.load %arg4[%c0_5, %c0_6] : memref<1x36xf32, #tpu.memory_space<vmem>>, vector<1x36xf32>
    %7 = arith.addf %5, %6 : vector<1x36xf32>
    %8 = vector.extract_strided_slice %7 {offsets = [0, 0], sizes = [1, 4], strides = [1, 1]} : vector<1x36xf32> to vector<1x4xf32>
    %9 = arith.mulf %8, %8 : vector<1x4xf32>
    %c0_7 = arith.constant 0 : index
    %c0_8 = arith.constant 0 : index
    %10 = vector.load %arg5[%c0_7, %c0_8] : memref<4x32xf32, #tpu.memory_space<vmem>>, vector<4x32xf32>
    %cst_9 = arith.constant dense<0.000000e+00> : vector<1x32xf32>
    %11 = tpu.matmul %9, %10, %cst_9 {dimension_numbers = #tpu.dot_dimension_numbers<[1], [0], [0], [1], [0, 0, 1, 1], [], []>} : vector<1x4xf32>, vector<4x32xf32>, vector<1x32xf32> -> vector<1x32xf32>
    %cst_10 = arith.constant 9.99999993E-9 : f32
    %12 = vector.broadcast %cst_10 : f32 to vector<1x32xf32>
    %13 = arith.addf %11, %12 : vector<1x32xf32>
    %14 = math.rsqrt %13 : vector<1x32xf32>
    %c0_11 = arith.constant 0 : index
    %c0_12 = arith.constant 0 : index
    %c0_13 = arith.constant 0 : index
    %15 = vector.load %arg8[%c0_11, %c0_12, %c0_13] : memref<1x256x36xbf16, #tpu.memory_space<vmem>>, vector<1x256x36xbf16>
    %16 = vector.shape_cast %15 : vector<1x256x36xbf16> to vector<256x36xbf16>
    %17 = arith.truncf %7 : vector<1x36xf32> to vector<1x36xbf16>
    %18 = vector.broadcast %17 : vector<1x36xbf16> to vector<256x36xbf16>
    %19 = arith.mulf %16, %18 : vector<256x36xbf16>
    %c0_14 = arith.constant 0 : index
    %c0_15 = arith.constant 0 : index
    %20 = vector.load %arg6[%c0_14, %c0_15] : memref<36x32xbf16, #tpu.memory_space<vmem>>, vector<36x32xbf16>
    %cst_16 = arith.constant dense<0.000000e+00> : vector<256x32xf32>
    %21 = tpu.matmul %19, %20, %cst_16 {dimension_numbers = #tpu.dot_dimension_numbers<[1], [0], [0], [1], [0, 0, 1, 1], [], []>} : vector<256x36xbf16>, vector<36x32xbf16>, vector<256x32xf32> -> vector<256x32xf32>
    %22 = vector.broadcast %14 : vector<1x32xf32> to vector<256x32xf32>
    %23 = arith.mulf %21, %22 : vector<256x32xf32>
    %c0_17 = arith.constant 0 : index
    %c0_18 = arith.constant 0 : index
    %24 = vector.load %arg7[%c0_17, %c0_18] : memref<1x32xf32, #tpu.memory_space<vmem>>, vector<1x32xf32>
    %25 = vector.broadcast %24 : vector<1x32xf32> to vector<256x32xf32>
    %26 = arith.addf %23, %25 : vector<256x32xf32>
    %cst_19 = arith.constant 0.000000e+00 : f32
    %27 = vector.broadcast %cst_19 : f32 to vector<256x32xf32>
    %28 = arith.cmpf oge, %26, %27 : vector<256x32xf32>
    %cst_20 = arith.constant 2.000000e-01 : f32
    %29 = vector.broadcast %cst_20 : f32 to vector<256x32xf32>
    %30 = arith.mulf %29, %26 : vector<256x32xf32>
    %31 = arith.select %28, %26, %30 : vector<256x32xi1>, vector<256x32xf32>
    %cst_21 = arith.constant 1.41421354 : f32
    %32 = vector.broadcast %cst_21 : f32 to vector<256x32xf32>
    %33 = arith.mulf %31, %32 : vector<256x32xf32>
    %34 = arith.truncf %33 : vector<256x32xf32> to vector<256x32xbf16>
    %c0_22 = arith.constant 0 : index
    %c0_23 = arith.constant 0 : index
    %c0_24 = arith.constant 0 : index
    %35 = vector.load %arg9[%c0_22, %c0_23, %c0_24] : memref<1x256x32xbf16, #tpu.memory_space<vmem>>, vector<1x256x32xbf16>
    %36 = vector.shape_cast %35 : vector<1x256x32xbf16> to vector<256x32xbf16>
    %37 = vector.shape_cast %34 : vector<256x32xbf16> to vector<1x256x32xbf16>
    tpu.vector_store %arg9[%c0_22, %c0_23, %c0_24], %37 {strides = array<i32>} : memref<1x256x32xbf16, #tpu.memory_space<vmem>>, vector<1x256x32xbf16>,
    return
  }
  func.func @transform_0(%arg0: i32, %arg1: i32) -> (i32, i32, i32) {
    %c0_i32 = arith.constant 0 : i32
    %c0_i32_0 = arith.constant 0 : i32
    %c0_i32_1 = arith.constant 0 : i32
    return %arg0, %c0_i32, %c0_i32_0 : i32, i32, i32
  }
  func.func @transform_1(%arg0: i32, %arg1: i32) -> (i32, i32) {
    %c0_i32 = arith.constant 0 : i32
    %c0_i32_0 = arith.constant 0 : i32
    %c0_i32_1 = arith.constant 0 : i32
    return %c0_i32, %c0_i32_0 : i32, i32
  }
  func.func @transform_2(%arg0: i32, %arg1: i32) -> (i32, i32) {
    %c0_i32 = arith.constant 0 : i32
    %c0_i32_0 = arith.constant 0 : i32
    %c0_i32_1 = arith.constant 0 : i32
    return %c0_i32, %c0_i32_0 : i32, i32
  }
  func.func @transform_3(%arg0: i32, %arg1: i32) -> (i32, i32) {
    %c0_i32 = arith.constant 0 : i32
    %c0_i32_0 = arith.constant 0 : i32
    %c0_i32_1 = arith.constant 0 : i32
    return %c0_i32, %c0_i32_0 : i32, i32
  }
  func.func @transform_4(%arg0: i32, %arg1: i32) -> (i32, i32) {
    %c0_i32 = arith.constant 0 : i32
    %c0_i32_0 = arith.constant 0 : i32
    %c0_i32_1 = arith.constant 0 : i32
    return %c0_i32, %c0_i32_0 : i32, i32
  }
  func.func @transform_5(%arg0: i32, %arg1: i32) -> (i32, i32) {
    %c0_i32 = arith.constant 0 : i32
    %c0_i32_0 = arith.constant 0 : i32
    %c0_i32_1 = arith.constant 0 : i32
    return %c0_i32, %c0_i32_0 : i32, i32
  }
  func.func @transform_6(%arg0: i32, %arg1: i32) -> (i32, i32, i32) {
    %c0_i32 = arith.constant 0 : i32
    %c0_i32_0 = arith.constant 0 : i32
    return %arg0, %arg1, %c0_i32 : i32, i32, i32
  }
  func.func @transform_7(%arg0: i32, %arg1: i32) -> (i32, i32, i32) {
    %c0_i32 = arith.constant 0 : i32
    %c0_i32_0 = arith.constant 0 : i32
    return %arg0, %arg1, %c0_i32 : i32, i32, i32
  }
}

module attributes {stable_mosaic.version = 11 : i64} {
  func.func @_styled_conv_kernel(%arg0: i32, %arg1: i32, %arg2: memref<1x1x8xf32, #tpu.memory_space<vmem>>, %arg3: memref<8x72xf32, #tpu.memory_space<vmem>>, %arg4: memref<1x72xf32, #tpu.memory_space<vmem>>, %arg5: memref<8x8xf32, #tpu.memory_space<vmem>>, %arg6: memref<72x8xbf16, #tpu.memory_space<vmem>>, %arg7: memref<1x8xf32, #tpu.memory_space<vmem>>, %arg8: memref<1x1024x72xbf16, #tpu.memory_space<vmem>>, %arg9: memref<1x1024x8xf32, #tpu.memory_space<vmem>>) attributes {dimension_semantics = [#tpu.dimension_semantics<parallel>, #tpu.dimension_semantics<parallel>], iteration_bounds = array<i64: 2, 1>, scalar_prefetch = 0 : i64, scratch_operands = 0 : i64, tpu.core_type = #tpu.core_type<tc>, window_params = [{transform_indices = @transform_0, window_bounds = array<i64: 1, 1, 8>}, {pipeline_mode = #tpu.pipeline_mode<synchronous>, transform_indices = @transform_1, window_bounds = array<i64: 8, 72>}, {pipeline_mode = #tpu.pipeline_mode<synchronous>, transform_indices = @transform_2, window_bounds = array<i64: 1, 72>}, {pipeline_mode = #tpu.pipeline_mode<synchronous>, transform_indices = @transform_3, window_bounds = array<i64: 8, 8>}, {pipeline_mode = #tpu.pipeline_mode<synchronous>, transform_indices = @transform_4, window_bounds = array<i64: 72, 8>}, {pipeline_mode = #tpu.pipeline_mode<synchronous>, transform_indices = @transform_5, window_bounds = array<i64: 1, 8>}, {transform_indices = @transform_6, window_bounds = array<i64: 1, 1024, 72>}, {transform_indices = @transform_7, window_bounds = array<i64: 1, 1024, 8>}]} {
    %c0 = arith.constant 0 : index
    %c0_0 = arith.constant 0 : index
    %c0_1 = arith.constant 0 : index
    %0 = vector.load %arg2[%c0, %c0_0, %c0_1] : memref<1x1x8xf32, #tpu.memory_space<vmem>>, vector<1x1x8xf32>
    %1 = vector.shape_cast %0 : vector<1x1x8xf32> to vector<1x8xf32>
    %c0_2 = arith.constant 0 : index
    %c0_3 = arith.constant 0 : index
    %2 = vector.load %arg3[%c0_2, %c0_3] : memref<8x72xf32, #tpu.memory_space<vmem>>, vector<8x72xf32>
    %cst = arith.constant dense<0.000000e+00> : vector<1x72xf32>
    %3 = tpu.matmul %1, %2, %cst {dimension_numbers = #tpu.dot_dimension_numbers<[1], [0], [0], [1], [0, 0, 1, 1], [], []>} : vector<1x8xf32>, vector<8x72xf32>, vector<1x72xf32> -> vector<1x72xf32>
    %cst_4 = arith.constant 0.353553385 : f32
    %4 = vector.broadcast %cst_4 : f32 to vector<1x72xf32>
    %5 = arith.mulf %3, %4 : vector<1x72xf32>
    %c0_5 = arith.constant 0 : index
    %c0_6 = arith.constant 0 : index
    %6 = vector.load %arg4[%c0_5, %c0_6] : memref<1x72xf32, #tpu.memory_space<vmem>>, vector<1x72xf32>
    %7 = arith.addf %5, %6 : vector<1x72xf32>
    %8 = vector.extract_strided_slice %7 {offsets = [0, 0], sizes = [1, 8], strides = [1, 1]} : vector<1x72xf32> to vector<1x8xf32>
    %9 = arith.mulf %8, %8 : vector<1x8xf32>
    %c0_7 = arith.constant 0 : index
    %c0_8 = arith.constant 0 : index
    %10 = vector.load %arg5[%c0_7, %c0_8] : memref<8x8xf32, #tpu.memory_space<vmem>>, vector<8x8xf32>
    %cst_9 = arith.constant dense<0.000000e+00> : vector<1x8xf32>
    %11 = tpu.matmul %9, %10, %cst_9 {dimension_numbers = #tpu.dot_dimension_numbers<[1], [0], [0], [1], [0, 0, 1, 1], [], []>} : vector<1x8xf32>, vector<8x8xf32>, vector<1x8xf32> -> vector<1x8xf32>
    %cst_10 = arith.constant 9.99999993E-9 : f32
    %12 = vector.broadcast %cst_10 : f32 to vector<1x8xf32>
    %13 = arith.addf %11, %12 : vector<1x8xf32>
    %14 = math.rsqrt %13 : vector<1x8xf32>
    %c0_11 = arith.constant 0 : index
    %c0_12 = arith.constant 0 : index
    %c0_13 = arith.constant 0 : index
    %15 = vector.load %arg8[%c0_11, %c0_12, %c0_13] : memref<1x1024x72xbf16, #tpu.memory_space<vmem>>, vector<1x1024x72xbf16>
    %16 = vector.shape_cast %15 : vector<1x1024x72xbf16> to vector<1024x72xbf16>
    %17 = arith.truncf %7 : vector<1x72xf32> to vector<1x72xbf16>
    %18 = vector.broadcast %17 : vector<1x72xbf16> to vector<1024x72xbf16>
    %19 = arith.mulf %16, %18 : vector<1024x72xbf16>
    %c0_14 = arith.constant 0 : index
    %c0_15 = arith.constant 0 : index
    %20 = vector.load %arg6[%c0_14, %c0_15] : memref<72x8xbf16, #tpu.memory_space<vmem>>, vector<72x8xbf16>
    %cst_16 = arith.constant dense<0.000000e+00> : vector<1024x8xf32>
    %21 = tpu.matmul %19, %20, %cst_16 {dimension_numbers = #tpu.dot_dimension_numbers<[1], [0], [0], [1], [0, 0, 1, 1], [], []>} : vector<1024x72xbf16>, vector<72x8xbf16>, vector<1024x8xf32> -> vector<1024x8xf32>
    %22 = vector.broadcast %14 : vector<1x8xf32> to vector<1024x8xf32>
    %23 = arith.mulf %21, %22 : vector<1024x8xf32>
    %c0_17 = arith.constant 0 : index
    %c0_18 = arith.constant 0 : index
    %24 = vector.load %arg7[%c0_17, %c0_18] : memref<1x8xf32, #tpu.memory_space<vmem>>, vector<1x8xf32>
    %25 = vector.broadcast %24 : vector<1x8xf32> to vector<1024x8xf32>
    %26 = arith.addf %23, %25 : vector<1024x8xf32>
    %cst_19 = arith.constant 0.000000e+00 : f32
    %27 = vector.broadcast %cst_19 : f32 to vector<1024x8xf32>
    %28 = arith.cmpf oge, %26, %27 : vector<1024x8xf32>
    %cst_20 = arith.constant 2.000000e-01 : f32
    %29 = vector.broadcast %cst_20 : f32 to vector<1024x8xf32>
    %30 = arith.mulf %29, %26 : vector<1024x8xf32>
    %31 = arith.select %28, %26, %30 : vector<1024x8xi1>, vector<1024x8xf32>
    %cst_21 = arith.constant 1.41421354 : f32
    %32 = vector.broadcast %cst_21 : f32 to vector<1024x8xf32>
    %33 = arith.mulf %31, %32 : vector<1024x8xf32>
    %c0_22 = arith.constant 0 : index
    %c0_23 = arith.constant 0 : index
    %c0_24 = arith.constant 0 : index
    %34 = vector.load %arg9[%c0_22, %c0_23, %c0_24] : memref<1x1024x8xf32, #tpu.memory_space<vmem>>, vector<1x1024x8xf32>
    %35 = vector.shape_cast %34 : vector<1x1024x8xf32> to vector<1024x8xf32>
    %36 = vector.shape_cast %33 : vector<1024x8xf32> to vector<1x1024x8xf32>
    tpu.vector_store %arg9[%c0_22, %c0_23, %c0_24], %36 {strides = array<i32>} : memref<1x1024x8xf32, #tpu.memory_space<vmem>>, vector<1x1024x8xf32>,
    return
  }
  func.func @transform_0(%arg0: i32, %arg1: i32) -> (i32, i32, i32) {
    %c0_i32 = arith.constant 0 : i32
    %c0_i32_0 = arith.constant 0 : i32
    %c0_i32_1 = arith.constant 0 : i32
    return %arg0, %c0_i32, %c0_i32_0 : i32, i32, i32
  }
  func.func @transform_1(%arg0: i32, %arg1: i32) -> (i32, i32) {
    %c0_i32 = arith.constant 0 : i32
    %c0_i32_0 = arith.constant 0 : i32
    %c0_i32_1 = arith.constant 0 : i32
    return %c0_i32, %c0_i32_0 : i32, i32
  }
  func.func @transform_2(%arg0: i32, %arg1: i32) -> (i32, i32) {
    %c0_i32 = arith.constant 0 : i32
    %c0_i32_0 = arith.constant 0 : i32
    %c0_i32_1 = arith.constant 0 : i32
    return %c0_i32, %c0_i32_0 : i32, i32
  }
  func.func @transform_3(%arg0: i32, %arg1: i32) -> (i32, i32) {
    %c0_i32 = arith.constant 0 : i32
    %c0_i32_0 = arith.constant 0 : i32
    %c0_i32_1 = arith.constant 0 : i32
    return %c0_i32, %c0_i32_0 : i32, i32
  }
  func.func @transform_4(%arg0: i32, %arg1: i32) -> (i32, i32) {
    %c0_i32 = arith.constant 0 : i32
    %c0_i32_0 = arith.constant 0 : i32
    %c0_i32_1 = arith.constant 0 : i32
    return %c0_i32, %c0_i32_0 : i32, i32
  }
  func.func @transform_5(%arg0: i32, %arg1: i32) -> (i32, i32) {
    %c0_i32 = arith.constant 0 : i32
    %c0_i32_0 = arith.constant 0 : i32
    %c0_i32_1 = arith.constant 0 : i32
    return %c0_i32, %c0_i32_0 : i32, i32
  }
  func.func @transform_6(%arg0: i32, %arg1: i32) -> (i32, i32, i32) {
    %c0_i32 = arith.constant 0 : i32
    %c0_i32_0 = arith.constant 0 : i32
    return %arg0, %arg1, %c0_i32 : i32, i32, i32
  }
  func.func @transform_7(%arg0: i32, %arg1: i32) -> (i32, i32, i32) {
    %c0_i32 = arith.constant 0 : i32
    %c0_i32_0 = arith.constant 0 : i32
    return %arg0, %arg1, %c0_i32 : i32, i32, i32
  }
}

</mosaic_0001>

<bundles_post_ra>
// kernel: tile.40
= control target key start
LH: loop header
LB: loop body
LE: loop exit
PB: predicated region body
PF: predicated region fallthrough
CT: control target
= control target key end

     0   :  { %vm39_vm0 = vcmask 64512   ;;  %s170_s0 = inlined_call_operand.vmem [shape: f32[8,9,4], index: 0, kind: input, shape index: {}]   ;;  %s171_s1 = inlined_call_operand.vmem [shape: f32[8,36], index: 1, kind: output, shape index: {}]  }
   0x1   :  { %v81_v0 = vld [vmem:[%s170_s0 + $0x20] sm:$0xf]  ;;  %v82_v1 = vld [vmem:[%s170_s0 + $0x1c] sm:$0xf]  ;;  %v83_v2 = vld [vmem:[%s170_s0 + $0x18] sm:$0xf] }
   0x2   :  { %7 = vst [vmem:[#allocation0 + $0x10] sm:$0xf] %v81_v0  ;;  %v84_v3 = vld [vmem:[%s170_s0 + $0x14] sm:$0xf]  ;;  %v85_v4 = vld [vmem:[%s170_s0 + $0x10] sm:$0xf] }
   0x3   :  { %11 = vst [vmem:[#allocation0 + $0x40] sm:$0xf] %v82_v1  ;;  %v86_v5 = vld [vmem:[%s170_s0 + $0xc] sm:$0xf]  ;;  %v87_v6 = vld [vmem:[%s170_s0 + $0x8] sm:$0xf] }
   0x4   :  { %15 = vst [vmem:[#allocation0 + $0x28] sm:$0xf] %v83_v2  ;;  %v88_v7 = vld [vmem:[%s170_s0 + $0x4] sm:$0xf]  ;;  %v36_v8 = vld [vmem:[%s170_s0] sm:$0xf] }
   0x5   :  { %19 = vst [vmem:[#allocation0 + $0x30] sm:$0xf] %v84_v3 }
   0x6   :  { %23 = vst [vmem:[#allocation0 + $0x20] sm:$0xf] %v85_v4 }
   0x7   :  { %27 = vst [vmem:[#allocation0 + $0x18] sm:$0xf] %v86_v5 }
   0x8   :  { %31 = vst [vmem:[#allocation0] sm:$0xf] %v87_v6 }
   0x9   :  { %35 = vst [vmem:[#allocation0 + $0x8] sm:$0xf] %v88_v7  ;;  %v77_v16 = vld [vmem:[#allocation0 + $0x10] sm:$0xf]  }
   0xa   :  { %37 = vst [vmem:[#allocation0 + $0x38] sm:$0xf] %v36_v8  ;;  %v72_v9 = vld [vmem:[#allocation0 + $0x40] sm:$0xf]  }
   0xb   :  { %v67_v10 = vld [vmem:[#allocation0 + $0x28] sm:$0xf]   ;;  %95 = vst.msk [vmem:[%s171_s1 + $0x1c] sm:$0xf] %vm39_vm0, %v72_v9  }
   0xc   :  { %v62_v11 = vld [vmem:[#allocation0 + $0x30] sm:$0xf]   ;;  %94 = vst.msk [vmem:[%s171_s1 + $0x18] sm:$0xf] %vm39_vm0, %v67_v10  }
   0xd   :  { %v57_v12 = vld [vmem:[#allocation0 + $0x20] sm:$0xf]   ;;  %93 = vst.msk [vmem:[%s171_s1 + $0x14] sm:$0xf] %vm39_vm0, %v62_v11  }
   0xe   :  { %v52_v13 = vld [vmem:[#allocation0 + $0x18] sm:$0xf]   ;;  %92 = vst.msk [vmem:[%s171_s1 + $0x10] sm:$0xf] %vm39_vm0, %v57_v12  }
   0xf   :  { %v47_v14 = vld [vmem:[#allocation0] sm:$0xf]   ;;  %91 = vst.msk [vmem:[%s171_s1 + $0xc] sm:$0xf] %vm39_vm0, %v52_v13  }
  0x10   :  { %v42_v15 = vld [vmem:[#allocation0 + $0x8] sm:$0xf]   ;;  %90 = vst.msk [vmem:[%s171_s1 + $0x8] sm:$0xf] %vm39_vm0, %v47_v14  }
  0x11   :  { %v38_v17 = vld [vmem:[#allocation0 + $0x38] sm:$0xf]   ;;  %89 = vst.msk [vmem:[%s171_s1 + $0x4] sm:$0xf] %vm39_vm0, %v42_v15  }
  0x12   :  { %40 = vst.msk [vmem:[%s171_s1] sm:$0xf] %vm39_vm0, %v38_v17  }
  0x13   :  { %96 = vst.msk [vmem:[%s171_s1 + $0x20] sm:$0xf] %vm39_vm0, %v77_v16  }

// kernel: tile.31
= control target key start
LH: loop header
LB: loop body
LE: loop exit
PB: predicated region body
PF: predicated region fallthrough
CT: control target
= control target key end

     0   :  { %s52_s14 = smov 8   ;;  %s53_s15 = smov 16   ;;  %vm19_vm0 = vcmask 64512   ;;  %vm25_vm1 = vcmask 261312   ;;  %vm31_vm2 = vcmask 195712   ;;  %vm37_vm3 = vcmask 130112   ;;  %s79_s0 = inlined_call_operand.vmem [shape: f32[4,4,8], index: 0, kind: input, shape index: {}]   ;;  %s80_s1 = inlined_call_operand.vmem [shape: f32[4,32], index: 1, kind: output, shape index: {}]  }
   0x1   :  { %v45_v0 = vld [vmem:[%s79_s0 + $0xc] sm:$0xf]  ;;  %v46_v1 = vld [vmem:[%s79_s0 + $0x8] sm:$0xf]  ;;  %v47_v2 = vld [vmem:[%s79_s0 + $0x4] sm:$0xf] }
   0x2   :  { %7 = vst [vmem:[#allocation1 + $0x18] sm:$0xf] %v45_v0  ;;  %v16_v3 = vld [vmem:[%s79_s0] sm:$0xf]  ;;  %s51_s0 = smov 24  }
   0x3   :  { %11 = vst [vmem:[#allocation1 + $0x10] sm:$0xf] %v46_v1 }
   0x4   :  { %15 = vst [vmem:[#allocation1 + $0x8] sm:$0xf] %v47_v2 }
   0x5   :  { %17 = vst [vmem:[#allocation1] sm:$0xf] %v16_v3 }
   0xc   :  { %v22_v4 = vld [vmem:[#allocation1 + $0x3] ss:$8 sm:$0xf]   ;;  %v34_v5 = vld [vmem:[#allocation1 + $0x1] ss:$8 sm:$0xf]  }
   0xd   :  { %23 = vrot.lane.b32.xlu0 %v22_v4, %s51_s0  ;;  %35 = vrot.lane.b32.xlu1 %v34_v5, %s52_s14  ;;  %v28_v6 = vld [vmem:[#allocation1 + $0x2] ss:$8 sm:$0xf]   ;;  %v18_v7 = vld [vmem:[#allocation1] ss:$8 sm:$0xf]  }
   0xe   :  { %20 = vst.msk [vmem:[#allocation0] sm:$0xf] %vm19_vm0, %v18_v7  }
  0x15   :  { %29 = vrot.lane.b32.xlu0 %v28_v6, %s53_s15 }
  0x7f   :  { %v24_v8 = vpop.permute.xlu0 %23   ;;  %v36_v9 = vpop.permute.xlu1 %35  }
  0x80   :  { %26 = vst.msk [vmem:[#allocation0] sm:$0xf] %vm25_vm1, %v24_v8  }
  0x87   :  { %v30_v10 = vpop.permute.xlu0 %29  }
  0x88   :  { %32 = vst.msk [vmem:[#allocation0] sm:$0xf] %vm31_vm2, %v30_v10  }
  0x89   :  { %38 = vst.msk [vmem:[#allocation0] sm:$0xf] %vm37_vm3, %v36_v9  }
  0x90   :  { %v41_v11 = vld [vmem:[#allocation0] sm:$0xf] }
  0x91   :  { %44 = vst [vmem:[%s80_s1] sm:$0xf] %v41_v11 }

// kernel: upsampling_block_forward.2
= control target key start
LH: loop header
LB: loop body
LE: loop exit
PB: predicated region body
PF: predicated region fallthrough
CT: control target
= control target key end

     0   :  { %s1261_s24 = smov 0   ;;  %s1263_s25 = smov 0   ;;  %s1534_s0 = inlined_call_operand.vmem [shape: f32[2,1,8], index: 0, kind: input, shape index: {}]   ;;  %s1535_s1 = inlined_call_operand.vmem [shape: f32[8,36], index: 1, kind: input, shape index: {}]   ;;  %s1536_s2 = inlined_call_operand.vmem [shape: f32[1,36], index: 2, kind: input, shape index: {}]   ;;  %s1537_s3 = inlined_call_operand.vmem [shape: f32[4,32], index: 3, kind: input, shape index: {}]   ;;  %s1538_s4 = inlined_call_operand.vmem [shape: bf16[36,32], index: 4, kind: input, shape index: {}]   ;;  %s1539_s5 = inlined_call_operand.vmem [shape: f32[1,32], index: 5, kind: input, shape index: {}]   ;;  %s1540_s6 = inlined_call_operand.vmem [shape: bf16[2,256,36], index: 6, kind: input, shape index: {}]   ;;  %s1541_s7 = inlined_call_operand.vmem [shape: bf16[2,256,32], index: 7, kind: output, shape index: {}]  }
   0x1   :  { %s1265_s26 = smov 0  }
   0x2 LB: > { %s29_s27 = sadd.s32 1, %s1215_s25  ;;  %p1044_p0 = scmp.ge.s32.totalorder %s1219_s26, 1  ;;  %s1219_s26 = sphi %s1265_s26, %s17_s26   ;;  %s1215_s25 = sphi %s1263_s25, %s1543_s25   ;;  %s1211_s24 = sphi %s1261_s24, %s1542_s24  }
   0x3   : > { %p31_p1 = scmp.ge.s32.totalorder %s29_s27, 2  ;;  %p266_p2 = scmp.lt.s32.totalorder %s1219_s26, 3 }
   0x5   : > { %s1545_s27 = smov (%p31_p1, %s29_s27), 0  ;;  %p267_p3 = pnand %p1044_p0, %p266_p2 }
   0x6   : > { %p309_p4 = scmp.lt.s32.totalorder (!%p267_p3), %s1211_s24, 1 }
   0x7   : > { %270 = sbr.rel (%p267_p3) target bundleno = 359 (0x167), region = 48 }
   0xc   : > { %v334_v0 = vld [vmem:[%s1535_s1] sm:$0xff]  ;;  %s1547_s24 = smov (!%p309_p4, %s1211_s24), 1  ;;  %vm335_vm0 = vcmask 64512   ;;  %v524_v2 = vld [vmem:[%s1538_s4 + $0x10] sm:$0x3]  ;;  %vm368_vm1 = vcmask 1043456  }
   0xd   : > { %354 = vmatpush.msra.mxu0 %v334_v0  ;;  %s311_s9 = scalar_lea.vmem %s1534_s0, %s1547_s24  ;;  %v534_v3 = vunpack.c.l.b16 %v524_v2  ;;  %v363_v5 = vld [vmem:[%s1537_s3] sm:$0xf]  ;;  %vm589_vm2 = vcmask 1041408   ;;  %v1081_v7 = vld [vmem:[%s1538_s4 + $0x8] sm:$0xff]  ;;  %s1078_s18 = sshll.u32 %s1547_s24, 7  ;;  %vm364_vm3 = vcmask 31744  }
   0xe   : > { %v333_v1 = vld [vmem:[%s311_s9] sm:$0x1]  ;;  %1050 = vmatpush.msk.msra.mxu1 %vm368_vm1, %v363_v5  ;;  %s1309_s23 = scalar_lea.vmem %s1540_s6, %s1078_s18  ;;  %vm540_vm4 = vcmask 293888   ;;  %vm911_vm8 = vcmask 257024   ;;  %s1403_s9 = scalar_lea.vmem %s1541_s7, %s1078_s18 }
   0xf   : > { %1049 = vmatmul.msk.f32.vlgmr.msra.gmra.mxu0 %vm335_vm0, %v333_v1  ;;  %v537_v4 = vpack.c.b16 %v534_v3, %v534_v3  ;;  %v1080_v8 = vld [vmem:[%s1538_s4] sm:$0xff]  ;;  %v1146_v42 = vld [vmem:[%s1309_s23 + $0x8] sm:$0xff]   ;;  %v1147_v2 = vld [vmem:[%s1309_s23 + $0x10] sm:$0xff]  }
  0x10   : > { %v360_v10 = vld [vmem:[%s1536_s2] sm:$0x1]  ;;  %v1150_v43 = vld [vmem:[%s1309_s23 + $0x28] sm:$0xff]   ;;  %v1088_v46 = vunpack.c.l.bf16 %v1146_v42  ;;  %v1089_v47 = vunpack.c.h.bf16 %v1146_v42  ;;  %v1151_v3 = vld [vmem:[%s1309_s23 + $0x30] sm:$0xff]  }
  0x11   : > { %v591_v6 = vsel %vm589_vm2, %v537_v4, 0  ;;  %v1083_v15 = vld [vmem:[%s1309_s23] sm:$0xff]   ;;  %v1154_v44 = vld [vmem:[%s1309_s23 + $0x48] sm:$0xff]   ;;  %v1104_v48 = vunpack.c.l.bf16 %v1150_v43  ;;  %v1105_v49 = vunpack.c.h.bf16 %v1150_v43  ;;  %v1155_v4 = vld [vmem:[%s1309_s23 + $0x50] sm:$0xff]  }
  0x12   : > { %598 = vmatpush.bf16.msrb.mxu0 %v591_v6  ;;  %1161 = vmatpush.bf16.msrb.mxu1 %v591_v6  ;;  %v1149_v16 = vld [vmem:[%s1309_s23 + $0x20] sm:$0xff]   ;;  %v1084_v20 = vunpack.c.l.bf16 %v1083_v15  ;;  %v1085_v22 = vunpack.c.h.bf16 %v1083_v15  ;;  %v1158_v45 = vld [vmem:[%s1309_s23 + $0x68] sm:$0xff]   ;;  %v1120_v50 = vunpack.c.l.bf16 %v1154_v44  ;;  %v1121_v51 = vunpack.c.h.bf16 %v1154_v44  ;;  %v1159_v5 = vld [vmem:[%s1309_s23 + $0x70] sm:$0xff]  }
  0x13   : > { %1162 = vmatpush.bf16.msra.mxu2 %v591_v6  ;;  %1163 = vmatpush.bf16.msra.mxu3 %v591_v6  ;;  %v1153_v18 = vld [vmem:[%s1309_s23 + $0x40] sm:$0xff]   ;;  %v1100_v23 = vunpack.c.l.bf16 %v1149_v16  ;;  %v1101_v24 = vunpack.c.h.bf16 %v1149_v16  ;;  %v1136_v52 = vunpack.c.l.bf16 %v1158_v45  ;;  %v1137_v53 = vunpack.c.h.bf16 %v1158_v45 }
  0x14   : > { %v1157_v19 = vld [vmem:[%s1309_s23 + $0x60] sm:$0xff]   ;;  %v1116_v25 = vunpack.c.l.bf16 %v1153_v18  ;;  %v1117_v26 = vunpack.c.h.bf16 %v1153_v18  ;;  %v1092_v6 = vunpack.c.l.bf16 %v1147_v2 }
  0x15   : > { %v1132_v27 = vunpack.c.l.bf16 %v1157_v19  ;;  %v1133_v28 = vunpack.c.h.bf16 %v1157_v19 }
  0x16   : > { %599 = vmatpush.bf16.msrb.mxu0 %v1081_v7  ;;  %1164 = vmatpush.bf16.msrb.mxu1 %v1081_v7 }
  0x17   : > { %1165 = vmatpush.bf16.msra.mxu2 %v1081_v7  ;;  %1166 = vmatpush.bf16.msra.mxu3 %v1081_v7  ;;  %v1093_v7 = vunpack.c.h.bf16 %v1147_v2  ;;  %v1382_v2 = vld [vmem:[%s1539_s5] ss:$0 sm:$0xff] }
  0x1a   : > { %600 = vmatpush.bf16.msrb.mxu0 %v1080_v8  ;;  %1167 = vmatpush.bf16.msrb.mxu1 %v1080_v8 }
  0x1b   : > { %1168 = vmatpush.bf16.msra.mxu2 %v1080_v8  ;;  %1169 = vmatpush.bf16.msra.mxu3 %v1080_v8  ;;  %v1108_v8 = vunpack.c.l.bf16 %v1151_v3 }
  0x8c   : > { %v356_v9 = vpop.f32.mrf.mxu0 }
  0x8d   : > { %v359_v11 = vmul.f32 0.35355338, %v356_v9  ;;  %v1109_v9 = vunpack.c.h.bf16 %v1151_v3 }
  0x8f   : > { %v361_v12 = vadd.f32 %v360_v10, %v359_v11  ;;  %v1124_v10 = vunpack.c.l.bf16 %v1155_v4  ;;  %v1125_v11 = vunpack.c.h.bf16 %v1155_v4 }
  0x91   : > { %v434_v13 = vpack.c.bf16 %v361_v12, %v361_v12  ;;  %v362_v14 = vmul.f32 %v361_v12, %v361_v12  ;;  %v1140_v12 = vunpack.c.l.bf16 %v1159_v5 }
  0x93   : > { %v436_v17 = vpack.i.b16 %v434_v13, %v434_v13  ;;  %1051 = vmatmul.msk.f32.vlgmr.msra.gmra.mxu1 %vm364_vm3, %v362_v14  ;;  %v1141_v13 = vunpack.c.h.bf16 %v1159_v5 }
  0x95   : > { %v438_v21 = vperm.slane %v436_v17, 0 }
  0x97   : > { %v1315_v29 = vunpack.c.l.bf16 %v438_v21 }
  0x99   : > { %v472_v30 = vmul.f32 %v1084_v20, %v1315_v29  ;;  %v473_v31 = vmul.f32 %v1085_v22, %v1315_v29  ;;  %v480_v32 = vmul.f32 %v1100_v23, %v1315_v29  ;;  %v481_v33 = vmul.f32 %v1101_v24, %v1315_v29 }
  0x9a   : > { %v488_v34 = vmul.f32 %v1116_v25, %v1315_v29  ;;  %v489_v35 = vmul.f32 %v1117_v26, %v1315_v29  ;;  %v496_v36 = vmul.f32 %v1132_v27, %v1315_v29  ;;  %v497_v37 = vmul.f32 %v1133_v28, %v1315_v29  ;;  %v1148_v26 = vld [vmem:[%s1309_s23 + $0x18] sm:$0xff]  }
  0x9b   : > { %v504_v38 = vpack.c.bf16 %v473_v31, %v472_v30  ;;  %v508_v39 = vpack.c.bf16 %v481_v33, %v480_v32  ;;  %v474_v54 = vmul.f32 %v1088_v46, %v1315_v29  ;;  %v475_v55 = vmul.f32 %v1089_v47, %v1315_v29  ;;  %v1152_v27 = vld [vmem:[%s1309_s23 + $0x38] sm:$0xff]  }
  0x9c   : > { %v512_v40 = vpack.c.bf16 %v489_v35, %v488_v34  ;;  %v516_v41 = vpack.c.bf16 %v497_v37, %v496_v36  ;;  %v482_v56 = vmul.f32 %v1104_v48, %v1315_v29  ;;  %v483_v57 = vmul.f32 %v1105_v49, %v1315_v29  ;;  %v1156_v28 = vld [vmem:[%s1309_s23 + $0x58] sm:$0xff]  }
  0x9d   : > { %1060 = vmatmul.msk.bf16.vlgmr.msrb.gmra.mxu0 %vm540_vm4, %v504_v38  ;;  %1064 = vmatmul.msk.bf16.vlgmr.msrb.gmra.mxu1 %vm540_vm4, %v508_v39  ;;  %v490_v58 = vmul.f32 %v1120_v50, %v1315_v29  ;;  %v491_v59 = vmul.f32 %v1121_v51, %v1315_v29  ;;  %v498_v60 = vmul.f32 %v1136_v52, %v1315_v29  ;;  %v1160_v30 = vld [vmem:[%s1309_s23 + $0x78] sm:$0xff]   ;;  %v1096_v31 = vunpack.c.l.bf16 %v1148_v26 }
  0x9e   : > { %1068 = vmatmul.msk.bf16.vlgmr.msra.gmra.mxu2 %vm540_vm4, %v512_v40  ;;  %1072 = vmatmul.msk.bf16.vlgmr.msra.gmra.mxu3 %vm540_vm4, %v516_v41  ;;  %v499_v61 = vmul.f32 %v1137_v53, %v1315_v29  ;;  %v505_v62 = vpack.c.bf16 %v475_v55, %v474_v54  ;;  %v509_v63 = vpack.c.bf16 %v483_v57, %v482_v56  ;;  %v1097_v32 = vunpack.c.h.bf16 %v1148_v26 }
  0x9f   : > { %v513_v0 = vpack.c.bf16 %v491_v59, %v490_v58  ;;  %v476_v14 = vmul.f32 %v1092_v6, %v1315_v29  ;;  %v477_v15 = vmul.f32 %v1093_v7, %v1315_v29  ;;  %v484_v16 = vmul.f32 %v1108_v8, %v1315_v29 }
  0xa0   : > { %v517_v1 = vpack.c.bf16 %v499_v61, %v498_v60  ;;  %v485_v17 = vmul.f32 %v1109_v9, %v1315_v29  ;;  %v492_v18 = vmul.f32 %v1124_v10, %v1315_v29  ;;  %v493_v19 = vmul.f32 %v1125_v11, %v1315_v29 }
  0xa1   : > { %v500_v20 = vmul.f32 %v1140_v12, %v1315_v29  ;;  %v501_v21 = vmul.f32 %v1141_v13, %v1315_v29  ;;  %v506_v22 = vpack.c.bf16 %v477_v15, %v476_v14  ;;  %v1112_v33 = vunpack.c.l.bf16 %v1152_v27 }
  0xa2   : > { %v510_v23 = vpack.c.bf16 %v485_v17, %v484_v16  ;;  %v514_v24 = vpack.c.bf16 %v493_v19, %v492_v18  ;;  %v1113_v34 = vunpack.c.h.bf16 %v1152_v27  ;;  %v1128_v35 = vunpack.c.l.bf16 %v1156_v28 }
  0xa3   : > { %v518_v25 = vpack.c.bf16 %v501_v21, %v500_v20  ;;  %v1129_v36 = vunpack.c.h.bf16 %v1156_v28  ;;  %v1144_v37 = vunpack.c.l.bf16 %v1160_v30  ;;  %v1145_v38 = vunpack.c.h.bf16 %v1160_v30 }
  0xa4   : > { %v478_v39 = vmul.f32 %v1096_v31, %v1315_v29  ;;  %v479_v40 = vmul.f32 %v1097_v32, %v1315_v29  ;;  %v486_v41 = vmul.f32 %v1112_v33, %v1315_v29  ;;  %v487_v42 = vmul.f32 %v1113_v34, %v1315_v29 }
  0xa5   : > { %v494_v43 = vmul.f32 %v1128_v35, %v1315_v29  ;;  %v495_v44 = vmul.f32 %v1129_v36, %v1315_v29  ;;  %v502_v45 = vmul.f32 %v1144_v37, %v1315_v29  ;;  %v503_v46 = vmul.f32 %v1145_v38, %v1315_v29 }
  0xa6   : > { %v507_v47 = vpack.c.bf16 %v479_v40, %v478_v39  ;;  %v511_v48 = vpack.c.bf16 %v487_v42, %v486_v41 }
  0xa7   : > { %v515_v49 = vpack.c.bf16 %v495_v44, %v494_v43  ;;  %v519_v50 = vpack.c.bf16 %v503_v46, %v502_v45 }
  0xad   : > { %1061 = vmatmul.msk.bf16.gmra.mxu0 %vm540_vm4, %v505_v62  ;;  %1065 = vmatmul.msk.bf16.gmra.mxu1 %vm540_vm4, %v509_v63 }
  0xae   : > { %1069 = vmatmul.msk.bf16.gmra.mxu2 %vm540_vm4, %v513_v0  ;;  %1073 = vmatmul.msk.bf16.gmra.mxu3 %vm540_vm4, %v517_v1 }
  0xbd   : > { %1062 = vmatmul.msk.bf16.gmra.mxu0 %vm540_vm4, %v506_v22  ;;  %1066 = vmatmul.msk.bf16.gmra.mxu1 %vm540_vm4, %v510_v23 }
  0xbe   : > { %1070 = vmatmul.msk.bf16.gmra.mxu2 %vm540_vm4, %v514_v24  ;;  %1074 = vmatmul.msk.bf16.gmra.mxu3 %vm540_vm4, %v518_v25 }
  0xcd   : > { %1063 = vmatmul.msk.bf16.gmra.mxu0 %vm540_vm4, %v507_v47  ;;  %1067 = vmatmul.msk.bf16.gmra.mxu1 %vm540_vm4, %v511_v48 }
  0xce   : > { %1071 = vmatmul.msk.bf16.gmra.mxu2 %vm540_vm4, %v515_v49  ;;  %1075 = vmatmul.msk.bf16.gmra.mxu3 %vm540_vm4, %v519_v50 }
 0x110   : > { %v389_v51 = vpop.f32.mrf.mxu1 }
 0x111   : > { %v390_v52 = vadd.f32 1e-08, %v389_v51 }
 0x113   : > { %1195 = vrsqrt.f32 %v390_v52  ;;  %vm398_vm6 = vweird.f32 %v390_v52 }
 0x119   : > { %v1196_v53 = vpop.eup %1195 }
 0x11a   : > { %v393_v54 = vmul.f32 %v1196_v53, %v390_v52  ;;  %v602_v55 = vpop.f32.mrf.mxu0  ;;  %v622_v56 = vpop.f32.mrf.mxu1  ;;  %vm399_vm5 = vweird.f32 %v1196_v53 }
 0x11b   : > { %vm400_vm7 = vmor %vm398_vm6, %vm399_vm5 }
 0x11c   : > { %v394_v29 = vmul.f32 %v1196_v53, %v393_v54 }
 0x11e   : > { %v395_v57 = vmul.f32 0.5, %v394_v29 }
 0x120   : > { %v396_v58 = vsub.f32 1.5, %v395_v57 }
 0x121   : > { %v642_v59 = vpop.f32.mrf.mxu2  ;;  %v662_v60 = vpop.f32.mrf.mxu3 }
 0x122   : > { %v397_v61 = vmul.f32 %v1196_v53, %v396_v58  ;;  %v604_v62 = vpop.f32.mrf.mxu0  ;;  %v624_v63 = vpop.f32.mrf.mxu1 }
 0x124   : > { %v401_v0 = vsel %vm400_vm7, %v1196_v53, %v397_v61 }
 0x125   : > { %v1377_v1 = vperm.slane %v401_v0, 0 }
 0x127   : > { %v683_v3 = vmul.f32 %v1377_v1, %v602_v55  ;;  %v691_v4 = vmul.f32 %v1377_v1, %v622_v56  ;;  %v699_v5 = vmul.f32 %v1377_v1, %v642_v59  ;;  %v707_v6 = vmul.f32 %v1377_v1, %v662_v60 }
 0x128   : > { %v684_v7 = vmul.f32 %v1377_v1, %v604_v62  ;;  %v692_v8 = vmul.f32 %v1377_v1, %v624_v63 }
 0x129   : > { %v719_v9 = vadd.f32 %v1382_v2, %v683_v3  ;;  %v727_v10 = vadd.f32 %v1382_v2, %v691_v4  ;;  %v735_v11 = vadd.f32 %v1382_v2, %v699_v5  ;;  %v743_v12 = vadd.f32 %v1382_v2, %v707_v6  ;;  %v644_v13 = vpop.f32.mrf.mxu2  ;;  %v664_v14 = vpop.f32.mrf.mxu3 }
 0x12a   : > { %v720_v15 = vadd.f32 %v1382_v2, %v684_v7  ;;  %v728_v16 = vadd.f32 %v1382_v2, %v692_v8  ;;  %v700_v17 = vmul.f32 %v1377_v1, %v644_v13  ;;  %v708_v18 = vmul.f32 %v1377_v1, %v664_v14  ;;  %v607_v19 = vpop.f32.mrf.mxu0  ;;  %v627_v20 = vpop.f32.mrf.mxu1 }
 0x12b   : > { %vm751_vm9 = vcmp.ge.f32.partialorder %v719_v9, 0.0  ;;  %v783_v21 = vmul.f32 0.2, %v719_v9  ;;  %vm759_vm10 = vcmp.ge.f32.partialorder %v727_v10, 0.0  ;;  %v791_v22 = vmul.f32 0.2, %v727_v10 }
 0x12c   : > { %vm767_vm11 = vcmp.ge.f32.partialorder %v735_v11, 0.0  ;;  %v799_v23 = vmul.f32 0.2, %v735_v11  ;;  %vm775_vm12 = vcmp.ge.f32.partialorder %v743_v12, 0.0  ;;  %v807_v24 = vmul.f32 0.2, %v743_v12 }
 0x12d   : > { %v815_v25 = vsel %vm751_vm9, %v719_v9, %v783_v21  ;;  %v823_v26 = vsel %vm759_vm10, %v727_v10, %v791_v22  ;;  %vm752_vm13 = vcmp.ge.f32.partialorder %v720_v15, 0.0  ;;  %v784_v27 = vmul.f32 0.2, %v720_v15 }
 0x12e   : > { %v847_v28 = vmul.f32 1.4142135, %v815_v25  ;;  %v855_v30 = vmul.f32 1.4142135, %v823_v26  ;;  %v831_v31 = vsel %vm767_vm11, %v735_v11, %v799_v23  ;;  %v839_v32 = vsel %vm775_vm12, %v743_v12, %v807_v24 }
 0x12f   : > { %v863_v33 = vmul.f32 1.4142135, %v831_v31  ;;  %v871_v34 = vmul.f32 1.4142135, %v839_v32  ;;  %v816_v35 = vsel %vm752_vm13, %v720_v15, %v784_v27  ;;  %vm760_vm14 = vcmp.ge.f32.partialorder %v728_v16, 0.0 }
 0x130   : > { %v879_v36 = vpack.c.bf16 %v847_v28, %v847_v28  ;;  %v887_v37 = vpack.c.bf16 %v855_v30, %v855_v30  ;;  %v848_v38 = vmul.f32 1.4142135, %v816_v35  ;;  %v792_v39 = vmul.f32 0.2, %v728_v16 }
 0x131   : > { %v895_v40 = vpack.c.bf16 %v863_v33, %v863_v33  ;;  %v903_v41 = vpack.c.bf16 %v871_v34, %v871_v34  ;;  %v736_v42 = vadd.f32 %v1382_v2, %v700_v17  ;;  %v744_v43 = vadd.f32 %v1382_v2, %v708_v18  ;;  %v647_v44 = vpop.f32.mrf.mxu2  ;;  %v667_v45 = vpop.f32.mrf.mxu3 }
 0x132   : > { %912 = vst.msk [vmem:[%s1403_s9] sm:$0xf] %vm911_vm8, %v879_v36  ;;  %v880_v46 = vpack.c.bf16 %v848_v38, %v848_v38  ;;  %v824_v47 = vsel %vm760_vm14, %v728_v16, %v792_v39  ;;  %v685_v48 = vmul.f32 %v1377_v1, %v607_v19  ;;  %v693_v49 = vmul.f32 %v1377_v1, %v627_v20  ;;  %v609_v50 = vpop.f32.mrf.mxu0  ;;  %v629_v51 = vpop.f32.mrf.mxu1 }
 0x133   : > { %920 = vst.msk [vmem:[%s1403_s9 + $0x20] sm:$0xf] %vm911_vm8, %v887_v37  ;;  %v856_v52 = vmul.f32 1.4142135, %v824_v47  ;;  %vm768_vm15 = vcmp.ge.f32.partialorder %v736_v42, 0.0  ;;  %vm776_vm0 = vcmp.ge.f32.partialorder %v744_v43, 0.0  ;;  %v701_v53 = vmul.f32 %v1377_v1, %v647_v44 }
 0x134   : > { %928 = vst.msk [vmem:[%s1403_s9 + $0x40] sm:$0xf] %vm911_vm8, %v895_v40  ;;  %v800_v54 = vmul.f32 0.2, %v736_v42  ;;  %v808_v55 = vmul.f32 0.2, %v744_v43  ;;  %v721_v56 = vadd.f32 %v1382_v2, %v685_v48  ;;  %v729_v29 = vadd.f32 %v1382_v2, %v693_v49 }
 0x135   : > { %936 = vst.msk [vmem:[%s1403_s9 + $0x60] sm:$0xf] %vm911_vm8, %v903_v41  ;;  %v888_v57 = vpack.c.bf16 %v856_v52, %v856_v52  ;;  %v737_v58 = vadd.f32 %v1382_v2, %v701_v53  ;;  %v709_v59 = vmul.f32 %v1377_v1, %v667_v45  ;;  %v686_v60 = vmul.f32 %v1377_v1, %v609_v50 }
 0x136   : > { %913 = vst.msk [vmem:[%s1403_s9 + $0x4] sm:$0xf] %vm911_vm8, %v880_v46  ;;  %v832_v61 = vsel %vm768_vm15, %v736_v42, %v800_v54  ;;  %v840_v62 = vsel %vm776_vm0, %v744_v43, %v808_v55  ;;  %vm753_vm1 = vcmp.ge.f32.partialorder %v721_v56, 0.0  ;;  %v785_v63 = vmul.f32 0.2, %v721_v56 }
 0x137   : > { %921 = vst.msk [vmem:[%s1403_s9 + $0x24] sm:$0xf] %vm911_vm8, %v888_v57  ;;  %v864_v0 = vmul.f32 1.4142135, %v832_v61  ;;  %v872_v3 = vmul.f32 1.4142135, %v840_v62  ;;  %v745_v4 = vadd.f32 %v1382_v2, %v709_v59  ;;  %v722_v5 = vadd.f32 %v1382_v2, %v686_v60 }
 0x138   : > { %v817_v6 = vsel %vm753_vm1, %v721_v56, %v785_v63  ;;  %vm761_vm2 = vcmp.ge.f32.partialorder %v729_v29, 0.0  ;;  %v793_v7 = vmul.f32 0.2, %v729_v29  ;;  %vm769_vm3 = vcmp.ge.f32.partialorder %v737_v58, 0.0 }
 0x139   : > { %v896_v8 = vpack.c.bf16 %v864_v0, %v864_v0  ;;  %v904_v9 = vpack.c.bf16 %v872_v3, %v872_v3  ;;  %v849_v10 = vmul.f32 1.4142135, %v817_v6  ;;  %v801_v11 = vmul.f32 0.2, %v737_v58  ;;  %v649_v12 = vpop.f32.mrf.mxu2  ;;  %v669_v13 = vpop.f32.mrf.mxu3 }
 0x13a   : > { %v825_v14 = vsel %vm761_vm2, %v729_v29, %v793_v7  ;;  %vm777_vm4 = vcmp.ge.f32.partialorder %v745_v4, 0.0  ;;  %v809_v15 = vmul.f32 0.2, %v745_v4  ;;  %vm754_vm5 = vcmp.ge.f32.partialorder %v722_v5, 0.0  ;;  %v612_v16 = vpop.f32.mrf.mxu0  ;;  %v632_v17 = vpop.f32.mrf.mxu1 }
 0x13b   : > { %929 = vst.msk [vmem:[%s1403_s9 + $0x44] sm:$0xf] %vm911_vm8, %v896_v8  ;;  %v881_v18 = vpack.c.bf16 %v849_v10, %v849_v10  ;;  %v857_v19 = vmul.f32 1.4142135, %v825_v14  ;;  %v833_v20 = vsel %vm769_vm3, %v737_v58, %v801_v11  ;;  %v786_v21 = vmul.f32 0.2, %v722_v5 }
 0x13c   : > { %937 = vst.msk [vmem:[%s1403_s9 + $0x64] sm:$0xf] %vm911_vm8, %v904_v9  ;;  %v865_v22 = vmul.f32 1.4142135, %v833_v20  ;;  %v841_v23 = vsel %vm777_vm4, %v745_v4, %v809_v15  ;;  %v694_v24 = vmul.f32 %v1377_v1, %v629_v51  ;;  %v702_v25 = vmul.f32 %v1377_v1, %v649_v12 }
 0x13d   : > { %914 = vst.msk [vmem:[%s1403_s9 + $0x8] sm:$0xf] %vm911_vm8, %v881_v18  ;;  %v889_v26 = vpack.c.bf16 %v857_v19, %v857_v19  ;;  %v873_v27 = vmul.f32 1.4142135, %v841_v23  ;;  %v818_v28 = vsel %vm754_vm5, %v722_v5, %v786_v21  ;;  %v710_v30 = vmul.f32 %v1377_v1, %v669_v13 }
 0x13e   : > { %v897_v31 = vpack.c.bf16 %v865_v22, %v865_v22  ;;  %v850_v32 = vmul.f32 1.4142135, %v818_v28  ;;  %v730_v33 = vadd.f32 %v1382_v2, %v694_v24  ;;  %v738_v34 = vadd.f32 %v1382_v2, %v702_v25 }
 0x13f   : > { %922 = vst.msk [vmem:[%s1403_s9 + $0x28] sm:$0xf] %vm911_vm8, %v889_v26  ;;  %v905_v35 = vpack.c.bf16 %v873_v27, %v873_v27  ;;  %v746_v36 = vadd.f32 %v1382_v2, %v710_v30  ;;  %v687_v37 = vmul.f32 %v1377_v1, %v612_v16  ;;  %v695_v38 = vmul.f32 %v1377_v1, %v632_v17 }
 0x140   : > { %930 = vst.msk [vmem:[%s1403_s9 + $0x48] sm:$0xf] %vm911_vm8, %v897_v31  ;;  %v882_v39 = vpack.c.bf16 %v850_v32, %v850_v32  ;;  %vm762_vm6 = vcmp.ge.f32.partialorder %v730_v33, 0.0  ;;  %v794_v40 = vmul.f32 0.2, %v730_v33  ;;  %vm770_vm7 = vcmp.ge.f32.partialorder %v738_v34, 0.0 }
 0x141   : > { %938 = vst.msk [vmem:[%s1403_s9 + $0x68] sm:$0xf] %vm911_vm8, %v905_v35  ;;  %v802_v41 = vmul.f32 0.2, %v738_v34  ;;  %vm778_vm9 = vcmp.ge.f32.partialorder %v746_v36, 0.0  ;;  %v723_v42 = vadd.f32 %v1382_v2, %v687_v37  ;;  %v731_v43 = vadd.f32 %v1382_v2, %v695_v38  ;;  %v652_v44 = vpop.f32.mrf.mxu2  ;;  %v672_v45 = vpop.f32.mrf.mxu3 }
 0x142   : > { %915 = vst.msk [vmem:[%s1403_s9 + $0xc] sm:$0xf] %vm911_vm8, %v882_v39  ;;  %v826_v46 = vsel %vm762_vm6, %v730_v33, %v794_v40  ;;  %v810_v47 = vmul.f32 0.2, %v746_v36  ;;  %v703_v48 = vmul.f32 %v1377_v1, %v652_v44  ;;  %v711_v49 = vmul.f32 %v1377_v1, %v672_v45  ;;  %v614_v50 = vpop.f32.mrf.mxu0  ;;  %v634_v51 = vpop.f32.mrf.mxu1 }
 0x143   : > { %v858_v52 = vmul.f32 1.4142135, %v826_v46  ;;  %v834_v53 = vsel %vm770_vm7, %v738_v34, %v802_v41  ;;  %vm755_vm10 = vcmp.ge.f32.partialorder %v723_v42, 0.0  ;;  %v787_v54 = vmul.f32 0.2, %v723_v42 }
 0x144   : > { %v866_v55 = vmul.f32 1.4142135, %v834_v53  ;;  %v842_v56 = vsel %vm778_vm9, %v746_v36, %v810_v47  ;;  %vm763_vm11 = vcmp.ge.f32.partialorder %v731_v43, 0.0  ;;  %v795_v29 = vmul.f32 0.2, %v731_v43 }
 0x145   : > { %v890_v57 = vpack.c.bf16 %v858_v52, %v858_v52  ;;  %v874_v58 = vmul.f32 1.4142135, %v842_v56  ;;  %v819_v59 = vsel %vm755_vm10, %v723_v42, %v787_v54  ;;  %v739_v60 = vadd.f32 %v1382_v2, %v703_v48 }
 0x146   : > { %v898_v61 = vpack.c.bf16 %v866_v55, %v866_v55  ;;  %v851_v62 = vmul.f32 1.4142135, %v819_v59  ;;  %v827_v63 = vsel %vm763_vm11, %v731_v43, %v795_v29  ;;  %v747_v0 = vadd.f32 %v1382_v2, %v711_v49 }
 0x147   : > { %923 = vst.msk [vmem:[%s1403_s9 + $0x2c] sm:$0xf] %vm911_vm8, %v890_v57  ;;  %v906_v3 = vpack.c.bf16 %v874_v58, %v874_v58  ;;  %v859_v4 = vmul.f32 1.4142135, %v827_v63  ;;  %vm771_vm12 = vcmp.ge.f32.partialorder %v739_v60, 0.0  ;;  %v688_v5 = vmul.f32 %v1377_v1, %v614_v50 }
 0x148   : > { %931 = vst.msk [vmem:[%s1403_s9 + $0x4c] sm:$0xf] %vm911_vm8, %v898_v61  ;;  %v883_v6 = vpack.c.bf16 %v851_v62, %v851_v62  ;;  %v803_v7 = vmul.f32 0.2, %v739_v60  ;;  %vm779_vm13 = vcmp.ge.f32.partialorder %v747_v0, 0.0  ;;  %v696_v8 = vmul.f32 %v1377_v1, %v634_v51 }
 0x149   : > { %939 = vst.msk [vmem:[%s1403_s9 + $0x6c] sm:$0xf] %vm911_vm8, %v906_v3  ;;  %v891_v9 = vpack.c.bf16 %v859_v4, %v859_v4  ;;  %v811_v10 = vmul.f32 0.2, %v747_v0  ;;  %v724_v11 = vadd.f32 %v1382_v2, %v688_v5  ;;  %v654_v12 = vpop.f32.mrf.mxu2  ;;  %v674_v13 = vpop.f32.mrf.mxu3 }
 0x14a   : > { %916 = vst.msk [vmem:[%s1403_s9 + $0x10] sm:$0xf] %vm911_vm8, %v883_v6  ;;  %v835_v14 = vsel %vm771_vm12, %v739_v60, %v803_v7  ;;  %v732_v15 = vadd.f32 %v1382_v2, %v696_v8  ;;  %v704_v16 = vmul.f32 %v1377_v1, %v654_v12  ;;  %v712_v17 = vmul.f32 %v1377_v1, %v674_v13  ;;  %v617_v18 = vpop.f32.mrf.mxu0  ;;  %v637_v19 = vpop.f32.mrf.mxu1 }
 0x14b   : > { %924 = vst.msk [vmem:[%s1403_s9 + $0x30] sm:$0xf] %vm911_vm8, %v891_v9  ;;  %v867_v20 = vmul.f32 1.4142135, %v835_v14  ;;  %v843_v21 = vsel %vm779_vm13, %v747_v0, %v811_v10  ;;  %vm756_vm14 = vcmp.ge.f32.partialorder %v724_v11, 0.0  ;;  %v689_v22 = vmul.f32 %v1377_v1, %v617_v18 }
 0x14c   : > { %v875_v23 = vmul.f32 1.4142135, %v843_v21  ;;  %v788_v24 = vmul.f32 0.2, %v724_v11  ;;  %vm764_vm15 = vcmp.ge.f32.partialorder %v732_v15, 0.0  ;;  %v740_v25 = vadd.f32 %v1382_v2, %v704_v16 }
 0x14d   : > { %v899_v26 = vpack.c.bf16 %v867_v20, %v867_v20  ;;  %v796_v27 = vmul.f32 0.2, %v732_v15  ;;  %v748_v28 = vadd.f32 %v1382_v2, %v712_v17  ;;  %v725_v30 = vadd.f32 %v1382_v2, %v689_v22 }
 0x14e   : > { %v907_v31 = vpack.c.bf16 %v875_v23, %v875_v23  ;;  %v820_v32 = vsel %vm756_vm14, %v724_v11, %v788_v24  ;;  %vm772_vm0 = vcmp.ge.f32.partialorder %v740_v25, 0.0  ;;  %v804_v33 = vmul.f32 0.2, %v740_v25 }
 0x14f   : > { %932 = vst.msk [vmem:[%s1403_s9 + $0x50] sm:$0xf] %vm911_vm8, %v899_v26  ;;  %v852_v34 = vmul.f32 1.4142135, %v820_v32  ;;  %v828_v35 = vsel %vm764_vm15, %v732_v15, %v796_v27  ;;  %vm780_vm1 = vcmp.ge.f32.partialorder %v748_v28, 0.0  ;;  %vm757_vm2 = vcmp.ge.f32.partialorder %v725_v30, 0.0 }
 0x150   : > { %940 = vst.msk [vmem:[%s1403_s9 + $0x70] sm:$0xf] %vm911_vm8, %v907_v31  ;;  %v860_v36 = vmul.f32 1.4142135, %v828_v35  ;;  %v836_v37 = vsel %vm772_vm0, %v740_v25, %v804_v33  ;;  %v812_v38 = vmul.f32 0.2, %v748_v28  ;;  %v697_v39 = vmul.f32 %v1377_v1, %v637_v19 }
 0x151   : > { %v884_v40 = vpack.c.bf16 %v852_v34, %v852_v34  ;;  %v868_v41 = vmul.f32 1.4142135, %v836_v37  ;;  %v789_v42 = vmul.f32 0.2, %v725_v30  ;;  %v657_v43 = vpop.f32.mrf.mxu2  ;;  %v677_v44 = vpop.f32.mrf.mxu3 }
 0x152   : > { %v892_v45 = vpack.c.bf16 %v860_v36, %v860_v36  ;;  %v844_v46 = vsel %vm780_vm1, %v748_v28, %v812_v38  ;;  %v733_v47 = vadd.f32 %v1382_v2, %v697_v39  ;;  %v705_v48 = vmul.f32 %v1377_v1, %v657_v43  ;;  %v619_v49 = vpop.f32.mrf.mxu0  ;;  %v639_v50 = vpop.f32.mrf.mxu1 }
 0x153   : > { %917 = vst.msk [vmem:[%s1403_s9 + $0x14] sm:$0xf] %vm911_vm8, %v884_v40  ;;  %v900_v51 = vpack.c.bf16 %v868_v41, %v868_v41  ;;  %v876_v52 = vmul.f32 1.4142135, %v844_v46  ;;  %v821_v53 = vsel %vm757_vm2, %v725_v30, %v789_v42  ;;  %v713_v54 = vmul.f32 %v1377_v1, %v677_v44 }
 0x154   : > { %925 = vst.msk [vmem:[%s1403_s9 + $0x34] sm:$0xf] %vm911_vm8, %v892_v45  ;;  %v853_v55 = vmul.f32 1.4142135, %v821_v53  ;;  %vm765_vm3 = vcmp.ge.f32.partialorder %v733_v47, 0.0  ;;  %v741_v56 = vadd.f32 %v1382_v2, %v705_v48  ;;  %v690_v29 = vmul.f32 %v1377_v1, %v619_v49 }
 0x155   : > { %933 = vst.msk [vmem:[%s1403_s9 + $0x54] sm:$0xf] %vm911_vm8, %v900_v51  ;;  %v908_v57 = vpack.c.bf16 %v876_v52, %v876_v52  ;;  %v797_v58 = vmul.f32 0.2, %v733_v47  ;;  %v749_v59 = vadd.f32 %v1382_v2, %v713_v54  ;;  %v698_v60 = vmul.f32 %v1377_v1, %v639_v50 }
 0x156   : > { %v885_v61 = vpack.c.bf16 %v853_v55, %v853_v55  ;;  %vm773_vm4 = vcmp.ge.f32.partialorder %v741_v56, 0.0  ;;  %v805_v62 = vmul.f32 0.2, %v741_v56  ;;  %v726_v63 = vadd.f32 %v1382_v2, %v690_v29 }
 0x157   : > { %941 = vst.msk [vmem:[%s1403_s9 + $0x74] sm:$0xf] %vm911_vm8, %v908_v57  ;;  %v829_v0 = vsel %vm765_vm3, %v733_v47, %v797_v58  ;;  %vm781_vm5 = vcmp.ge.f32.partialorder %v749_v59, 0.0  ;;  %v813_v3 = vmul.f32 0.2, %v749_v59  ;;  %v734_v4 = vadd.f32 %v1382_v2, %v698_v60 }
 0x158   : > { %918 = vst.msk [vmem:[%s1403_s9 + $0x18] sm:$0xf] %vm911_vm8, %v885_v61  ;;  %v861_v5 = vmul.f32 1.4142135, %v829_v0  ;;  %v837_v6 = vsel %vm773_vm4, %v741_v56, %v805_v62  ;;  %vm758_vm6 = vcmp.ge.f32.partialorder %v726_v63, 0.0 }
 0x159   : > { %v869_v7 = vmul.f32 1.4142135, %v837_v6  ;;  %v845_v8 = vsel %vm781_vm5, %v749_v59, %v813_v3  ;;  %v790_v9 = vmul.f32 0.2, %v726_v63  ;;  %vm766_vm7 = vcmp.ge.f32.partialorder %v734_v4, 0.0  ;;  %v659_v10 = vpop.f32.mrf.mxu2  ;;  %v679_v11 = vpop.f32.mrf.mxu3 }
 0x15a   : > { %v893_v12 = vpack.c.bf16 %v861_v5, %v861_v5  ;;  %v877_v13 = vmul.f32 1.4142135, %v845_v8  ;;  %v798_v14 = vmul.f32 0.2, %v734_v4  ;;  %v706_v15 = vmul.f32 %v1377_v1, %v659_v10 }
 0x15b   : > { %v901_v16 = vpack.c.bf16 %v869_v7, %v869_v7  ;;  %v822_v17 = vsel %vm758_vm6, %v726_v63, %v790_v9  ;;  %v714_v18 = vmul.f32 %v1377_v1, %v679_v11 }
 0x15c   : > { %926 = vst.msk [vmem:[%s1403_s9 + $0x38] sm:$0xf] %vm911_vm8, %v893_v12  ;;  %v909_v19 = vpack.c.bf16 %v877_v13, %v877_v13  ;;  %v854_v20 = vmul.f32 1.4142135, %v822_v17  ;;  %v830_v21 = vsel %vm766_vm7, %v734_v4, %v798_v14  ;;  %v742_v22 = vadd.f32 %v1382_v2, %v706_v15 }
 0x15d   : > { %934 = vst.msk [vmem:[%s1403_s9 + $0x58] sm:$0xf] %vm911_vm8, %v901_v16  ;;  %v862_v23 = vmul.f32 1.4142135, %v830_v21  ;;  %v750_v24 = vadd.f32 %v1382_v2, %v714_v18 }
 0x15e   : > { %942 = vst.msk [vmem:[%s1403_s9 + $0x78] sm:$0xf] %vm911_vm8, %v909_v19  ;;  %v886_v25 = vpack.c.bf16 %v854_v20, %v854_v20  ;;  %vm774_vm9 = vcmp.ge.f32.partialorder %v742_v22, 0.0  ;;  %v806_v1 = vmul.f32 0.2, %v742_v22 }
 0x15f   : > { %v894_v26 = vpack.c.bf16 %v862_v23, %v862_v23  ;;  %vm782_vm10 = vcmp.ge.f32.partialorder %v750_v24, 0.0  ;;  %v814_v27 = vmul.f32 0.2, %v750_v24 }
 0x160   : > { %919 = vst.msk [vmem:[%s1403_s9 + $0x1c] sm:$0xf] %vm911_vm8, %v886_v25  ;;  %v838_v28 = vsel %vm774_vm9, %v742_v22, %v806_v1 }
 0x161   : > { %927 = vst.msk [vmem:[%s1403_s9 + $0x3c] sm:$0xf] %vm911_vm8, %v894_v26  ;;  %v870_v30 = vmul.f32 1.4142135, %v838_v28  ;;  %v846_v31 = vsel %vm782_vm10, %v750_v24, %v814_v27 }
 0x162   : > { %v878_v32 = vmul.f32 1.4142135, %v846_v31 }
 0x163   : > { %v902_v33 = vpack.c.bf16 %v870_v30, %v870_v30 }
 0x164   : > { %v910_v2 = vpack.c.bf16 %v878_v32, %v878_v32 }
 0x165   : > { %935 = vst.msk [vmem:[%s1403_s9 + $0x5c] sm:$0xf] %vm911_vm8, %v902_v33 }
 0x166   : > { %943 = vst.msk [vmem:[%s1403_s9 + $0x7c] sm:$0xf] %vm911_vm8, %v910_v2 }
 0x167 PF: > { %s17_s26 = sadd.s32 1, %s1219_s26   ;;  %s1542_s24 = smov %s1215_s25 }
 0x168   : > { %p14_p5 = scmp.ge.s32.totalorder %s17_s26, 4   ;;  %s1543_s25 = smov %s1545_s27 }
 0x16a   :  { %16 = sbr.rel (!%p14_p5) target bundleno = 2 (0x2), region = 81 }

// kernel: tile.49
= control target key start
LH: loop header
LB: loop body
LE: loop exit
PB: predicated region body
PF: predicated region fallthrough
CT: control target
= control target key end

     0   :  { %vm6_vm0 = vcmask 1043458   ;;  %vm10_vm1 = vcmask 1045508   ;;  %vm14_vm2 = vcmask 1047558   ;;  %s19_s6 = smov 3  ;;  %s22_s7 = smov 12  ;;  %vm16_vm3 = vcmask 64512   ;;  %s414_s0 = inlined_call_operand.vmem [shape: f32[8,9,8], index: 0, kind: input, shape index: {}]   ;;  %s415_s1 = inlined_call_operand.vmem [shape: f32[8,72], index: 1, kind: output, shape index: {}]  }
   0x1   :  { %v194_v0 = vld [vmem:[%s414_s0 + $0x8] ss:$16 sm:%s19_s6]   ;;  %s27_s12 = smov 48  ;;  %s32_s13 = smov 192  ;;  %vm38_vm4 = vcmask 589312   ;;  %vm60_vm5 = vcmask 523712  }
   0x2   :  { %v195_v1 = vld [vmem:[%s414_s0 + $0x8] ss:$16 sm:%s22_s7]   ;;  %s63_s18 = smov 3  ;;  %s66_s21 = smov 12  ;;  %vm82_vm6 = vcmask 458112   ;;  %vm104_vm7 = vcmask 392512  }
   0x3   :  { %v25_v2 = vsel %vm6_vm0, %v195_v1, %v194_v0  ;;  %v196_v3 = vld [vmem:[%s414_s0 + $0x8] ss:$16 sm:%s27_s12]   ;;  %v202_v6 = vld [vmem:[%s414_s0 + $0x6] ss:$16 sm:%s63_s18]   ;;  %s71_s22 = smov 48  ;;  %s76_s27 = smov 192 }
   0x4   :  { %v197_v4 = vld [vmem:[%s414_s0 + $0x8] ss:$16 sm:%s32_s13]   ;;  %v30_v5 = vsel %vm10_vm1, %v196_v3, %v25_v2  ;;  %v203_v8 = vld [vmem:[%s414_s0 + $0x6] ss:$16 sm:%s66_s21]   ;;  %s234_s28 = smov 64   ;;  %s41_s2 = smov 3 }
   0x5   :  { %v35_v7 = vsel %vm14_vm2, %v197_v4, %v30_v5  ;;  %v204_v9 = vld [vmem:[%s414_s0 + $0x6] ss:$16 sm:%s71_s22]   ;;  %v69_v10 = vsel %vm6_vm0, %v203_v8, %v202_v6  ;;  %s44_s3 = smov 12  ;;  %v198_v13 = vld [vmem:[%s414_s0 + $0x7] ss:$16 sm:%s41_s2]   ;;  %s49_s8 = smov 48 }
   0x6   :  { %36 = vrot.lane.b32.xlu0 %v35_v7, %s234_s28  ;;  %v205_v11 = vld [vmem:[%s414_s0 + $0x6] ss:$16 sm:%s76_s27]   ;;  %v74_v12 = vsel %vm10_vm1, %v204_v9, %v69_v10  ;;  %s54_s9 = smov 192  ;;  %s85_s14 = smov 3  ;;  %vm126_vm8 = vcmask 326912   ;;  %vm148_vm9 = vcmask 261312  }
   0x7   :  { %v199_v14 = vld [vmem:[%s414_s0 + $0x7] ss:$16 sm:%s44_s3]   ;;  %v79_v15 = vsel %vm14_vm2, %v205_v11, %v74_v12  ;;  %s235_s15 = smov 48   ;;  %v206_v20 = vld [vmem:[%s414_s0 + $0x5] ss:$16 sm:%s85_s14]   ;;  %s88_s18 = smov 12 }
   0x8   :  { %v47_v16 = vsel %vm6_vm0, %v199_v14, %v198_v13  ;;  %v200_v17 = vld [vmem:[%s414_s0 + $0x7] ss:$16 sm:%s49_s8]   ;;  %80 = vrot.lane.b32.xlu1 %v79_v15, %s235_s15  ;;  %s93_s19 = smov 48  ;;  %s98_s24 = smov 192  ;;  %vm170_vm10 = vcmask 195712   ;;  %vm192_vm11 = vcmask 130112  }
   0x9   :  { %v201_v18 = vld [vmem:[%s414_s0 + $0x7] ss:$16 sm:%s54_s9]   ;;  %v52_v19 = vsel %vm10_vm1, %v200_v17, %v47_v16  ;;  %v207_v21 = vld [vmem:[%s414_s0 + $0x5] ss:$16 sm:%s88_s18]   ;;  %s151_s27 = smov 3  ;;  %s154_s28 = smov 12 }
   0xa   :  { %v208_v22 = vld [vmem:[%s414_s0 + $0x5] ss:$16 sm:%s93_s19]   ;;  %v57_v23 = vsel %vm14_vm2, %v201_v18, %v52_v19  ;;  %v91_v24 = vsel %vm6_vm0, %v207_v21, %v206_v20  ;;  %v218_v27 = vld [vmem:[%s414_s0 + $0x2] ss:$16 sm:%s151_s27]   ;;  %s159_s4 = smov 48  ;;  %s164_s7 = smov 192 }
   0xb   :  { %v209_v25 = vld [vmem:[%s414_s0 + $0x5] ss:$16 sm:%s98_s24]   ;;  %v96_v26 = vsel %vm10_vm1, %v208_v22, %v91_v24  ;;  %v219_v28 = vld [vmem:[%s414_s0 + $0x2] ss:$16 sm:%s154_s28]   ;;  %s173_s8 = smov 3  ;;  %s236_s9 = smov 56  }
   0xc   :  { %v157_v29 = vsel %vm6_vm0, %v219_v28, %v218_v27  ;;  %v220_v30 = vld [vmem:[%s414_s0 + $0x2] ss:$16 sm:%s159_s4]   ;;  %v101_v31 = vsel %vm14_vm2, %v209_v25, %v96_v26  ;;  %v222_v32 = vld [vmem:[%s414_s0 + $0x1] ss:$16 sm:%s173_s8]   ;;  %s176_s12 = smov 12  ;;  %s181_s13 = smov 48 }
   0xd   :  { %v223_v33 = vld [vmem:[%s414_s0 + $0x1] ss:$16 sm:%s176_s12]   ;;  %s186_s16 = smov 192  ;;  %v162_v34 = vsel %vm10_vm1, %v220_v30, %v157_v29  ;;  %v221_v35 = vld [vmem:[%s414_s0 + $0x2] ss:$16 sm:%s164_s7]   ;;  %s107_s21 = smov 3 }
   0xe   :  { %58 = vrot.lane.b32.xlu0 %v57_v23, %s236_s9  ;;  %v179_v36 = vsel %vm6_vm0, %v223_v33, %v222_v32  ;;  %v224_v37 = vld [vmem:[%s414_s0 + $0x1] ss:$16 sm:%s181_s13]   ;;  %s110_s22 = smov 12  ;;  %s237_s23 = smov 40   ;;  %v167_v42 = vsel %vm14_vm2, %v221_v35, %v162_v34 }
   0xf   :  { %v225_v38 = vld [vmem:[%s414_s0 + $0x1] ss:$16 sm:%s186_s16]   ;;  %v210_v39 = vld [vmem:[%s414_s0 + $0x4] ss:$16 sm:%s107_s21]   ;;  %s115_s28 = smov 48  ;;  %s120_s29 = smov 192  ;;  %v184_v43 = vsel %vm10_vm1, %v224_v37, %v179_v36 }
  0x10   :  { %102 = vrot.lane.b32.xlu1 %v101_v31, %s237_s23  ;;  %v211_v40 = vld [vmem:[%s414_s0 + $0x4] ss:$16 sm:%s110_s22]   ;;  %s129_s5 = smov 3  ;;  %s132_s10 = smov 12  ;;  %v189_v52 = vsel %vm14_vm2, %v225_v38, %v184_v43 }
  0x11   :  { %v212_v41 = vld [vmem:[%s414_s0 + $0x4] ss:$16 sm:%s115_s28]   ;;  %v113_v44 = vsel %vm6_vm0, %v211_v40, %v210_v39  ;;  %v214_v46 = vld [vmem:[%s414_s0 + $0x3] ss:$16 sm:%s129_s5]   ;;  %s137_s11 = smov 48  ;;  %s142_s16 = smov 192 }
  0x12   :  { %v213_v45 = vld [vmem:[%s414_s0 + $0x4] ss:$16 sm:%s120_s29]   ;;  %v118_v47 = vsel %vm10_vm1, %v212_v41, %v113_v44  ;;  %v215_v48 = vld [vmem:[%s414_s0 + $0x3] ss:$16 sm:%s132_s10]   ;;  %s238_s17 = smov 16   ;;  %s239_s18 = smov 32  }
  0x13   :  { %v123_v49 = vsel %vm14_vm2, %v213_v45, %v118_v47  ;;  %v135_v50 = vsel %vm6_vm0, %v215_v48, %v214_v46  ;;  %v216_v51 = vld [vmem:[%s414_s0 + $0x3] ss:$16 sm:%s137_s11]   ;;  %s240_s21 = smov 8   ;;  %s241_s22 = smov 24  }
  0x14   :  { %124 = vrot.lane.b32.xlu2 %v123_v49, %s239_s18  ;;  %v140_v53 = vsel %vm10_vm1, %v216_v51, %v135_v50  ;;  %v217_v54 = vld [vmem:[%s414_s0 + $0x3] ss:$16 sm:%s142_s16]   ;;  %s2_s23 = smov 3  ;;  %s4_s24 = smov 12 }
  0x15   :  { %v145_v55 = vsel %vm14_vm2, %v217_v54, %v140_v53  ;;  %s8_s25 = smov 48  ;;  %s12_s26 = smov 192  ;;  %v3_v56 = vld [vmem:[%s414_s0] ss:$16 sm:%s2_s23]  }
  0x16   :  { %168 = vrot.lane.b32.xlu0 %v167_v42, %s238_s17  ;;  %v5_v57 = vld [vmem:[%s414_s0] ss:$16 sm:%s4_s24]  }
  0x17   :  { %v7_v58 = vsel %vm6_vm0, %v5_v57, %v3_v56  ;;  %v9_v59 = vld [vmem:[%s414_s0] ss:$16 sm:%s8_s25]  }
  0x18   :  { %190 = vrot.lane.b32.xlu1 %v189_v52, %s240_s21  ;;  %v11_v60 = vsel %vm10_vm1, %v9_v59, %v7_v58  ;;  %v13_v61 = vld [vmem:[%s414_s0] ss:$16 sm:%s12_s26]  }
  0x19   :  { %v15_v62 = vsel %vm14_vm2, %v13_v61, %v11_v60 }
  0x1a   :  { %17 = vst.msk [vmem:[%s415_s1] sm:$0xff] %vm16_vm3, %v15_v62  }
  0x1c   :  { %146 = vrot.lane.b32.xlu2 %v145_v55, %s241_s22 }
  0x6e   :  { %v125_v63 = vpop.permute.xlu2 %124  }
  0x76   :  { %v147_v1 = vpop.permute.xlu2 %146  }
  0x78   :  { %v37_v0 = vpop.permute.xlu0 %36  }
  0x79   :  { %39 = vst.msk [vmem:[%s415_s1] sm:$0xff] %vm38_vm4, %v37_v0  }
  0x7a   :  { %v81_v2 = vpop.permute.xlu1 %80  }
  0x80   :  { %v59_v3 = vpop.permute.xlu0 %58  }
  0x81   :  { %61 = vst.msk [vmem:[%s415_s1] sm:$0xff] %vm60_vm5, %v59_v3  }
  0x82   :  { %83 = vst.msk [vmem:[%s415_s1] sm:$0xff] %vm82_vm6, %v81_v2   ;;  %v103_v4 = vpop.permute.xlu1 %102  }
  0x83   :  { %105 = vst.msk [vmem:[%s415_s1] sm:$0xff] %vm104_vm7, %v103_v4  }
  0x84   :  { %127 = vst.msk [vmem:[%s415_s1] sm:$0xff] %vm126_vm8, %v125_v63  }
  0x85   :  { %149 = vst.msk [vmem:[%s415_s1] sm:$0xff] %vm148_vm9, %v147_v1  }
  0x88   :  { %v169_v5 = vpop.permute.xlu0 %168  }
  0x89   :  { %171 = vst.msk [vmem:[%s415_s1] sm:$0xff] %vm170_vm10, %v169_v5  }
  0x8a   :  { %v191_v6 = vpop.permute.xlu1 %190  }
  0x8b   :  { %193 = vst.msk [vmem:[%s415_s1] sm:$0xff] %vm192_vm11, %v191_v6  }

// kernel: upsampling_block_forward.3
= control target key start
LH: loop header
LB: loop body
LE: loop exit
PB: predicated region body
PF: predicated region fallthrough
CT: control target
= control target key end

     0   :  { %s2935_s24 = smov 0   ;;  %s2937_s25 = smov 0   ;;  %s4707_s0 = inlined_call_operand.vmem [shape: f32[2,1,8], index: 0, kind: input, shape index: {}]   ;;  %s4708_s1 = inlined_call_operand.vmem [shape: f32[8,72], index: 1, kind: input, shape index: {}]   ;;  %s4709_s2 = inlined_call_operand.vmem [shape: f32[1,72], index: 2, kind: input, shape index: {}]   ;;  %s4710_s3 = inlined_call_operand.vmem [shape: f32[8,8], index: 3, kind: input, shape index: {}]   ;;  %s4711_s4 = inlined_call_operand.vmem [shape: bf16[72,8], index: 4, kind: input, shape index: {}]   ;;  %s4712_s5 = inlined_call_operand.vmem [shape: f32[1,8], index: 5, kind: input, shape index: {}]   ;;  %s4713_s6 = inlined_call_operand.vmem [shape: bf16[2,1024,72], index: 6, kind: input, shape index: {}]   ;;  %s4714_s7 = inlined_call_operand.vmem [shape: f32[2,1024,8], index: 7, kind: output, shape index: {}]  }
   0x1   :  { %s2939_s26 = smov 0  }
   0x2 LB: > { %s29_s27 = sadd.s32 1, %s2889_s25  ;;  %p2414_p0 = scmp.ge.s32.totalorder %s2893_s26, 1  ;;  %s2893_s26 = sphi %s2939_s26, %s17_s26   ;;  %s2889_s25 = sphi %s2937_s25, %s4994_s25   ;;  %s2885_s24 = sphi %s2935_s24, %s4993_s24  }
   0x3   : > { %p31_p1 = scmp.ge.s32.totalorder %s29_s27, 2  ;;  %p266_p2 = scmp.lt.s32.totalorder %s2893_s26, 3 }
   0x5   : > { %s4996_s27 = smov (%p31_p1, %s29_s27), 0  ;;  %p267_p3 = pnand %p2414_p0, %p266_p2 }
   0x7   : > { %270 = sbr.rel (%p267_p3) target bundleno = 566 (0x236), region = 48 }
   0xc   : > { %v334_v0 = vld [vmem:[%s4708_s1] sm:$0xff]  ;;  %p309_p4 = scmp.lt.s32.totalorder %s2885_s24, 1  ;;  %vm1080_vm0 = vcmask 1043456   ;;  %vm335_vm1 = vcmask 64512   ;;  %v2508_v7 = vld [vmem:[%s4711_s4 + $0x18] sm:$0xff]  ;;  %v2507_v8 = vld [vmem:[%s4711_s4 + $0x10] sm:$0xff] }
   0xd   : > { %v363_v1 = vld [vmem:[%s4710_s3] sm:$0xff]  ;;  %354 = vmatpush.msra.mxu0 %v334_v0  ;;  %v2506_v9 = vld [vmem:[%s4711_s4 + $0x8] sm:$0xff]  ;;  %vm887_vm2 = vcmask 588800  }
   0xe   : > { %v859_v2 = vld [vmem:[%s4711_s4 + $0x20] sm:$0xf]  ;;  %382 = vmatpush.msra.mxu1 %v363_v1  ;;  %s4998_s24 = smov (!%p309_p4, %s2885_s24), 1 }
   0xf   : > { %v877_v3 = vunpack.c.l.b16 %v859_v2  ;;  %s311_s13 = scalar_lea.vmem %s4707_s0, %s4998_s24  ;;  %s2503_s20 = sshll.u32 %s4998_s24, 9  ;;  %v2505_v10 = vld [vmem:[%s4711_s4] sm:$0xff] }
  0x10   : > { %v333_v5 = vld [vmem:[%s311_s13] sm:$0x1]  ;;  %s2985_s29 = scalar_lea.vmem %s4713_s6, %s2503_s20  ;;  %s2504_s11 = sshll.u32 %s4998_s24, 10 }
  0x11   : > { %v882_v4 = vpack.c.b16 %v877_v3, %v877_v3  ;;  %2419 = vmatmul.msk.f32.vlgmr.msra.gmra.mxu0 %vm335_vm1, %v333_v5  ;;  %v2988_v11 = vld [vmem:[%s2985_s29] sm:$0xff]   ;;  %v3000_v15 = vld [vmem:[%s2985_s29 + $0x8] sm:$0xff]   ;;  %v3019_v26 = vld [vmem:[%s2985_s29 + $0x10] sm:$0xff]   ;;  %s4080_s13 = scalar_lea.vmem %s4714_s7, %s2504_s11 }
  0x12   : > { %v2991_v12 = vld [vmem:[%s2985_s29 + $0x80] sm:$0xff]   ;;  %v3003_v16 = vld [vmem:[%s2985_s29 + $0x88] sm:$0xff]   ;;  %v2511_v17 = vunpack.c.l.bf16 %v2988_v11  ;;  %v2512_v18 = vunpack.c.h.bf16 %v2988_v11  ;;  %v3022_v27 = vld [vmem:[%s2985_s29 + $0x90] sm:$0xff]   ;;  %v2515_v29 = vunpack.c.l.bf16 %v3000_v15  ;;  %v2516_v30 = vunpack.c.h.bf16 %v3000_v15 }
  0x13   : > { %v1082_v6 = vsel %vm1080_vm0, %v882_v4, 0  ;;  %v2994_v13 = vld [vmem:[%s2985_s29 + $0x100] sm:$0xff]   ;;  %v2575_v19 = vunpack.c.l.bf16 %v2991_v12  ;;  %v3009_v20 = vld [vmem:[%s2985_s29 + $0x108] sm:$0xff]   ;;  %v2576_v22 = vunpack.c.h.bf16 %v2991_v12  ;;  %v3029_v32 = vld [vmem:[%s2985_s29 + $0x110] sm:$0xff]  }
  0x14   : > { %2828 = vmatpush.bf16.msrb.mxu1 %v1082_v6  ;;  %1087 = vmatpush.bf16.msrb.mxu0 %v1082_v6  ;;  %v2997_v14 = vld [vmem:[%s2985_s29 + $0x180] sm:$0xff]   ;;  %v3012_v21 = vld [vmem:[%s2985_s29 + $0x188] sm:$0xff]   ;;  %v2639_v23 = vunpack.c.l.bf16 %v2994_v13  ;;  %v2640_v24 = vunpack.c.h.bf16 %v2994_v13  ;;  %v3032_v33 = vld [vmem:[%s2985_s29 + $0x190] sm:$0xff]  }
  0x15   : > { %2829 = vmatpush.bf16.msra.mxu2 %v1082_v6  ;;  %2830 = vmatpush.bf16.msra.mxu3 %v1082_v6  ;;  %v2703_v25 = vunpack.c.l.bf16 %v2997_v14  ;;  %v2704_v28 = vunpack.c.h.bf16 %v2997_v14  ;;  %v3039_v38 = vld [vmem:[%s2985_s29 + $0x18] sm:$0xff]   ;;  %v3059_v50 = vld [vmem:[%s2985_s29 + $0x20] sm:$0xff]   ;;  %v3079_v62 = vld [vmem:[%s2985_s29 + $0x28] sm:$0xff]   ;;  %v4760_v14 = vunpack.c.l.bf16 %v3003_v16 }
  0x16   : > { %v3042_v39 = vld [vmem:[%s2985_s29 + $0x98] sm:$0xff]   ;;  %v3062_v51 = vld [vmem:[%s2985_s29 + $0xa0] sm:$0xff]   ;;  %v3082_v63 = vld [vmem:[%s2985_s29 + $0xa8] sm:$0xff]  }
  0x17   : > { %v3049_v44 = vld [vmem:[%s2985_s29 + $0x118] sm:$0xff]   ;;  %v3069_v56 = vld [vmem:[%s2985_s29 + $0x120] sm:$0xff]   ;;  %v3089_v4 = vld [vmem:[%s2985_s29 + $0x128] sm:$0xff]  }
  0x18   : > { %1088 = vmatpush.bf16.msrb.mxu0 %v2508_v7  ;;  %2831 = vmatpush.bf16.msrb.mxu1 %v2508_v7  ;;  %v3052_v45 = vld [vmem:[%s2985_s29 + $0x198] sm:$0xff]   ;;  %v3072_v57 = vld [vmem:[%s2985_s29 + $0x1a0] sm:$0xff]   ;;  %v3092_v5 = vld [vmem:[%s2985_s29 + $0x1a8] sm:$0xff]  }
  0x19   : > { %2832 = vmatpush.bf16.msra.mxu2 %v2508_v7  ;;  %2833 = vmatpush.bf16.msra.mxu3 %v2508_v7  ;;  %v3102_v1 = vld [vmem:[%s2985_s29 + $0xb0] sm:$0xff]   ;;  %v3119_v2 = vld [vmem:[%s2985_s29 + $0x38] sm:$0xff]   ;;  %v360_v6 = vld [vmem:[%s4709_s2] sm:$0x1] }
  0x1a   : > { %v3109_v61 = vld [vmem:[%s2985_s29 + $0x130] sm:$0xff]   ;;  %v3129_v60 = vld [vmem:[%s2985_s29 + $0xb8] sm:$0xff]   ;;  %v3154_v46 = vld [vmem:[%s2985_s29 + $0x140] sm:$0xff]  }
  0x1b   : > { %v3116_v3 = vld [vmem:[%s2985_s29 + $0x1b0] sm:$0xff]   ;;  %v3132_v58 = vld [vmem:[%s2985_s29 + $0x138] sm:$0xff]   ;;  %v3161_v43 = vld [vmem:[%s2985_s29 + $0x1c0] sm:$0xff]  }
  0x1c   : > { %1089 = vmatpush.bf16.msrb.mxu0 %v2507_v8  ;;  %2834 = vmatpush.bf16.msrb.mxu1 %v2507_v8  ;;  %v3138_v59 = vld [vmem:[%s2985_s29 + $0x1b8] sm:$0xff]   ;;  %v3166_v52 = vld [vmem:[%s2985_s29 + $0x48] sm:$0xff]   ;;  %v3190_v37 = vld [vmem:[%s2985_s29 + $0x50] sm:$0xff]  }
  0x1d   : > { %2835 = vmatpush.bf16.msra.mxu2 %v2507_v8  ;;  %2836 = vmatpush.bf16.msra.mxu3 %v2507_v8  ;;  %v3169_v42 = vld [vmem:[%s2985_s29 + $0xc8] sm:$0xff]   ;;  %v3199_v8 = vld [vmem:[%s2985_s29 + $0x150] sm:$0xff]   ;;  %v3214_v40 = vld [vmem:[%s2985_s29 + $0x58] sm:$0xff]  }
  0x1e   : > { %v3176_v7 = vld [vmem:[%s2985_s29 + $0x148] sm:$0xff]   ;;  %v3206_v34 = vld [vmem:[%s2985_s29 + $0x1d0] sm:$0xff]   ;;  %v3217_v48 = vld [vmem:[%s2985_s29 + $0xd8] sm:$0xff]  }
  0x1f   : > { %v3183_v49 = vld [vmem:[%s2985_s29 + $0x1c8] sm:$0xff]  }
  0x20   : > { %1090 = vmatpush.bf16.msrb.mxu0 %v2506_v9  ;;  %2837 = vmatpush.bf16.msrb.mxu1 %v2506_v9 }
  0x21   : > { %2838 = vmatpush.bf16.msra.mxu2 %v2506_v9  ;;  %2839 = vmatpush.bf16.msra.mxu3 %v2506_v9  ;;  %v3141_v9 = vld [vmem:[%s2985_s29 + $0x40] sm:$0xff]  }
  0x24   : > { %1091 = vmatpush.bf16.msrb.mxu0 %v2505_v10  ;;  %2840 = vmatpush.bf16.msrb.mxu1 %v2505_v10 }
  0x25   : > { %2841 = vmatpush.bf16.msra.mxu2 %v2505_v10  ;;  %2842 = vmatpush.bf16.msra.mxu3 %v2505_v10  ;;  %v3099_v10 = vld [vmem:[%s2985_s29 + $0x30] sm:$0xff]  }
  0x8e   : > { %v356_v0 = vpop.f32.mrf.mxu0 }
  0x8f   : > { %v359_v55 = vmul.f32 0.35355338, %v356_v0  ;;  %v3148_v0 = vld [vmem:[%s2985_s29 + $0xc0] sm:$0xff]  }
  0x91   : > { %v361_v53 = vadd.f32 %v360_v6, %v359_v55 }
  0x93   : > { %v525_v55 = vpack.c.bf16 %v361_v53, %v361_v53  ;;  %v362_v6 = vmul.f32 %v361_v53, %v361_v53 }
  0x95   : > { %v527_v54 = vpack.i.b16 %v525_v55, %v525_v55  ;;  %2420 = vmatmul.msk.f32.vlgmr.msra.gmra.mxu1 %vm335_vm1, %v362_v6  ;;  %v3193_v6 = vld [vmem:[%s2985_s29 + $0xd0] sm:$0xff]  }
  0x97   : > { %v529_v41 = vperm.slane %v527_v54, 0 }
  0x99   : > { %v3208_v31 = vunpack.c.l.bf16 %v529_v41 }
  0x9b   : > { %v659_v54 = vmul.f32 %v2511_v17, %v3208_v31  ;;  %v660_v36 = vmul.f32 %v2512_v18, %v3208_v31  ;;  %v691_v47 = vmul.f32 %v2575_v19, %v3208_v31  ;;  %v692_v55 = vmul.f32 %v2576_v22, %v3208_v31  ;;  %v3248_v19 = vld [vmem:[%s2985_s29 + $0x158] sm:$0xff]  }
  0x9c   : > { %v723_v41 = vmul.f32 %v2639_v23, %v3208_v31  ;;  %v724_v17 = vmul.f32 %v2640_v24, %v3208_v31  ;;  %v755_v11 = vmul.f32 %v2703_v25, %v3208_v31  ;;  %v756_v18 = vmul.f32 %v2704_v28, %v3208_v31 }
  0x9d   : > { %v787_v12 = vpack.c.bf16 %v660_v36, %v659_v54  ;;  %v803_v22 = vpack.c.bf16 %v692_v55, %v691_v47  ;;  %v3253_v23 = vmul.f32 %v2515_v29, %v3208_v31  ;;  %v3258_v13 = vmul.f32 %v2516_v30, %v3208_v31 }
  0x9e   : > { %v819_v24 = vpack.c.bf16 %v724_v17, %v723_v41  ;;  %v835_v25 = vpack.c.bf16 %v756_v18, %v755_v11  ;;  %v3263_v28 = vmul.f32 %v4760_v14, %v3208_v31  ;;  %v4761_v36 = vunpack.c.h.bf16 %v3003_v16 }
  0x9f   : > { %2437 = vmatmul.msk.bf16.vlgmr.msrb.gmra.mxu0 %vm887_vm2, %v787_v12  ;;  %2453 = vmatmul.msk.bf16.vlgmr.msrb.gmra.mxu1 %vm887_vm2, %v803_v22  ;;  %v4762_v29 = vunpack.c.l.bf16 %v3009_v20  ;;  %v4763_v55 = vunpack.c.h.bf16 %v3009_v20  ;;  %v4764_v17 = vunpack.c.l.bf16 %v3012_v21  ;;  %v4765_v18 = vunpack.c.h.bf16 %v3012_v21 }
  0xa0   : > { %v3268_v47 = vmul.f32 %v4761_v36, %v3208_v31  ;;  %2469 = vmatmul.msk.bf16.vlgmr.msra.gmra.mxu2 %vm887_vm2, %v819_v24  ;;  %2485 = vmatmul.msk.bf16.vlgmr.msra.gmra.mxu3 %vm887_vm2, %v835_v25  ;;  %v4766_v24 = vunpack.c.l.bf16 %v3019_v26  ;;  %v4767_v14 = vunpack.c.h.bf16 %v3019_v26  ;;  %v4768_v21 = vunpack.c.l.bf16 %v3022_v27 }
  0xa1   : > { %v3277_v30 = vmul.f32 %v4762_v29, %v3208_v31  ;;  %v3282_v54 = vmul.f32 %v4763_v55, %v3208_v31  ;;  %v3292_v11 = vmul.f32 %v4764_v17, %v3208_v31  ;;  %v3297_v20 = vmul.f32 %v4765_v18, %v3208_v31 }
  0xa2   : > { %v804_v41 = vpack.c.bf16 %v3268_v47, %v3263_v28  ;;  %v3305_v25 = vmul.f32 %v4766_v24, %v3208_v31  ;;  %v3310_v28 = vmul.f32 %v4767_v14, %v3208_v31  ;;  %v3315_v36 = vmul.f32 %v4768_v21, %v3208_v31 }
  0xa3   : > { %v836_v47 = vpack.c.bf16 %v3297_v20, %v3292_v11  ;;  %v4769_v29 = vunpack.c.h.bf16 %v3022_v27  ;;  %v4770_v17 = vunpack.c.l.bf16 %v3029_v32  ;;  %v4771_v26 = vunpack.c.h.bf16 %v3029_v32 }
  0xa4   : > { %v4772_v11 = vunpack.c.l.bf16 %v3032_v33  ;;  %v4773_v27 = vunpack.c.h.bf16 %v3032_v33  ;;  %v4776_v33 = vunpack.c.l.bf16 %v3042_v39  ;;  %v4777_v12 = vunpack.c.h.bf16 %v3042_v39 }
  0xa5   : > { %v3322_v55 = vmul.f32 %v4769_v29, %v3208_v31  ;;  %v3327_v18 = vmul.f32 %v4770_v17, %v3208_v31  ;;  %v3332_v24 = vmul.f32 %v4771_v26, %v3208_v31  ;;  %v4774_v29 = vunpack.c.l.bf16 %v3039_v38 }
  0xa6   : > { %v3339_v20 = vmul.f32 %v4772_v11, %v3208_v31  ;;  %v3344_v21 = vmul.f32 %v4773_v27, %v3208_v31  ;;  %v4775_v11 = vunpack.c.h.bf16 %v3039_v38  ;;  %v3363_v27 = vmul.f32 %v4776_v33, %v3208_v31 }
  0xa7   : > { %v3349_v17 = vmul.f32 %v4774_v29, %v3208_v31  ;;  %v3370_v32 = vmul.f32 %v4777_v12, %v3208_v31  ;;  %v4778_v26 = vunpack.c.l.bf16 %v3049_v44  ;;  %v4779_v38 = vunpack.c.h.bf16 %v3049_v44 }
  0xa8   : > { %v3358_v14 = vmul.f32 %v4775_v11, %v3208_v31  ;;  %v4780_v29 = vunpack.c.l.bf16 %v3052_v45  ;;  %v4782_v39 = vunpack.c.h.bf16 %v3052_v45  ;;  %v4787_v45 = vunpack.c.l.bf16 %v3062_v51 }
  0xa9   : > { %v3375_v16 = vmul.f32 %v4778_v26, %v3208_v31  ;;  %v3380_v11 = vmul.f32 %v4779_v38, %v3208_v31  ;;  %v4783_v26 = vunpack.c.l.bf16 %v3059_v50  ;;  %v4788_v22 = vunpack.c.h.bf16 %v3062_v51 }
  0xaa   : > { %v3387_v35 = vmul.f32 %v4780_v29, %v3208_v31  ;;  %v3392_v12 = vmul.f32 %v4782_v39, %v3208_v31  ;;  %v4785_v29 = vunpack.c.h.bf16 %v3059_v50  ;;  %v3411_v39 = vmul.f32 %v4787_v45, %v3208_v31 }
  0xab   : > { %v3397_v53 = vmul.f32 %v4783_v26, %v3208_v31  ;;  %v3418_v44 = vmul.f32 %v4788_v22, %v3208_v31  ;;  %v4789_v38 = vunpack.c.l.bf16 %v3069_v56  ;;  %v4791_v50 = vunpack.c.h.bf16 %v3069_v56 }
  0xac   : > { %4781 = vst [vmem:[#allocation2_spill] sm:$0xff] %v3387_v35  ;;  %v3406_v33 = vmul.f32 %v4785_v29, %v3208_v31  ;;  %v4792_v26 = vunpack.c.l.bf16 %v3072_v57  ;;  %v4794_v22 = vunpack.c.h.bf16 %v3072_v57  ;;  %v4800_v57 = vunpack.c.l.bf16 %v3082_v63 }
  0xad   : > { %4784 = vst [vmem:[#allocation3_spill] sm:$0xff] %v3397_v53  ;;  %v3423_v15 = vmul.f32 %v4789_v38, %v3208_v31  ;;  %v3428_v29 = vmul.f32 %v4791_v50, %v3208_v31  ;;  %v4796_v38 = vunpack.c.l.bf16 %v3079_v62  ;;  %v4802_v45 = vunpack.c.l.bf16 %v3089_v4 }
  0xae   : > { %4786 = vst [vmem:[#allocation4_spill] sm:$0xff] %v3406_v33  ;;  %v3435_v51 = vmul.f32 %v4792_v26, %v3208_v31  ;;  %v3440_v35 = vmul.f32 %v4794_v22, %v3208_v31  ;;  %v4798_v26 = vunpack.c.h.bf16 %v3079_v62  ;;  %v3459_v22 = vmul.f32 %v4800_v57, %v3208_v31 }
  0xaf   : > { %4790 = vst [vmem:[#allocation5_spill] sm:$0xff] %v3423_v15  ;;  %v3445_v56 = vmul.f32 %v4796_v38, %v3208_v31  ;;  %v4801_v33 = vunpack.c.h.bf16 %v3082_v63  ;;  %v3471_v15 = vmul.f32 %v4802_v45, %v3208_v31  ;;  %v4804_v62 = vunpack.c.h.bf16 %v3089_v4  ;;  %v3496_v4 = vld [vmem:[%s2985_s29 + $0x1d8] sm:$0xff]   ;;  %2454 = vmatmul.msk.bf16.gmra.mxu1 %vm887_vm2, %v804_v41 }
  0xb0   : > { %4793 = vst [vmem:[#allocation6_spill] sm:$0xff] %v3435_v51  ;;  %v3454_v53 = vmul.f32 %v4798_v26, %v3208_v31  ;;  %v4805_v38 = vunpack.c.l.bf16 %v3092_v5  ;;  %v4806_v63 = vunpack.c.h.bf16 %v3092_v5  ;;  %v4807_v45 = vunpack.c.l.bf16 %v3099_v10  ;;  %2486 = vmatmul.msk.bf16.gmra.mxu3 %vm887_vm2, %v836_v47 }
  0xb1   : > { %4795 = vst [vmem:[#allocation7_spill] sm:$0xff] %v3440_v35  ;;  %v3466_v50 = vmul.f32 %v4801_v33, %v3208_v31  ;;  %v3476_v26 = vmul.f32 %v4804_v62, %v3208_v31  ;;  %v4809_v5 = vunpack.c.l.bf16 %v3102_v1  ;;  %v4811_v57 = vunpack.c.l.bf16 %v3109_v61 }
  0xb2   : > { %4797 = vst [vmem:[#allocation8_spill] sm:$0xff] %v3445_v56  ;;  %v3483_v51 = vmul.f32 %v4805_v38, %v3208_v31  ;;  %v3488_v33 = vmul.f32 %v4806_v63, %v3208_v31  ;;  %v3493_v35 = vmul.f32 %v4807_v45, %v3208_v31  ;;  %v4808_v38 = vunpack.c.h.bf16 %v3099_v10 }
  0xb3   : > { %4799 = vst [vmem:[#allocation9_spill] sm:$0xff] %v3454_v53  ;;  %v3510_v63 = vmul.f32 %v4809_v5, %v3208_v31  ;;  %v4810_v53 = vunpack.c.h.bf16 %v3102_v1  ;;  %v4812_v10 = vunpack.c.h.bf16 %v3109_v61  ;;  %v4813_v5 = vpack.c.bf16 %v3258_v13, %v3253_v23 }
  0xb4   : > { %4803 = vst [vmem:[#allocation10_spill] sm:$0xff] %v3471_v15  ;;  %v3505_v56 = vmul.f32 %v4808_v38, %v3208_v31  ;;  %v3522_v15 = vmul.f32 %v4811_v57, %v3208_v31  ;;  %v4815_v61 = vunpack.c.h.bf16 %v3116_v3  ;;  %v4816_v23 = vpack.c.bf16 %v3282_v54, %v3277_v30 }
  0xb5   : > { %v3517_v62 = vmul.f32 %v4810_v53, %v3208_v31  ;;  %v3527_v38 = vmul.f32 %v4812_v10, %v3208_v31  ;;  %2438 = vmatmul.msk.bf16.gmra.mxu0 %vm887_vm2, %v4813_v5  ;;  %v4814_v53 = vunpack.c.l.bf16 %v3116_v3  ;;  %v4817_v3 = vunpack.c.l.bf16 %v3119_v2 }
  0xb6   : > { %v3544_v10 = vmul.f32 %v4815_v61, %v3208_v31  ;;  %2470 = vmatmul.msk.bf16.gmra.mxu2 %vm887_vm2, %v4816_v23  ;;  %v4818_v54 = vunpack.c.h.bf16 %v3119_v2  ;;  %v4819_v61 = vunpack.c.l.bf16 %v3129_v60  ;;  %v4821_v41 = vunpack.c.h.bf16 %v3129_v60 }
  0xb7   : > { %v3539_v57 = vmul.f32 %v4814_v53, %v3208_v31  ;;  %v3559_v5 = vmul.f32 %v4817_v3, %v3208_v31  ;;  %v4822_v13 = vunpack.c.l.bf16 %v3132_v58  ;;  %v4823_v2 = vunpack.c.h.bf16 %v3132_v58 }
  0xb8   : > { %v3567_v47 = vmul.f32 %v4818_v54, %v3208_v31  ;;  %v3572_v23 = vmul.f32 %v4819_v61, %v3208_v31  ;;  %v3577_v3 = vmul.f32 %v4821_v41, %v3208_v31  ;;  %v4824_v30 = vunpack.c.l.bf16 %v3138_v59 }
  0xb9   : > { %v3582_v1 = vmul.f32 %v4822_v13, %v3208_v31  ;;  %v3587_v54 = vmul.f32 %v4823_v2, %v3208_v31  ;;  %v4826_v60 = vunpack.c.h.bf16 %v3138_v59  ;;  %v4828_v58 = vunpack.c.l.bf16 %v3141_v9 }
  0xba   : > { %4820 = vst [vmem:[#allocation11_spill] sm:$0xff] %v3572_v23  ;;  %v3592_v61 = vmul.f32 %v4824_v30, %v3208_v31  ;;  %v4830_v30 = vunpack.c.h.bf16 %v3141_v9  ;;  %v4831_v53 = vunpack.c.l.bf16 %v3148_v0 }
  0xbb   : > { %v3597_v41 = vmul.f32 %v4826_v60, %v3208_v31  ;;  %v3606_v2 = vmul.f32 %v4828_v58, %v3208_v31  ;;  %v4833_v58 = vunpack.c.h.bf16 %v3148_v0  ;;  %v4837_v60 = vunpack.c.h.bf16 %v3154_v46 }
  0xbc   : > { %4825 = vst [vmem:[#allocation12_spill] sm:$0xff] %v3592_v61  ;;  %v3611_v45 = vmul.f32 %v4830_v30, %v3208_v31  ;;  %v3620_v13 = vmul.f32 %v4831_v53, %v3208_v31  ;;  %v4835_v30 = vunpack.c.l.bf16 %v3154_v46  ;;  %v4838_v53 = vunpack.c.l.bf16 %v3161_v43 }
  0xbd   : > { %4827 = vst [vmem:[#allocation13_spill] sm:$0xff] %v3597_v41  ;;  %v3625_v23 = vmul.f32 %v4833_v58, %v3208_v31  ;;  %v3637_v61 = vmul.f32 %v4837_v60, %v3208_v31  ;;  %v4839_v58 = vunpack.c.h.bf16 %v3161_v43  ;;  %v4842_v46 = vunpack.c.h.bf16 %v3166_v52 }
  0xbe   : > { %4829 = vst [vmem:[#allocation14_spill] sm:$0xff] %v3606_v2  ;;  %v3632_v59 = vmul.f32 %v4835_v30, %v3208_v31  ;;  %v3642_v41 = vmul.f32 %v4838_v53, %v3208_v31  ;;  %v4840_v30 = vunpack.c.l.bf16 %v3166_v52  ;;  %v4843_v0 = vunpack.c.l.bf16 %v3169_v42 }
  0xbf   : > { %4832 = vst [vmem:[#allocation15_spill] sm:$0xff] %v3620_v13  ;;  %v3649_v9 = vmul.f32 %v4839_v58, %v3208_v31  ;;  %v3659_v60 = vmul.f32 %v4842_v46, %v3208_v31  ;;  %v4845_v43 = vunpack.c.h.bf16 %v3169_v42  ;;  %v4850_v42 = vunpack.c.l.bf16 %v3183_v49 }
  0xc0   : > { %4834 = vst [vmem:[#allocation16_spill] sm:$0xff] %v3625_v23  ;;  %v3654_v2 = vmul.f32 %v4840_v30, %v3208_v31  ;;  %v3666_v13 = vmul.f32 %v4843_v0, %v3208_v31  ;;  %v4846_v30 = vunpack.c.l.bf16 %v3176_v7  ;;  %v4848_v0 = vunpack.c.h.bf16 %v3176_v7 }
  0xc1   : > { %4836 = vst [vmem:[#allocation17_spill] sm:$0xff] %v3632_v59  ;;  %v3671_v58 = vmul.f32 %v4845_v43, %v3208_v31  ;;  %v3690_v43 = vmul.f32 %v4850_v42, %v3208_v31  ;;  %v4851_v59 = vunpack.c.h.bf16 %v3183_v49  ;;  %v4852_v46 = vunpack.c.l.bf16 %v3190_v37 }
  0xc2   : > { %4841 = vst [vmem:[#allocation18_spill] sm:$0xff] %v3654_v2  ;;  %v3676_v23 = vmul.f32 %v4846_v30, %v3208_v31  ;;  %v3685_v53 = vmul.f32 %v4848_v0, %v3208_v31  ;;  %v4854_v0 = vunpack.c.h.bf16 %v3190_v37  ;;  %v4856_v30 = vunpack.c.l.bf16 %v3193_v6 }
  0xc3   : > { %4844 = vst [vmem:[#allocation19_spill] sm:$0xff] %v3666_v13  ;;  %v3697_v52 = vmul.f32 %v4851_v59, %v3208_v31  ;;  %v3702_v7 = vmul.f32 %v4852_v46, %v3208_v31  ;;  %v4858_v59 = vunpack.c.h.bf16 %v3193_v6  ;;  %v4860_v46 = vunpack.c.l.bf16 %v3199_v8 }
  0xc4   : > { %4847 = vst [vmem:[#allocation20_spill] sm:$0xff] %v3676_v23  ;;  %v3707_v2 = vmul.f32 %v4854_v0, %v3208_v31  ;;  %v3714_v49 = vmul.f32 %v4856_v30, %v3208_v31  ;;  %v4862_v30 = vunpack.c.h.bf16 %v3199_v8  ;;  %v4864_v6 = vunpack.c.l.bf16 %v3206_v34 }
  0xc5   : > { %4849 = vst [vmem:[#allocation21_spill] sm:$0xff] %v3685_v53  ;;  %v3719_v13 = vmul.f32 %v4858_v59, %v3208_v31  ;;  %v3724_v37 = vmul.f32 %v4860_v46, %v3208_v31  ;;  %v4865_v53 = vunpack.c.h.bf16 %v3206_v34  ;;  %v4866_v42 = vunpack.c.l.bf16 %v3214_v40 }
  0xc6   : > { %4853 = vst [vmem:[#allocation22_spill] sm:$0xff] %v3702_v7  ;;  %v3733_v23 = vmul.f32 %v4862_v30, %v3208_v31  ;;  %v3738_v59 = vmul.f32 %v4864_v6, %v3208_v31  ;;  %v4868_v8 = vunpack.c.h.bf16 %v3214_v40  ;;  %v2776_v6 = vld [vmem:[%s2985_s29 + $0x60] sm:$0xff]   ;;  %v4870_v46 = vunpack.c.l.bf16 %v3217_v48 }
  0xc7   : > { %4855 = vst [vmem:[#allocation23_spill] sm:$0xff] %v3707_v2  ;;  %v3745_v0 = vmul.f32 %v4865_v53, %v3208_v31  ;;  %v3750_v7 = vmul.f32 %v4866_v42, %v3208_v31  ;;  %v4871_v53 = vunpack.c.h.bf16 %v3217_v48  ;;  %v4872_v40 = vunpack.c.l.bf16 %v3248_v19 }
  0xc8   : > { %4857 = vst [vmem:[#allocation24_spill] sm:$0xff] %v3714_v49  ;;  %v3755_v30 = vmul.f32 %v4868_v8, %v3208_v31  ;;  %v3763_v34 = vmul.f32 %v4870_v46, %v3208_v31  ;;  %v2792_v49 = vld [vmem:[%s2985_s29 + $0xe0] sm:$0xff]   ;;  %v4873_v46 = vunpack.c.h.bf16 %v3248_v19  ;;  %v4877_v2 = vpack.c.bf16 %v3322_v55, %v3315_v36  ;;  %v2809_v36 = vld [vmem:[%s2985_s29 + $0x168] sm:$0xff]  }
  0xc9   : > { %4859 = vst [vmem:[#allocation25_spill] sm:$0xff] %v3719_v13  ;;  %v3768_v42 = vmul.f32 %v4871_v53, %v3208_v31  ;;  %v3773_v8 = vmul.f32 %v4872_v40, %v3208_v31  ;;  %v2808_v13 = vld [vmem:[%s2985_s29 + $0x160] sm:$0xff]   ;;  %v4874_v53 = vunpack.c.l.bf16 %v3496_v4  ;;  %v4876_v40 = vpack.c.bf16 %v3310_v28, %v3305_v25 }
  0xca   : > { %4861 = vst [vmem:[#allocation26_spill] sm:$0xff] %v3724_v37  ;;  %v3784_v48 = vmul.f32 %v4873_v46, %v3208_v31  ;;  %2455 = vmatmul.msk.bf16.gmra.mxu1 %vm887_vm2, %v4877_v2  ;;  %v4878_v46 = vunpack.c.h.bf16 %v3496_v4  ;;  %v4880_v25 = vpack.c.bf16 %v3332_v24, %v3327_v18  ;;  %v4881_v28 = vpack.c.bf16 %v3344_v21, %v3339_v20  ;;  %v2793_v21 = vld [vmem:[%s2985_s29 + $0xe8] sm:$0xff]  }
  0xcb   : > { %4863 = vst [vmem:[#allocation27_spill] sm:$0xff] %v3733_v23  ;;  %v3789_v23 = vmul.f32 %v4874_v53, %v3208_v31  ;;  %2439 = vmatmul.msk.bf16.gmra.mxu0 %vm887_vm2, %v4876_v40  ;;  %v2559_v53 = vunpack.c.l.bf16 %v2776_v6  ;;  %v2623_v55 = vunpack.c.l.bf16 %v2792_v49  ;;  %v2624_v4 = vunpack.c.h.bf16 %v2792_v49  ;;  %v2777_v40 = vld [vmem:[%s2985_s29 + $0x68] sm:$0xff]  }
  0xcc   : > { %4867 = vst [vmem:[#allocation28_spill] sm:$0xff] %v3750_v7  ;;  %v3804_v37 = vmul.f32 %v4878_v46, %v3208_v31  ;;  %v2560_v7 = vunpack.c.h.bf16 %v2776_v6  ;;  %2471 = vmatmul.msk.bf16.gmra.mxu2 %vm887_vm2, %v4880_v25  ;;  %2487 = vmatmul.msk.bf16.gmra.mxu3 %vm887_vm2, %v4881_v28  ;;  %v2687_v2 = vunpack.c.l.bf16 %v2808_v13  ;;  %v2688_v20 = vunpack.c.h.bf16 %v2808_v13 }
  0xcd   : > { %4869 = vst [vmem:[#allocation29_spill] sm:$0xff] %v3755_v30  ;;  %v2824_v30 = vld [vmem:[%s2985_s29 + $0x1e0] sm:$0xff]   ;;  %v3821_v18 = vmul.f32 %v2559_v53, %v3208_v31  ;;  %v3828_v46 = vmul.f32 %v2623_v55, %v3208_v31  ;;  %v3831_v49 = vmul.f32 %v2624_v4, %v3208_v31  ;;  %v2563_v13 = vunpack.c.l.bf16 %v2777_v40 }
  0xce   : > { %4875 = vst [vmem:[#allocation30_spill] sm:$0xff] %v3789_v23  ;;  %v3824_v24 = vmul.f32 %v2560_v7, %v3208_v31  ;;  %v3834_v25 = vmul.f32 %v2687_v2, %v3208_v31  ;;  %v2751_v28 = vunpack.c.l.bf16 %v2824_v30  ;;  %v3839_v7 = vmul.f32 %v2688_v20, %v3208_v31  ;;  %v2825_v23 = vld [vmem:[%s2985_s29 + $0x1e8] sm:$0xff]  }
  0xcf   : > { %4879 = vst [vmem:[#allocation31_spill] sm:$0xff] %v3804_v37  ;;  %v2752_v6 = vunpack.c.h.bf16 %v2824_v30  ;;  %v2564_v19 = vunpack.c.h.bf16 %v2777_v40  ;;  %v2627_v2 = vunpack.c.l.bf16 %v2793_v21  ;;  %v3854_v30 = vmul.f32 %v2563_v13, %v3208_v31 }
  0xd0   : > { %4882 = vst [vmem:[#allocation32_spill] sm:$0xff] %v3821_v18  ;;  %v3845_v4 = vmul.f32 %v2751_v28, %v3208_v31  ;;  %v2628_v20 = vunpack.c.h.bf16 %v2793_v21  ;;  %v2778_v18 = vld [vmem:[%s2985_s29 + $0x70] sm:$0xff]   ;;  %v2691_v28 = vunpack.c.l.bf16 %v2809_v36  ;;  %v2755_v13 = vunpack.c.l.bf16 %v2825_v23 }
  0xd1   : > { %4883 = vst [vmem:[#allocation33_spill] sm:$0xff] %v3828_v46  ;;  %v3851_v53 = vmul.f32 %v2752_v6, %v3208_v31  ;;  %v3858_v55 = vmul.f32 %v2564_v19, %v3208_v31  ;;  %v3861_v40 = vmul.f32 %v2627_v2, %v3208_v31  ;;  %v2692_v46 = vunpack.c.h.bf16 %v2809_v36  ;;  %v2794_v21 = vld [vmem:[%s2985_s29 + $0xf0] sm:$0xff]  }
  0xd2   : > { %4884 = vst [vmem:[#allocation34_spill] sm:$0xff] %v3831_v49  ;;  %v3866_v6 = vmul.f32 %v2628_v20, %v3208_v31  ;;  %v2567_v36 = vunpack.c.l.bf16 %v2778_v18  ;;  %v2810_v49 = vld [vmem:[%s2985_s29 + $0x170] sm:$0xff]   ;;  %v3881_v20 = vmul.f32 %v2755_v13, %v3208_v31 }
  0xd3   : > { %4885 = vst [vmem:[#allocation35_spill] sm:$0xff] %v3834_v25  ;;  %v2756_v25 = vunpack.c.h.bf16 %v2825_v23  ;;  %v3875_v2 = vmul.f32 %v2692_v46, %v3208_v31  ;;  %v2826_v19 = vld [vmem:[%s2985_s29 + $0x1f0] sm:$0xff]  }
  0xd4   : > { %4886 = vst [vmem:[#allocation36_spill] sm:$0xff] %v3839_v7  ;;  %v3872_v7 = vmul.f32 %v2691_v28, %v3208_v31  ;;  %v3890_v46 = vmul.f32 %v2567_v36, %v3208_v31  ;;  %v2759_v36 = vunpack.c.l.bf16 %v2826_v19 }
  0xd5   : > { %4887 = vst [vmem:[#allocation37_spill] sm:$0xff] %v3845_v4  ;;  %v3884_v23 = vmul.f32 %v2756_v25, %v3208_v31  ;;  %v2568_v4 = vunpack.c.h.bf16 %v2778_v18  ;;  %v2695_v25 = vunpack.c.l.bf16 %v2810_v49  ;;  %v2696_v18 = vunpack.c.h.bf16 %v2810_v49  ;;  %v2811_v49 = vld [vmem:[%s2985_s29 + $0x178] sm:$0xff]  }
  0xd6   : > { %4888 = vst [vmem:[#allocation38_spill] sm:$0xff] %v3851_v53  ;;  %v2779_v53 = vld [vmem:[%s2985_s29 + $0x78] sm:$0xff]  }
  0xd7   : > { %4889 = vst [vmem:[#allocation39_spill] sm:$0xff] %v3854_v30  ;;  %v2631_v30 = vunpack.c.l.bf16 %v2794_v21  ;;  %v3896_v37 = vmul.f32 %v2568_v4, %v3208_v31  ;;  %v3908_v13 = vmul.f32 %v2695_v25, %v3208_v31  ;;  %v3911_v4 = vmul.f32 %v2696_v18, %v3208_v31 }
  0xd8   : > { %4890 = vst [vmem:[#allocation40_spill] sm:$0xff] %v3858_v55  ;;  %v2632_v55 = vunpack.c.h.bf16 %v2794_v21  ;;  %v4897_v25 = vpack.c.bf16 %v3358_v14, %v3349_v17  ;;  %v4898_v18 = vpack.c.bf16 %v3370_v32, %v3363_v27  ;;  %v4900_v14 = vld [vmem:[#allocation2_spill] sm:$0xff]  ;;  %v4912_v32 = vld [vmem:[#allocation8_spill] sm:$0xff] }
  0xd9   : > { %4891 = vst [vmem:[#allocation41_spill] sm:$0xff] %v3861_v40  ;;  %v3899_v40 = vmul.f32 %v2631_v30, %v3208_v31  ;;  %v833_v30 = vpack.c.bf16 %v3911_v4, %v3908_v13  ;;  %v4901_v17 = vpack.c.bf16 %v3392_v12, %v4900_v14 }
  0xda   : > { %4892 = vst [vmem:[#allocation42_spill] sm:$0xff] %v3866_v6  ;;  %v3902_v28 = vmul.f32 %v2632_v55, %v3208_v31  ;;  %v3917_v55 = vmul.f32 %v2759_v36, %v3208_v31  ;;  %v2827_v6 = vld [vmem:[%s2985_s29 + $0x1f8] sm:$0xff]   ;;  %2456 = vmatmul.msk.bf16.gmra.mxu1 %vm887_vm2, %v4898_v18 }
  0xdb   : > { %4893 = vst [vmem:[#allocation43_spill] sm:$0xff] %v3872_v7  ;;  %v2760_v7 = vunpack.c.h.bf16 %v2826_v19  ;;  %2440 = vmatmul.msk.bf16.gmra.mxu0 %vm887_vm2, %v4897_v25  ;;  %v2700_v25 = vunpack.c.h.bf16 %v2811_v49  ;;  %v2764_v18 = vunpack.c.h.bf16 %v2827_v6 }
  0xdc   : > { %4894 = vst [vmem:[#allocation44_spill] sm:$0xff] %v3875_v2  ;;  %v2795_v2 = vld [vmem:[%s2985_s29 + $0xf8] sm:$0xff]   ;;  %2488 = vmatmul.msk.bf16.gmra.mxu3 %vm887_vm2, %v4901_v17  ;;  %v4902_v17 = vld [vmem:[#allocation4_spill] sm:$0xff] }
  0xdd   : > { %4895 = vst [vmem:[#allocation45_spill] sm:$0xff] %v3881_v20  ;;  %v2571_v20 = vunpack.c.l.bf16 %v2779_v53  ;;  %v3920_v19 = vmul.f32 %v2760_v7, %v3208_v31  ;;  %v2635_v7 = vunpack.c.l.bf16 %v2795_v2  ;;  %v2636_v21 = vunpack.c.h.bf16 %v2795_v2 }
  0xde   : > { %4896 = vst [vmem:[#allocation46_spill] sm:$0xff] %v3884_v23  ;;  %v2572_v23 = vunpack.c.h.bf16 %v2779_v53  ;;  %v4899_v53 = vpack.c.bf16 %v3380_v11, %v3375_v16  ;;  %v2763_v11 = vunpack.c.l.bf16 %v2827_v6  ;;  %v3961_v14 = vmul.f32 %v2700_v25, %v3208_v31  ;;  %v4909_v6 = vld [vmem:[#allocation6_spill] sm:$0xff] }
  0xdf   : > { %v3934_v36 = vmul.f32 %v2571_v20, %v3208_v31  ;;  %v2699_v20 = vunpack.c.l.bf16 %v2811_v49  ;;  %v3950_v2 = vmul.f32 %v2635_v7, %v3208_v31  ;;  %v3953_v16 = vmul.f32 %v2636_v21, %v3208_v31  ;;  %v4911_v7 = vld [vmem:[#allocation9_spill] sm:$0xff] }
  0xe0   : > { %2472 = vmatmul.msk.bf16.gmra.mxu2 %vm887_vm2, %v4899_v53  ;;  %v3947_v27 = vmul.f32 %v2572_v23, %v3208_v31  ;;  %v3966_v49 = vmul.f32 %v2763_v11, %v3208_v31  ;;  %v3969_v21 = vmul.f32 %v2764_v18, %v3208_v31  ;;  %v4905_v25 = vpack.c.bf16 %v3418_v44, %v3411_v39  ;;  %v4906_v11 = vld [vmem:[#allocation5_spill] sm:$0xff]  ;;  %v4908_v18 = vld [vmem:[#allocation7_spill] sm:$0xff]  ;;  %v4915_v39 = vld [vmem:[#allocation10_spill] sm:$0xff] }
  0xe1   : > { %v3958_v53 = vmul.f32 %v2699_v20, %v3208_v31  ;;  %v4903_v20 = vld [vmem:[#allocation3_spill] sm:$0xff]  ;;  %v4907_v31 = vpack.c.bf16 %v3428_v29, %v4906_v11  ;;  %v4910_v23 = vpack.c.bf16 %v4908_v18, %v4909_v6  ;;  %v4914_v44 = vpack.c.bf16 %v3466_v50, %v3459_v22  ;;  %v4929_v6 = vld [vmem:[#allocation14_spill] sm:$0xff]  ;;  %v4934_v11 = vld [vmem:[#allocation17_spill] sm:$0xff] }
  0xe2   : > { %v4904_v12 = vpack.c.bf16 %v4902_v17, %v4903_v20  ;;  %v4913_v17 = vpack.c.bf16 %v4911_v7, %v4912_v32  ;;  %v4916_v29 = vpack.c.bf16 %v3476_v26, %v4915_v39  ;;  %v4918_v32 = vpack.c.bf16 %v3505_v56, %v3493_v35  ;;  %v4923_v56 = vld [vmem:[#allocation11_spill] sm:$0xff] }
  0xe3   : > { %v4919_v50 = vpack.c.bf16 %v3517_v62, %v3510_v63  ;;  %v4920_v22 = vpack.c.bf16 %v3527_v38, %v3522_v15  ;;  %v4922_v35 = vpack.c.bf16 %v3567_v47, %v3559_v5  ;;  %v4924_v26 = vpack.c.bf16 %v3577_v3, %v4923_v56  ;;  %v4927_v62 = vld [vmem:[#allocation12_spill] sm:$0xff] }
  0xe4   : > { %v4925_v15 = vpack.c.bf16 %v3587_v54, %v3582_v1  ;;  %v4930_v7 = vpack.c.bf16 %v3611_v45, %v4929_v6  ;;  %v4931_v1 = vld [vmem:[#allocation16_spill] sm:$0xff]  ;;  %v4932_v54 = vld [vmem:[#allocation15_spill] sm:$0xff]  ;;  %v4936_v18 = vpack.c.bf16 %v3649_v9, %v3642_v41 }
  0xe5   : > { %v4933_v20 = vpack.c.bf16 %v4931_v1, %v4932_v54 }
  0xea   : > { %2457 = vmatmul.msk.bf16.gmra.mxu1 %vm887_vm2, %v4905_v25 }
  0xeb   : > { %2441 = vmatmul.msk.bf16.gmra.mxu0 %vm887_vm2, %v4904_v12  ;;  %v4917_v12 = vpack.c.bf16 %v3488_v33, %v3483_v51  ;;  %v4921_v51 = vpack.c.bf16 %v3544_v10, %v3539_v57  ;;  %v4926_v33 = vld [vmem:[#allocation13_spill] sm:$0xff] }
  0xec   : > { %2489 = vmatmul.msk.bf16.gmra.mxu3 %vm887_vm2, %v4910_v23  ;;  %v4928_v63 = vpack.c.bf16 %v4926_v33, %v4927_v62 }
  0xf0   : > { %2473 = vmatmul.msk.bf16.gmra.mxu2 %vm887_vm2, %v4907_v31  ;;  %v4935_v31 = vpack.c.bf16 %v3637_v61, %v4934_v11  ;;  %v4060_v61 = vld [vmem:[%s4712_s5] ss:$0 sm:$0xff] }
  0xfa   : > { %2458 = vmatmul.msk.bf16.gmra.mxu1 %vm887_vm2, %v4914_v44 }
  0xfb   : > { %2442 = vmatmul.msk.bf16.gmra.mxu0 %vm887_vm2, %v4913_v17 }
  0xfc   : > { %2490 = vmatmul.msk.bf16.gmra.mxu3 %vm887_vm2, %v4917_v12 }
 0x100   : > { %2474 = vmatmul.msk.bf16.gmra.mxu2 %vm887_vm2, %v4916_v29 }
 0x10a   : > { %2459 = vmatmul.msk.bf16.gmra.mxu1 %vm887_vm2, %v4919_v50 }
 0x10b   : > { %2443 = vmatmul.msk.bf16.gmra.mxu0 %vm887_vm2, %v4918_v32 }
 0x10c   : > { %2491 = vmatmul.msk.bf16.gmra.mxu3 %vm887_vm2, %v4921_v51 }
 0x110   : > { %2475 = vmatmul.msk.bf16.gmra.mxu2 %vm887_vm2, %v4920_v22 }
 0x112   : > { %v384_v38 = vpop.f32.mrf.mxu1 }
 0x113   : > { %v385_v57 = vadd.f32 1e-08, %v384_v38 }
 0x115   : > { %2868 = vrsqrt.f32 %v385_v57  ;;  %vm393_vm4 = vweird.f32 %v385_v57 }
 0x11a   : > { %2460 = vmatmul.msk.bf16.gmra.mxu1 %vm887_vm2, %v4924_v26 }
 0x11b   : > { %2444 = vmatmul.msk.bf16.gmra.mxu0 %vm887_vm2, %v4922_v35  ;;  %v2869_v10 = vpop.eup %2868 }
 0x11c   : > { %2492 = vmatmul.msk.bf16.gmra.mxu3 %vm887_vm2, %v4928_v63  ;;  %v388_v5 = vmul.f32 %v2869_v10, %v385_v57  ;;  %v1093_v47 = vpop.f32.mrf.mxu0  ;;  %v1173_v23 = vpop.f32.mrf.mxu1  ;;  %vm394_vm3 = vweird.f32 %v2869_v10 }
 0x11d   : > { %vm395_vm5 = vmor %vm393_vm4, %vm394_vm3 }
 0x11e   : > { %v389_v3 = vmul.f32 %v2869_v10, %v388_v5 }
 0x120   : > { %2476 = vmatmul.msk.bf16.gmra.mxu2 %vm887_vm2, %v4925_v15  ;;  %v390_v25 = vmul.f32 0.5, %v389_v3 }
 0x122   : > { %v391_v17 = vsub.f32 1.5, %v390_v25 }
 0x123   : > { %v1253_v45 = vpop.f32.mrf.mxu2  ;;  %v1333_v44 = vpop.f32.mrf.mxu3 }
 0x124   : > { %v392_v39 = vmul.f32 %v2869_v10, %v391_v17  ;;  %v1095_v29 = vpop.f32.mrf.mxu0  ;;  %v1175_v12 = vpop.f32.mrf.mxu1  ;;  %v4939_v17 = vld [vmem:[#allocation19_spill] sm:$0xff] }
 0x126   : > { %v396_v32 = vsel %vm395_vm5, %v2869_v10, %v392_v39 }
 0x127   : > { %v4055_v50 = vperm.slane %v396_v32, 0  ;;  %v4941_v32 = vld [vmem:[#allocation21_spill] sm:$0xff] }
 0x129   : > { %v1414_v41 = vmul.f32 %v4055_v50, %v1093_v47  ;;  %v1446_v9 = vmul.f32 %v4055_v50, %v1173_v23  ;;  %v1478_v22 = vmul.f32 %v4055_v50, %v1253_v45  ;;  %v1510_v51 = vmul.f32 %v4055_v50, %v1333_v44 }
 0x12a   : > { %2461 = vmatmul.msk.bf16.gmra.mxu1 %vm887_vm2, %v4933_v20  ;;  %v1415_v35 = vmul.f32 %v4055_v50, %v1095_v29  ;;  %v1447_v56 = vmul.f32 %v4055_v50, %v1175_v12  ;;  %v4940_v45 = vpack.c.bf16 %v3671_v58, %v4939_v17 }
 0x12b   : > { %2445 = vmatmul.msk.bf16.gmra.mxu0 %vm887_vm2, %v4930_v7  ;;  %v1546_v26 = vadd.f32 %v4060_v61, %v1414_v41  ;;  %v1578_v15 = vadd.f32 %v4060_v61, %v1446_v9  ;;  %v1610_v33 = vadd.f32 %v4060_v61, %v1478_v22  ;;  %v1642_v62 = vadd.f32 %v4060_v61, %v1510_v51  ;;  %v1255_v63 = vpop.f32.mrf.mxu2  ;;  %v1335_v38 = vpop.f32.mrf.mxu3  ;;  %v4942_v41 = vld [vmem:[#allocation20_spill] sm:$0xff] }
 0x12c   : > { %2493 = vmatmul.msk.bf16.gmra.mxu3 %vm887_vm2, %v4936_v18  ;;  %v1547_v57 = vadd.f32 %v4060_v61, %v1415_v35  ;;  %v1579_v10 = vadd.f32 %v4060_v61, %v1447_v56  ;;  %v1479_v5 = vmul.f32 %v4055_v50, %v1255_v63  ;;  %v1511_v47 = vmul.f32 %v4055_v50, %v1335_v38  ;;  %v1178_v3 = vpop.f32.mrf.mxu1 }
 0x12d   : > { %vm1674_vm6 = vcmp.ge.f32.partialorder %v1546_v26, 0.0  ;;  %v1802_v6 = vmul.f32 0.2, %v1546_v26  ;;  %vm1706_vm7 = vcmp.ge.f32.partialorder %v1578_v15, 0.0  ;;  %v1834_v7 = vmul.f32 0.2, %v1578_v15 }
 0x12e   : > { %vm1738_vm8 = vcmp.ge.f32.partialorder %v1610_v33, 0.0  ;;  %v1866_v1 = vmul.f32 0.2, %v1610_v33  ;;  %vm1770_vm9 = vcmp.ge.f32.partialorder %v1642_v62, 0.0  ;;  %v1898_v54 = vmul.f32 0.2, %v1642_v62 }
 0x12f   : > { %v1930_v20 = vsel %vm1674_vm6, %v1546_v26, %v1802_v6  ;;  %v1962_v25 = vsel %vm1706_vm7, %v1578_v15, %v1834_v7  ;;  %vm1675_vm10 = vcmp.ge.f32.partialorder %v1547_v57, 0.0  ;;  %v1803_v11 = vmul.f32 0.2, %v1547_v57 }
 0x130   : > { %2477 = vmatmul.msk.bf16.gmra.mxu2 %vm887_vm2, %v4935_v31  ;;  %v4937_v31 = vld [vmem:[#allocation18_spill] sm:$0xff]  ;;  %v2058_v44 = vmul.f32 1.4142135, %v1930_v20  ;;  %v2090_v39 = vmul.f32 1.4142135, %v1962_v25  ;;  %v1994_v29 = vsel %vm1738_vm8, %v1610_v33, %v1866_v1  ;;  %v2026_v12 = vsel %vm1770_vm9, %v1642_v62, %v1898_v54 }
 0x131   : > { %v4938_v18 = vpack.c.bf16 %v3659_v60, %v4937_v31  ;;  %v4943_v9 = vpack.c.bf16 %v4941_v32, %v4942_v41  ;;  %v4944_v60 = vpack.c.bf16 %v3697_v52, %v3690_v43  ;;  %v2122_v22 = vmul.f32 1.4142135, %v1994_v29 }
 0x132   : > { %v1098_v23 = vpop.f32.mrf.mxu0  ;;  %v2154_v58 = vmul.f32 1.4142135, %v2026_v12  ;;  %v1931_v51 = vsel %vm1675_vm10, %v1547_v57, %v1803_v11  ;;  %vm1707_vm11 = vcmp.ge.f32.partialorder %v1579_v10, 0.0  ;;  %2186 = vst.msk [vmem:[%s4080_s13] sm:$0xff] %vm335_vm1, %v2058_v44  ;;  %v1835_v56 = vmul.f32 0.2, %v1579_v10 }
 0x133   : > { %v2059_v35 = vmul.f32 1.4142135, %v1931_v51  ;;  %v1611_v26 = vadd.f32 %v4060_v61, %v1479_v5  ;;  %v1643_v15 = vadd.f32 %v4060_v61, %v1511_v47  ;;  %2218 = vst.msk [vmem:[%s4080_s13 + $0x100] sm:$0xff] %vm335_vm1, %v2090_v39  ;;  %v1416_v52 = vmul.f32 %v4055_v50, %v1098_v23  ;;  %v1338_v62 = vpop.f32.mrf.mxu3 }
 0x134   : > { %v1448_v43 = vmul.f32 %v4055_v50, %v1178_v3  ;;  %2250 = vst.msk [vmem:[%s4080_s13 + $0x200] sm:$0xff] %vm335_vm1, %v2122_v22  ;;  %v1963_v63 = vsel %vm1707_vm11, %v1579_v10, %v1835_v56  ;;  %v1180_v5 = vpop.f32.mrf.mxu1  ;;  %v1512_v1 = vmul.f32 %v4055_v50, %v1338_v62 }
 0x135   : > { %vm1739_vm12 = vcmp.ge.f32.partialorder %v1611_v26, 0.0  ;;  %v1867_v38 = vmul.f32 0.2, %v1611_v26  ;;  %vm1771_vm13 = vcmp.ge.f32.partialorder %v1643_v15, 0.0  ;;  %2282 = vst.msk [vmem:[%s4080_s13 + $0x300] sm:$0xff] %vm335_vm1, %v2154_v58  ;;  %v1548_v23 = vadd.f32 %v4060_v61, %v1416_v52 }
 0x136   : > { %v2091_v47 = vmul.f32 1.4142135, %v1963_v63  ;;  %v1899_v6 = vmul.f32 0.2, %v1643_v15  ;;  %v1580_v3 = vadd.f32 %v4060_v61, %v1448_v43  ;;  %2187 = vst.msk [vmem:[%s4080_s13 + $0x8] sm:$0xff] %vm335_vm1, %v2059_v35  ;;  %v1644_v44 = vadd.f32 %v4060_v61, %v1512_v1 }
 0x137   : > { %v1995_v7 = vsel %vm1739_vm12, %v1611_v26, %v1867_v38  ;;  %vm1676_vm14 = vcmp.ge.f32.partialorder %v1548_v23, 0.0  ;;  %v1804_v11 = vmul.f32 0.2, %v1548_v23  ;;  %v1449_v29 = vmul.f32 %v4055_v50, %v1180_v5 }
 0x138   : > { %2219 = vst.msk [vmem:[%s4080_s13 + $0x108] sm:$0xff] %vm335_vm1, %v2091_v47  ;;  %v2123_v20 = vmul.f32 1.4142135, %v1995_v7  ;;  %v2027_v25 = vsel %vm1771_vm13, %v1643_v15, %v1899_v6  ;;  %vm1708_vm15 = vcmp.ge.f32.partialorder %v1580_v3, 0.0  ;;  %vm1772_vm3 = vcmp.ge.f32.partialorder %v1644_v44, 0.0  ;;  %v4945_v7 = vld [vmem:[#allocation23_spill] sm:$0xff] }
 0x139   : > { %v1258_v33 = vpop.f32.mrf.mxu2  ;;  %v2155_v31 = vmul.f32 1.4142135, %v2027_v25  ;;  %v1581_v56 = vadd.f32 %v4060_v61, %v1449_v29  ;;  %v4948_v25 = vld [vmem:[#allocation25_spill] sm:$0xff]  ;;  %v4954_v29 = vpack.c.bf16 %v3745_v0, %v3738_v59 }
 0x13a   : > { %2462 = vmatmul.msk.bf16.gmra.mxu1 %vm887_vm2, %v4940_v45  ;;  %v1100_v57 = vpop.f32.mrf.mxu0  ;;  %v1480_v10 = vmul.f32 %v4055_v50, %v1258_v33  ;;  %2251 = vst.msk [vmem:[%s4080_s13 + $0x208] sm:$0xff] %vm335_vm1, %v2123_v20  ;;  %v1932_v45 = vsel %vm1676_vm14, %v1548_v23, %v1804_v11  ;;  %v4949_v11 = vld [vmem:[#allocation24_spill] sm:$0xff] }
 0x13b   : > { %2446 = vmatmul.msk.bf16.gmra.mxu0 %vm887_vm2, %v4938_v18  ;;  %v1417_v54 = vmul.f32 %v4055_v50, %v1100_v57  ;;  %v1836_v18 = vmul.f32 0.2, %v1580_v3  ;;  %2283 = vst.msk [vmem:[%s4080_s13 + $0x308] sm:$0xff] %vm335_vm1, %v2155_v31  ;;  %v2060_v12 = vmul.f32 1.4142135, %v1932_v45  ;;  %v1340_v58 = vpop.f32.mrf.mxu3  ;;  %vm1709_vm5 = vcmp.ge.f32.partialorder %v1581_v56, 0.0 }
 0x13c   : > { %2494 = vmatmul.msk.bf16.gmra.mxu3 %vm887_vm2, %v4944_v60  ;;  %v1612_v17 = vadd.f32 %v4060_v61, %v1480_v10  ;;  %v1900_v60 = vmul.f32 0.2, %v1644_v44  ;;  %v1513_v62 = vmul.f32 %v4055_v50, %v1340_v58  ;;  %v1837_v5 = vmul.f32 0.2, %v1581_v56  ;;  %v4946_v10 = vld [vmem:[#allocation22_spill] sm:$0xff] }
 0x13d   : > { %v1549_v39 = vadd.f32 %v4060_v61, %v1417_v54  ;;  %v1964_v32 = vsel %vm1708_vm15, %v1580_v3, %v1836_v18  ;;  %2188 = vst.msk [vmem:[%s4080_s13 + $0x10] sm:$0xff] %vm335_vm1, %v2060_v12  ;;  %v4947_v1 = vpack.c.bf16 %v4945_v7, %v4946_v10  ;;  %v4950_v31 = vpack.c.bf16 %v4948_v25, %v4949_v11  ;;  %v4951_v18 = vld [vmem:[#allocation27_spill] sm:$0xff] }
 0x13e   : > { %vm1740_vm0 = vcmp.ge.f32.partialorder %v1612_v17, 0.0  ;;  %v1868_v41 = vmul.f32 0.2, %v1612_v17  ;;  %v2028_v33 = vsel %vm1772_vm3, %v1644_v44, %v1900_v60  ;;  %v1645_v23 = vadd.f32 %v4060_v61, %v1513_v62 }
 0x13f   : > { %vm1677_vm4 = vcmp.ge.f32.partialorder %v1549_v39, 0.0  ;;  %v1805_v35 = vmul.f32 0.2, %v1549_v39  ;;  %v2156_v38 = vmul.f32 1.4142135, %v2028_v33  ;;  %v1965_v54 = vsel %vm1709_vm5, %v1581_v56, %v1837_v5 }
 0x140   : > { %2478 = vmatmul.msk.bf16.gmra.mxu2 %vm887_vm2, %v4943_v9  ;;  %v2092_v9 = vmul.f32 1.4142135, %v1964_v32  ;;  %v1996_v51 = vsel %vm1740_vm0, %v1612_v17, %v1868_v41  ;;  %v4952_v17 = vld [vmem:[#allocation26_spill] sm:$0xff]  ;;  %v2093_v44 = vmul.f32 1.4142135, %v1965_v54  ;;  %vm1773_vm7 = vcmp.ge.f32.partialorder %v1645_v23, 0.0 }
 0x141   : > { %v1260_v22 = vpop.f32.mrf.mxu2  ;;  %v2124_v43 = vmul.f32 1.4142135, %v1996_v51  ;;  %v1933_v57 = vsel %vm1677_vm4, %v1549_v39, %v1805_v35  ;;  %2284 = vst.msk [vmem:[%s4080_s13 + $0x310] sm:$0xff] %vm335_vm1, %v2156_v38  ;;  %v4953_v45 = vpack.c.bf16 %v4951_v18, %v4952_v17  ;;  %v1901_v12 = vmul.f32 0.2, %v1645_v23 }
 0x142   : > { %v1481_v26 = vmul.f32 %v4055_v50, %v1260_v22  ;;  %2220 = vst.msk [vmem:[%s4080_s13 + $0x110] sm:$0xff] %vm335_vm1, %v2092_v9  ;;  %v2061_v47 = vmul.f32 1.4142135, %v1933_v57 }
 0x143   : > { %2252 = vst.msk [vmem:[%s4080_s13 + $0x210] sm:$0xff] %vm335_vm1, %v2124_v43  ;;  %v2029_v51 = vsel %vm1773_vm7, %v1645_v23, %v1901_v12 }
 0x144   : > { %v1613_v6 = vadd.f32 %v4060_v61, %v1481_v26  ;;  %2189 = vst.msk [vmem:[%s4080_s13 + $0x18] sm:$0xff] %vm335_vm1, %v2061_v47  ;;  %v2157_v26 = vmul.f32 1.4142135, %v2029_v51 }
 0x145   : > { %2221 = vst.msk [vmem:[%s4080_s13 + $0x118] sm:$0xff] %vm335_vm1, %v2093_v44 }
 0x146   : > { %vm1741_vm6 = vcmp.ge.f32.partialorder %v1613_v6, 0.0  ;;  %v1869_v39 = vmul.f32 0.2, %v1613_v6  ;;  %2285 = vst.msk [vmem:[%s4080_s13 + $0x318] sm:$0xff] %vm335_vm1, %v2157_v26  ;;  %v4958_v26 = vpack.c.bf16 %v3768_v42, %v3763_v34 }
 0x147   : > { %v1183_v52 = vpop.f32.mrf.mxu1 }
 0x148   : > { %v1103_v15 = vpop.f32.mrf.mxu0  ;;  %v1450_v20 = vmul.f32 %v4055_v50, %v1183_v52  ;;  %v1997_v41 = vsel %vm1741_vm6, %v1613_v6, %v1869_v39 }
 0x149   : > { %v1418_v63 = vmul.f32 %v4055_v50, %v1103_v15  ;;  %v2125_v58 = vmul.f32 1.4142135, %v1997_v41 }
 0x14a   : > { %2463 = vmatmul.msk.bf16.gmra.mxu1 %vm887_vm2, %v4950_v31  ;;  %v1582_v9 = vadd.f32 %v4060_v61, %v1450_v20 }
 0x14b   : > { %v1550_v3 = vadd.f32 %v4060_v61, %v1418_v63  ;;  %2447 = vmatmul.msk.bf16.gmra.mxu0 %vm887_vm2, %v4947_v1  ;;  %2253 = vst.msk [vmem:[%s4080_s13 + $0x218] sm:$0xff] %vm335_vm1, %v2125_v58 }
 0x14c   : > { %2495 = vmatmul.msk.bf16.gmra.mxu3 %vm887_vm2, %v4954_v29  ;;  %vm1710_vm9 = vcmp.ge.f32.partialorder %v1582_v9, 0.0  ;;  %v1838_v43 = vmul.f32 0.2, %v1582_v9 }
 0x14d   : > { %vm1678_vm8 = vcmp.ge.f32.partialorder %v1550_v3, 0.0  ;;  %v1806_v32 = vmul.f32 0.2, %v1550_v3 }
 0x14e   : > { %v1966_v57 = vsel %vm1710_vm9, %v1582_v9, %v1838_v43 }
 0x14f   : > { %v1263_v60 = vpop.f32.mrf.mxu2  ;;  %v1343_v22 = vpop.f32.mrf.mxu3  ;;  %v1934_v35 = vsel %vm1678_vm8, %v1550_v3, %v1806_v32  ;;  %v2094_v6 = vmul.f32 1.4142135, %v1966_v57 }
 0x150   : > { %2479 = vmatmul.msk.bf16.gmra.mxu2 %vm887_vm2, %v4953_v45  ;;  %v1482_v0 = vmul.f32 %v4055_v50, %v1263_v60  ;;  %v1105_v59 = vpop.f32.mrf.mxu0  ;;  %v1185_v56 = vpop.f32.mrf.mxu1  ;;  %v2062_v15 = vmul.f32 1.4142135, %v1934_v35  ;;  %v1514_v52 = vmul.f32 %v4055_v50, %v1343_v22  ;;  %v4955_v35 = vld [vmem:[#allocation29_spill] sm:$0xff] }
 0x151   : > { %v1419_v62 = vmul.f32 %v4055_v50, %v1105_v59  ;;  %v1451_v63 = vmul.f32 %v4055_v50, %v1185_v56  ;;  %2222 = vst.msk [vmem:[%s4080_s13 + $0x120] sm:$0xff] %vm335_vm1, %v2094_v6 }
 0x152   : > { %v1614_v33 = vadd.f32 %v4060_v61, %v1482_v0  ;;  %v1646_v38 = vadd.f32 %v4060_v61, %v1514_v52  ;;  %2190 = vst.msk [vmem:[%s4080_s13 + $0x20] sm:$0xff] %vm335_vm1, %v2062_v15  ;;  %v4956_v0 = vld [vmem:[#allocation28_spill] sm:$0xff]  ;;  %v4959_v15 = vpack.c.bf16 %v3784_v48, %v3773_v8 }
 0x153   : > { %v1551_v47 = vadd.f32 %v4060_v61, %v1419_v62  ;;  %v1583_v3 = vadd.f32 %v4060_v61, %v1451_v63  ;;  %v4957_v59 = vpack.c.bf16 %v4955_v35, %v4956_v0  ;;  %v4961_v62 = vld [vmem:[#allocation30_spill] sm:$0xff] }
 0x154   : > { %vm1742_vm10 = vcmp.ge.f32.partialorder %v1614_v33, 0.0  ;;  %v1870_v5 = vmul.f32 0.2, %v1614_v33  ;;  %vm1774_vm11 = vcmp.ge.f32.partialorder %v1646_v38, 0.0  ;;  %v1902_v23 = vmul.f32 0.2, %v1646_v38 }
 0x155   : > { %vm1679_vm12 = vcmp.ge.f32.partialorder %v1551_v47, 0.0  ;;  %v1807_v10 = vmul.f32 0.2, %v1551_v47  ;;  %vm1711_vm13 = vcmp.ge.f32.partialorder %v1583_v3, 0.0  ;;  %v1839_v20 = vmul.f32 0.2, %v1583_v3 }
 0x156   : > { %v1998_v7 = vsel %vm1742_vm10, %v1614_v33, %v1870_v5  ;;  %v2030_v54 = vsel %vm1774_vm11, %v1646_v38, %v1902_v23  ;;  %v4960_v33 = vld [vmem:[#allocation31_spill] sm:$0xff] }
 0x157   : > { %v2126_v1 = vmul.f32 1.4142135, %v1998_v7  ;;  %v1265_v25 = vpop.f32.mrf.mxu2  ;;  %v1345_v11 = vpop.f32.mrf.mxu3  ;;  %v2158_v31 = vmul.f32 1.4142135, %v2030_v54  ;;  %v1935_v18 = vsel %vm1679_vm12, %v1551_v47, %v1807_v10  ;;  %v1967_v12 = vsel %vm1711_vm13, %v1583_v3, %v1839_v20 }
 0x158   : > { %v1483_v17 = vmul.f32 %v4055_v50, %v1265_v25  ;;  %v1515_v45 = vmul.f32 %v4055_v50, %v1345_v11  ;;  %v1108_v44 = vpop.f32.mrf.mxu0  ;;  %v1188_v39 = vpop.f32.mrf.mxu1  ;;  %v2063_v29 = vmul.f32 1.4142135, %v1935_v18  ;;  %v2095_v9 = vmul.f32 1.4142135, %v1967_v12 }
 0x159   : > { %2254 = vst.msk [vmem:[%s4080_s13 + $0x220] sm:$0xff] %vm335_vm1, %v2126_v1  ;;  %v1420_v32 = vmul.f32 %v4055_v50, %v1108_v44  ;;  %v1452_v41 = vmul.f32 %v4055_v50, %v1188_v39  ;;  %v4962_v63 = vpack.c.bf16 %v4960_v33, %v4961_v62 }
 0x15a   : > { %2286 = vst.msk [vmem:[%s4080_s13 + $0x320] sm:$0xff] %vm335_vm1, %v2158_v31  ;;  %v1615_v60 = vadd.f32 %v4060_v61, %v1483_v17  ;;  %v1647_v22 = vadd.f32 %v4060_v61, %v1515_v45  ;;  %2464 = vmatmul.msk.bf16.gmra.mxu1 %vm887_vm2, %v4958_v26 }
 0x15b   : > { %2191 = vst.msk [vmem:[%s4080_s13 + $0x28] sm:$0xff] %vm335_vm1, %v2063_v29  ;;  %v1552_v58 = vadd.f32 %v4060_v61, %v1420_v32  ;;  %v1584_v51 = vadd.f32 %v4060_v61, %v1452_v41  ;;  %2448 = vmatmul.msk.bf16.gmra.mxu0 %vm887_vm2, %v4957_v59 }
 0x15c   : > { %2223 = vst.msk [vmem:[%s4080_s13 + $0x128] sm:$0xff] %vm335_vm1, %v2095_v9  ;;  %vm1743_vm14 = vcmp.ge.f32.partialorder %v1615_v60, 0.0  ;;  %v1871_v56 = vmul.f32 0.2, %v1615_v60  ;;  %vm1775_vm15 = vcmp.ge.f32.partialorder %v1647_v22, 0.0  ;;  %2496 = vmatmul.msk.bf16.gmra.mxu3 %vm887_vm2, %v4962_v63 }
 0x15d   : > { %v1903_v52 = vmul.f32 0.2, %v1647_v22  ;;  %vm1680_vm0 = vcmp.ge.f32.partialorder %v1552_v58, 0.0  ;;  %v1808_v43 = vmul.f32 0.2, %v1552_v58  ;;  %vm1712_vm3 = vcmp.ge.f32.partialorder %v1584_v51, 0.0 }
 0x15e   : > { %v1999_v38 = vsel %vm1743_vm14, %v1615_v60, %v1871_v56  ;;  %v1840_v57 = vmul.f32 0.2, %v1584_v51 }
 0x15f   : > { %v2127_v34 = vmul.f32 1.4142135, %v1999_v38  ;;  %v2031_v42 = vsel %vm1775_vm15, %v1647_v22, %v1903_v52  ;;  %v1936_v5 = vsel %vm1680_vm0, %v1552_v58, %v1808_v43  ;;  %v1348_v48 = vpop.f32.mrf.mxu3 }
 0x160   : > { %2480 = vmatmul.msk.bf16.gmra.mxu2 %vm887_vm2, %v4959_v15  ;;  %v2159_v47 = vmul.f32 1.4142135, %v2031_v42  ;;  %v2064_v6 = vmul.f32 1.4142135, %v1936_v5  ;;  %v1968_v23 = vsel %vm1712_vm3, %v1584_v51, %v1840_v57  ;;  %v1110_v7 = vpop.f32.mrf.mxu0  ;;  %v1190_v10 = vpop.f32.mrf.mxu1  ;;  %v1516_v54 = vmul.f32 %v4055_v50, %v1348_v48  ;;  %v4963_v57 = vld [vmem:[#allocation32_spill] sm:$0xff]  ;;  %v4965_v5 = vld [vmem:[#allocation34_spill] sm:$0xff] }
 0x161   : > { %2255 = vst.msk [vmem:[%s4080_s13 + $0x228] sm:$0xff] %vm335_vm1, %v2127_v34  ;;  %v2096_v1 = vmul.f32 1.4142135, %v1968_v23  ;;  %v1421_v20 = vmul.f32 %v4055_v50, %v1110_v7  ;;  %v1453_v25 = vmul.f32 %v4055_v50, %v1190_v10  ;;  %v4964_v34 = vpack.c.bf16 %v3824_v24, %v4963_v57  ;;  %v4971_v7 = vld [vmem:[#allocation38_spill] sm:$0xff]  ;;  %v4972_v10 = vld [vmem:[#allocation37_spill] sm:$0xff] }
 0x162   : > { %2287 = vst.msk [vmem:[%s4080_s13 + $0x328] sm:$0xff] %vm335_vm1, %v2159_v47  ;;  %v1648_v31 = vadd.f32 %v4060_v61, %v1516_v54  ;;  %v4968_v47 = vld [vmem:[#allocation36_spill] sm:$0xff] }
 0x163   : > { %v1268_v8 = vpop.f32.mrf.mxu2  ;;  %2192 = vst.msk [vmem:[%s4080_s13 + $0x30] sm:$0xff] %vm335_vm1, %v2064_v6  ;;  %v1553_v18 = vadd.f32 %v4060_v61, %v1421_v20  ;;  %v1585_v17 = vadd.f32 %v4060_v61, %v1453_v25  ;;  %v4969_v6 = vld [vmem:[#allocation35_spill] sm:$0xff] }
 0x164   : > { %v1484_v3 = vmul.f32 %v4055_v50, %v1268_v8  ;;  %2224 = vst.msk [vmem:[%s4080_s13 + $0x130] sm:$0xff] %vm335_vm1, %v2096_v1  ;;  %vm1776_vm5 = vcmp.ge.f32.partialorder %v1648_v31, 0.0  ;;  %v1904_v44 = vmul.f32 0.2, %v1648_v31  ;;  %v4966_v8 = vld [vmem:[#allocation33_spill] sm:$0xff]  ;;  %v4970_v23 = vpack.c.bf16 %v4968_v47, %v4969_v6 }
 0x165   : > { %vm1681_vm6 = vcmp.ge.f32.partialorder %v1553_v18, 0.0  ;;  %v1809_v39 = vmul.f32 0.2, %v1553_v18  ;;  %vm1713_vm7 = vcmp.ge.f32.partialorder %v1585_v17, 0.0  ;;  %v1841_v12 = vmul.f32 0.2, %v1585_v17 }
 0x166   : > { %v1616_v11 = vadd.f32 %v4060_v61, %v1484_v3  ;;  %v2032_v41 = vsel %vm1776_vm5, %v1648_v31, %v1904_v44  ;;  %v4967_v48 = vpack.c.bf16 %v4965_v5, %v4966_v8  ;;  %v4973_v1 = vpack.c.bf16 %v4971_v7, %v4972_v10 }
 0x167   : > { %v1937_v9 = vsel %vm1681_vm6, %v1553_v18, %v1809_v39  ;;  %v1350_v22 = vpop.f32.mrf.mxu3  ;;  %v2160_v58 = vmul.f32 1.4142135, %v2032_v41  ;;  %v1969_v35 = vsel %vm1713_vm7, %v1585_v17, %v1841_v12 }
 0x168   : > { %vm1744_vm4 = vcmp.ge.f32.partialorder %v1616_v11, 0.0  ;;  %v1872_v45 = vmul.f32 0.2, %v1616_v11  ;;  %v2065_v51 = vmul.f32 1.4142135, %v1937_v9  ;;  %v1113_v59 = vpop.f32.mrf.mxu0  ;;  %v1193_v56 = vpop.f32.mrf.mxu1  ;;  %v1517_v15 = vmul.f32 %v4055_v50, %v1350_v22 }
 0x169   : > { %v2097_v26 = vmul.f32 1.4142135, %v1969_v35  ;;  %v1422_v52 = vmul.f32 %v4055_v50, %v1113_v59  ;;  %v1454_v43 = vmul.f32 %v4055_v50, %v1193_v56  ;;  %2288 = vst.msk [vmem:[%s4080_s13 + $0x330] sm:$0xff] %vm335_vm1, %v2160_v58 }
 0x16a   : > { %v2000_v29 = vsel %vm1744_vm4, %v1616_v11, %v1872_v45  ;;  %2193 = vst.msk [vmem:[%s4080_s13 + $0x38] sm:$0xff] %vm335_vm1, %v2065_v51  ;;  %v1649_v62 = vadd.f32 %v4060_v61, %v1517_v15  ;;  %2465 = vmatmul.msk.bf16.gmra.mxu1 %vm887_vm2, %v4967_v48 }
 0x16b   : > { %v2128_v32 = vmul.f32 1.4142135, %v2000_v29  ;;  %v1270_v60 = vpop.f32.mrf.mxu2  ;;  %v1554_v63 = vadd.f32 %v4060_v61, %v1422_v52  ;;  %v1586_v38 = vadd.f32 %v4060_v61, %v1454_v43  ;;  %2449 = vmatmul.msk.bf16.gmra.mxu0 %vm887_vm2, %v4964_v34  ;;  %2225 = vst.msk [vmem:[%s4080_s13 + $0x138] sm:$0xff] %vm335_vm1, %v2097_v26 }
 0x16c   : > { %v1485_v0 = vmul.f32 %v4055_v50, %v1270_v60  ;;  %vm1777_vm9 = vcmp.ge.f32.partialorder %v1649_v62, 0.0  ;;  %v1905_v3 = vmul.f32 0.2, %v1649_v62  ;;  %2497 = vmatmul.msk.bf16.gmra.mxu3 %vm887_vm2, %v4973_v1 }
 0x16d   : > { %2256 = vst.msk [vmem:[%s4080_s13 + $0x230] sm:$0xff] %vm335_vm1, %v2128_v32  ;;  %vm1682_vm10 = vcmp.ge.f32.partialorder %v1554_v63, 0.0  ;;  %v1810_v24 = vmul.f32 0.2, %v1554_v63  ;;  %vm1714_vm11 = vcmp.ge.f32.partialorder %v1586_v38, 0.0 }
 0x16e   : > { %v1617_v33 = vadd.f32 %v4060_v61, %v1485_v0  ;;  %v1842_v20 = vmul.f32 0.2, %v1586_v38  ;;  %v2033_v11 = vsel %vm1777_vm9, %v1649_v62, %v1905_v3 }
 0x16f   : > { %v1938_v31 = vsel %vm1682_vm10, %v1554_v63, %v1810_v24  ;;  %v1353_v17 = vpop.f32.mrf.mxu3  ;;  %v2161_v45 = vmul.f32 1.4142135, %v2033_v11 }
 0x170   : > { %vm1745_vm8 = vcmp.ge.f32.partialorder %v1617_v33, 0.0  ;;  %v1873_v42 = vmul.f32 0.2, %v1617_v33  ;;  %2481 = vmatmul.msk.bf16.gmra.mxu2 %vm887_vm2, %v4970_v23  ;;  %v2066_v44 = vmul.f32 1.4142135, %v1938_v31  ;;  %v1970_v39 = vsel %vm1714_vm11, %v1586_v38, %v1842_v20  ;;  %v1115_v12 = vpop.f32.mrf.mxu0  ;;  %v1195_v32 = vpop.f32.mrf.mxu1  ;;  %v4975_v20 = vld [vmem:[#allocation39_spill] sm:$0xff] }
 0x171   : > { %v2098_v41 = vmul.f32 1.4142135, %v1970_v39  ;;  %v1518_v9 = vmul.f32 %v4055_v50, %v1353_v17  ;;  %v1423_v60 = vmul.f32 %v4055_v50, %v1115_v12  ;;  %v1455_v22 = vmul.f32 %v4055_v50, %v1195_v32  ;;  %2289 = vst.msk [vmem:[%s4080_s13 + $0x338] sm:$0xff] %vm335_vm1, %v2161_v45  ;;  %v4977_v31 = vld [vmem:[#allocation42_spill] sm:$0xff]  ;;  %v4980_v45 = vld [vmem:[#allocation44_spill] sm:$0xff] }
 0x172   : > { %v2001_v54 = vsel %vm1745_vm8, %v1617_v33, %v1873_v42  ;;  %2194 = vst.msk [vmem:[%s4080_s13 + $0x40] sm:$0xff] %vm335_vm1, %v2066_v44  ;;  %v4981_v44 = vld [vmem:[#allocation43_spill] sm:$0xff]  ;;  %v4983_v32 = vld [vmem:[#allocation46_spill] sm:$0xff] }
 0x173   : > { %v2129_v25 = vmul.f32 1.4142135, %v2001_v54  ;;  %v1273_v18 = vpop.f32.mrf.mxu2  ;;  %v1650_v51 = vadd.f32 %v4060_v61, %v1518_v9  ;;  %v1555_v35 = vadd.f32 %v4060_v61, %v1423_v60  ;;  %v1587_v0 = vadd.f32 %v4060_v61, %v1455_v22  ;;  %2226 = vst.msk [vmem:[%s4080_s13 + $0x140] sm:$0xff] %vm335_vm1, %v2098_v41  ;;  %v4974_v54 = vld [vmem:[#allocation40_spill] sm:$0xff]  ;;  %v4984_v41 = vld [vmem:[#allocation45_spill] sm:$0xff] }
 0x174   : > { %v1486_v29 = vmul.f32 %v4055_v50, %v1273_v18  ;;  %v4978_v18 = vld [vmem:[#allocation41_spill] sm:$0xff]  ;;  %v4982_v39 = vpack.c.bf16 %v4980_v45, %v4981_v44  ;;  %v4985_v9 = vpack.c.bf16 %v4983_v32, %v4984_v41 }
 0x175   : > { %2257 = vst.msk [vmem:[%s4080_s13 + $0x238] sm:$0xff] %vm335_vm1, %v2129_v25  ;;  %vm1778_vm13 = vcmp.ge.f32.partialorder %v1650_v51, 0.0  ;;  %v1906_v56 = vmul.f32 0.2, %v1650_v51  ;;  %vm1683_vm14 = vcmp.ge.f32.partialorder %v1555_v35, 0.0  ;;  %vm1715_vm15 = vcmp.ge.f32.partialorder %v1587_v0, 0.0 }
 0x176   : > { %v1618_v58 = vadd.f32 %v4060_v61, %v1486_v29  ;;  %v1811_v26 = vmul.f32 0.2, %v1555_v35  ;;  %v1843_v52 = vmul.f32 0.2, %v1587_v0  ;;  %v4976_v25 = vpack.c.bf16 %v4974_v54, %v4975_v20 }
 0x177   : > { %v2034_v33 = vsel %vm1778_vm13, %v1650_v51, %v1906_v56  ;;  %v1355_v38 = vpop.f32.mrf.mxu3  ;;  %v4979_v17 = vpack.c.bf16 %v4977_v31, %v4978_v18 }
 0x178   : > { %vm1746_vm12 = vcmp.ge.f32.partialorder %v1618_v58, 0.0  ;;  %v1874_v59 = vmul.f32 0.2, %v1618_v58  ;;  %v1939_v62 = vsel %vm1683_vm14, %v1555_v35, %v1811_v26  ;;  %v2162_v57 = vmul.f32 1.4142135, %v2034_v33  ;;  %v1118_v8 = vpop.f32.mrf.mxu0  ;;  %v1198_v48 = vpop.f32.mrf.mxu1 }
 0x179   : > { %v2067_v34 = vmul.f32 1.4142135, %v1939_v62  ;;  %v1971_v42 = vsel %vm1715_vm15, %v1587_v0, %v1843_v52  ;;  %v1519_v6 = vmul.f32 %v4055_v50, %v1355_v38  ;;  %v1424_v23 = vmul.f32 %v4055_v50, %v1118_v8 }
 0x17a   : > { %v2002_v15 = vsel %vm1746_vm12, %v1618_v58, %v1874_v59  ;;  %v2099_v47 = vmul.f32 1.4142135, %v1971_v42  ;;  %v1456_v3 = vmul.f32 %v4055_v50, %v1198_v48  ;;  %2290 = vst.msk [vmem:[%s4080_s13 + $0x340] sm:$0xff] %vm335_vm1, %v2162_v57  ;;  %2466 = vmatmul.msk.bf16.gmra.mxu1 %vm887_vm2, %v4979_v17 }
 0x17b   : > { %v2130_v43 = vmul.f32 1.4142135, %v2002_v15  ;;  %v1275_v63 = vpop.f32.mrf.mxu2  ;;  %2195 = vst.msk [vmem:[%s4080_s13 + $0x48] sm:$0xff] %vm335_vm1, %v2067_v34  ;;  %v1651_v7 = vadd.f32 %v4060_v61, %v1519_v6  ;;  %v1556_v10 = vadd.f32 %v4060_v61, %v1424_v23  ;;  %2450 = vmatmul.msk.bf16.gmra.mxu0 %vm887_vm2, %v4976_v25 }
 0x17c   : > { %v1487_v5 = vmul.f32 %v4055_v50, %v1275_v63  ;;  %v1588_v1 = vadd.f32 %v4060_v61, %v1456_v3  ;;  %2227 = vst.msk [vmem:[%s4080_s13 + $0x148] sm:$0xff] %vm335_vm1, %v2099_v47  ;;  %2498 = vmatmul.msk.bf16.gmra.mxu3 %vm887_vm2, %v4985_v9 }
 0x17d   : > { %2258 = vst.msk [vmem:[%s4080_s13 + $0x240] sm:$0xff] %vm335_vm1, %v2130_v43  ;;  %vm1779_vm3 = vcmp.ge.f32.partialorder %v1651_v7, 0.0  ;;  %v1907_v29 = vmul.f32 0.2, %v1651_v7  ;;  %vm1684_vm4 = vcmp.ge.f32.partialorder %v1556_v10, 0.0 }
 0x17e   : > { %v1619_v24 = vadd.f32 %v4060_v61, %v1487_v5  ;;  %v1812_v12 = vmul.f32 0.2, %v1556_v10  ;;  %vm1716_vm5 = vcmp.ge.f32.partialorder %v1588_v1, 0.0  ;;  %v1844_v22 = vmul.f32 0.2, %v1588_v1 }
 0x17f   : > { %v2035_v51 = vsel %vm1779_vm3, %v1651_v7, %v1907_v29  ;;  %v1358_v59 = vpop.f32.mrf.mxu3 }
 0x180   : > { %vm1747_vm0 = vcmp.ge.f32.partialorder %v1619_v24, 0.0  ;;  %v1875_v11 = vmul.f32 0.2, %v1619_v24  ;;  %2482 = vmatmul.msk.bf16.gmra.mxu2 %vm887_vm2, %v4982_v39  ;;  %v1940_v35 = vsel %vm1684_vm4, %v1556_v10, %v1812_v12  ;;  %v2163_v56 = vmul.f32 1.4142135, %v2035_v51  ;;  %v1120_v43 = vpop.f32.mrf.mxu0  ;;  %v1200_v33 = vpop.f32.mrf.mxu1 }
 0x181   : > { %v2068_v26 = vmul.f32 1.4142135, %v1940_v35  ;;  %v1972_v15 = vsel %vm1716_vm5, %v1588_v1, %v1844_v22  ;;  %v1520_v63 = vmul.f32 %v4055_v50, %v1358_v59  ;;  %v1425_v38 = vmul.f32 %v4055_v50, %v1120_v43 }
 0x182   : > { %v2003_v60 = vsel %vm1747_vm0, %v1619_v24, %v1875_v11  ;;  %v2100_v62 = vmul.f32 1.4142135, %v1972_v15  ;;  %v1457_v57 = vmul.f32 %v4055_v50, %v1200_v33  ;;  %2291 = vst.msk [vmem:[%s4080_s13 + $0x348] sm:$0xff] %vm335_vm1, %v2163_v56 }
 0x183   : > { %v2131_v58 = vmul.f32 1.4142135, %v2003_v60  ;;  %v1278_v0 = vpop.f32.mrf.mxu2  ;;  %2196 = vst.msk [vmem:[%s4080_s13 + $0x50] sm:$0xff] %vm335_vm1, %v2068_v26  ;;  %v1652_v42 = vadd.f32 %v4060_v61, %v1520_v63  ;;  %v1557_v5 = vadd.f32 %v4060_v61, %v1425_v38  ;;  %v4986_v60 = vpack.c.bf16 %v3896_v37, %v3890_v46 }
 0x184   : > { %v1488_v52 = vmul.f32 %v4055_v50, %v1278_v0  ;;  %v1589_v8 = vadd.f32 %v4060_v61, %v1457_v57  ;;  %2228 = vst.msk [vmem:[%s4080_s13 + $0x150] sm:$0xff] %vm335_vm1, %v2100_v62  ;;  %v4988_v46 = vpack.c.bf16 %v3920_v19, %v3917_v55 }
 0x185   : > { %2259 = vst.msk [vmem:[%s4080_s13 + $0x248] sm:$0xff] %vm335_vm1, %v2131_v58  ;;  %vm1780_vm7 = vcmp.ge.f32.partialorder %v1652_v42, 0.0  ;;  %v1908_v47 = vmul.f32 0.2, %v1652_v42  ;;  %vm1685_vm8 = vcmp.ge.f32.partialorder %v1557_v5, 0.0  ;;  %v4987_v58 = vpack.c.bf16 %v3902_v28, %v3899_v40 }
 0x186   : > { %v1620_v34 = vadd.f32 %v4060_v61, %v1488_v52  ;;  %v1813_v6 = vmul.f32 0.2, %v1557_v5  ;;  %vm1717_vm9 = vcmp.ge.f32.partialorder %v1589_v8, 0.0  ;;  %v1845_v3 = vmul.f32 0.2, %v1589_v8 }
 0x187   : > { %v2036_v7 = vsel %vm1780_vm7, %v1652_v42, %v1908_v47  ;;  %v1360_v54 = vpop.f32.mrf.mxu3 }
 0x188   : > { %vm1748_vm6 = vcmp.ge.f32.partialorder %v1620_v34, 0.0  ;;  %v1876_v48 = vmul.f32 0.2, %v1620_v34  ;;  %v1941_v10 = vsel %vm1685_vm8, %v1557_v5, %v1813_v6  ;;  %v2164_v20 = vmul.f32 1.4142135, %v2036_v7  ;;  %v1123_v18 = vpop.f32.mrf.mxu0  ;;  %v1203_v17 = vpop.f32.mrf.mxu1 }
 0x189   : > { %v2069_v25 = vmul.f32 1.4142135, %v1941_v10  ;;  %v1973_v11 = vsel %vm1717_vm9, %v1589_v8, %v1845_v3  ;;  %v1521_v44 = vmul.f32 %v4055_v50, %v1360_v54  ;;  %v1426_v39 = vmul.f32 %v4055_v50, %v1123_v18 }
 0x18a   : > { %v2004_v23 = vsel %vm1748_vm6, %v1620_v34, %v1876_v48  ;;  %v2101_v45 = vmul.f32 1.4142135, %v1973_v11  ;;  %v1458_v29 = vmul.f32 %v4055_v50, %v1203_v17  ;;  %2292 = vst.msk [vmem:[%s4080_s13 + $0x350] sm:$0xff] %vm335_vm1, %v2164_v20  ;;  %2467 = vmatmul.msk.bf16.gmra.mxu1 %vm887_vm2, %v4987_v58 }
 0x18b   : > { %v2132_v24 = vmul.f32 1.4142135, %v2004_v23  ;;  %v1280_v1 = vpop.f32.mrf.mxu2  ;;  %2197 = vst.msk [vmem:[%s4080_s13 + $0x58] sm:$0xff] %vm335_vm1, %v2069_v25  ;;  %v1653_v32 = vadd.f32 %v4060_v61, %v1521_v44  ;;  %v1558_v41 = vadd.f32 %v4060_v61, %v1426_v39  ;;  %2451 = vmatmul.msk.bf16.gmra.mxu0 %vm887_vm2, %v4986_v60  ;;  %v4991_v60 = vpack.c.bf16 %v3961_v14, %v3958_v53 }
 0x18c   : > { %v1489_v31 = vmul.f32 %v4055_v50, %v1280_v1  ;;  %v1590_v9 = vadd.f32 %v4060_v61, %v1458_v29  ;;  %2229 = vst.msk [vmem:[%s4080_s13 + $0x158] sm:$0xff] %vm335_vm1, %v2101_v45  ;;  %2499 = vmatmul.msk.bf16.gmra.mxu3 %vm887_vm2, %v4988_v46 }
 0x18d   : > { %2260 = vst.msk [vmem:[%s4080_s13 + $0x250] sm:$0xff] %vm335_vm1, %v2132_v24  ;;  %vm1781_vm11 = vcmp.ge.f32.partialorder %v1653_v32, 0.0  ;;  %v1909_v51 = vmul.f32 0.2, %v1653_v32  ;;  %vm1686_vm12 = vcmp.ge.f32.partialorder %v1558_v41, 0.0 }
 0x18e   : > { %v1621_v12 = vadd.f32 %v4060_v61, %v1489_v31  ;;  %v1814_v37 = vmul.f32 0.2, %v1558_v41  ;;  %vm1718_vm13 = vcmp.ge.f32.partialorder %v1590_v9, 0.0  ;;  %v1846_v40 = vmul.f32 0.2, %v1590_v9 }
 0x18f   : > { %v2037_v0 = vsel %vm1781_vm11, %v1653_v32, %v1909_v51  ;;  %v1363_v4 = vpop.f32.mrf.mxu3  ;;  %v4989_v32 = vpack.c.bf16 %v3947_v27, %v3934_v36  ;;  %v4992_v27 = vpack.c.bf16 %v3969_v21, %v3966_v49 }
 0x190   : > { %vm1749_vm10 = vcmp.ge.f32.partialorder %v1621_v12, 0.0  ;;  %v1877_v22 = vmul.f32 0.2, %v1621_v12  ;;  %2483 = vmatmul.msk.bf16.gmra.mxu2 %vm887_vm2, %v833_v30  ;;  %v1942_v59 = vsel %vm1686_vm12, %v1558_v41, %v1814_v37  ;;  %v2165_v30 = vmul.f32 1.4142135, %v2037_v0  ;;  %v1125_v55 = vpop.f32.mrf.mxu0  ;;  %v1205_v19 = vpop.f32.mrf.mxu1 }
 0x191   : > { %v2070_v56 = vmul.f32 1.4142135, %v1942_v59  ;;  %v1974_v26 = vsel %vm1718_vm13, %v1590_v9, %v1846_v40  ;;  %v1522_v43 = vmul.f32 %v4055_v50, %v1363_v4  ;;  %v1427_v33 = vmul.f32 %v4055_v50, %v1125_v55 }
 0x192   : > { %v2005_v35 = vsel %vm1749_vm10, %v1621_v12, %v1877_v22  ;;  %v2102_v52 = vmul.f32 1.4142135, %v1974_v26  ;;  %v1459_v62 = vmul.f32 %v4055_v50, %v1205_v19  ;;  %2293 = vst.msk [vmem:[%s4080_s13 + $0x358] sm:$0xff] %vm335_vm1, %v2165_v30  ;;  %v4990_v9 = vpack.c.bf16 %v3953_v16, %v3950_v2 }
 0x193   : > { %v2133_v28 = vmul.f32 1.4142135, %v2005_v35  ;;  %v1283_v13 = vpop.f32.mrf.mxu2  ;;  %2198 = vst.msk [vmem:[%s4080_s13 + $0x60] sm:$0xff] %vm335_vm1, %v2070_v56  ;;  %v1654_v38 = vadd.f32 %v4060_v61, %v1522_v43  ;;  %v1559_v57 = vadd.f32 %v4060_v61, %v1427_v33 }
 0x194   : > { %v1490_v15 = vmul.f32 %v4055_v50, %v1283_v13  ;;  %v1591_v34 = vadd.f32 %v4060_v61, %v1459_v62  ;;  %2230 = vst.msk [vmem:[%s4080_s13 + $0x160] sm:$0xff] %vm335_vm1, %v2102_v52 }
 0x195   : > { %2261 = vst.msk [vmem:[%s4080_s13 + $0x258] sm:$0xff] %vm335_vm1, %v2133_v28  ;;  %vm1782_vm15 = vcmp.ge.f32.partialorder %v1654_v38, 0.0  ;;  %v1910_v5 = vmul.f32 0.2, %v1654_v38  ;;  %vm1687_vm0 = vcmp.ge.f32.partialorder %v1559_v57, 0.0 }
 0x196   : > { %v1622_v63 = vadd.f32 %v4060_v61, %v1490_v15  ;;  %v1815_v8 = vmul.f32 0.2, %v1559_v57  ;;  %vm1719_vm3 = vcmp.ge.f32.partialorder %v1591_v34, 0.0  ;;  %v1847_v47 = vmul.f32 0.2, %v1591_v34 }
 0x197   : > { %v2038_v23 = vsel %vm1782_vm15, %v1654_v38, %v1910_v5  ;;  %v1365_v7 = vpop.f32.mrf.mxu3 }
 0x198   : > { %vm1750_vm14 = vcmp.ge.f32.partialorder %v1622_v63, 0.0  ;;  %v1878_v42 = vmul.f32 0.2, %v1622_v63  ;;  %v1943_v3 = vsel %vm1687_vm0, %v1559_v57, %v1815_v8  ;;  %v2166_v10 = vmul.f32 1.4142135, %v2038_v23  ;;  %v1128_v25 = vpop.f32.mrf.mxu0  ;;  %v1208_v11 = vpop.f32.mrf.mxu1 }
 0x199   : > { %v2071_v1 = vmul.f32 1.4142135, %v1943_v3  ;;  %v1975_v54 = vsel %vm1719_vm3, %v1591_v34, %v1847_v47  ;;  %v1523_v18 = vmul.f32 %v4055_v50, %v1365_v7  ;;  %v1428_v17 = vmul.f32 %v4055_v50, %v1128_v25  ;;  %v4432_v7 = vld [vmem:[%s4712_s5] ss:$0 sm:$0xff] }
 0x19a   : > { %v2006_v48 = vsel %vm1750_vm14, %v1622_v63, %v1878_v42  ;;  %v2103_v31 = vmul.f32 1.4142135, %v1975_v54  ;;  %v1460_v45 = vmul.f32 %v4055_v50, %v1208_v11  ;;  %2294 = vst.msk [vmem:[%s4080_s13 + $0x360] sm:$0xff] %vm335_vm1, %v2166_v10  ;;  %2468 = vmatmul.msk.bf16.gmra.mxu1 %vm887_vm2, %v4990_v9 }
 0x19b   : > { %v2134_v6 = vmul.f32 1.4142135, %v2006_v48  ;;  %v1285_v24 = vpop.f32.mrf.mxu2  ;;  %2199 = vst.msk [vmem:[%s4080_s13 + $0x68] sm:$0xff] %vm335_vm1, %v2071_v1  ;;  %v1655_v39 = vadd.f32 %v4060_v61, %v1523_v18  ;;  %v1560_v29 = vadd.f32 %v4060_v61, %v1428_v17  ;;  %2452 = vmatmul.msk.bf16.gmra.mxu0 %vm887_vm2, %v4989_v32 }
 0x19c   : > { %v1491_v20 = vmul.f32 %v4055_v50, %v1285_v24  ;;  %v1592_v12 = vadd.f32 %v4060_v61, %v1460_v45  ;;  %2231 = vst.msk [vmem:[%s4080_s13 + $0x168] sm:$0xff] %vm335_vm1, %v2103_v31  ;;  %2500 = vmatmul.msk.bf16.gmra.mxu3 %vm887_vm2, %v4992_v27 }
 0x19d   : > { %2262 = vst.msk [vmem:[%s4080_s13 + $0x260] sm:$0xff] %vm335_vm1, %v2134_v6  ;;  %vm1783_vm5 = vcmp.ge.f32.partialorder %v1655_v39, 0.0  ;;  %v1911_v22 = vmul.f32 0.2, %v1655_v39  ;;  %vm1688_vm6 = vcmp.ge.f32.partialorder %v1560_v29, 0.0 }
 0x19e   : > { %v1623_v44 = vadd.f32 %v4060_v61, %v1491_v20  ;;  %v1816_v36 = vmul.f32 0.2, %v1560_v29  ;;  %vm1720_vm7 = vcmp.ge.f32.partialorder %v1592_v12, 0.0  ;;  %v1848_v2 = vmul.f32 0.2, %v1592_v12 }
 0x19f   : > { %v2039_v51 = vsel %vm1783_vm5, %v1655_v39, %v1911_v22  ;;  %v1368_v14 = vpop.f32.mrf.mxu3 }
 0x1a0   : > { %vm1751_vm4 = vcmp.ge.f32.partialorder %v1623_v44, 0.0  ;;  %v1879_v41 = vmul.f32 0.2, %v1623_v44  ;;  %2484 = vmatmul.msk.bf16.gmra.mxu2 %vm887_vm2, %v4991_v60  ;;  %v1944_v37 = vsel %vm1688_vm6, %v1560_v29, %v1816_v36  ;;  %v2167_v46 = vmul.f32 1.4142135, %v2039_v51  ;;  %v1130_v49 = vpop.f32.mrf.mxu0  ;;  %v1210_v21 = vpop.f32.mrf.mxu1 }
 0x1a1   : > { %v2072_v35 = vmul.f32 1.4142135, %v1944_v37  ;;  %v1976_v40 = vsel %vm1720_vm7, %v1592_v12, %v1848_v2  ;;  %v1524_v59 = vmul.f32 %v4055_v50, %v1368_v14  ;;  %v1429_v13 = vmul.f32 %v4055_v50, %v1130_v49 }
 0x1a2   : > { %v2007_v58 = vsel %vm1751_vm4, %v1623_v44, %v1879_v41  ;;  %v2104_v0 = vmul.f32 1.4142135, %v1976_v40  ;;  %v1461_v4 = vmul.f32 %v4055_v50, %v1210_v21  ;;  %2295 = vst.msk [vmem:[%s4080_s13 + $0x368] sm:$0xff] %vm335_vm1, %v2167_v46 }
 0x1a3   : > { %v2135_v16 = vmul.f32 1.4142135, %v2007_v58  ;;  %v1288_v53 = vpop.f32.mrf.mxu2  ;;  %2200 = vst.msk [vmem:[%s4080_s13 + $0x70] sm:$0xff] %vm335_vm1, %v2072_v35  ;;  %v1656_v56 = vadd.f32 %v4060_v61, %v1524_v59  ;;  %v1561_v26 = vadd.f32 %v4060_v61, %v1429_v13 }
 0x1a4   : > { %v1492_v28 = vmul.f32 %v4055_v50, %v1288_v53  ;;  %v1593_v15 = vadd.f32 %v4060_v61, %v1461_v4  ;;  %2232 = vst.msk [vmem:[%s4080_s13 + $0x170] sm:$0xff] %vm335_vm1, %v2104_v0 }
 0x1a5   : > { %2263 = vst.msk [vmem:[%s4080_s13 + $0x268] sm:$0xff] %vm335_vm1, %v2135_v16  ;;  %vm1784_vm8 = vcmp.ge.f32.partialorder %v1656_v56, 0.0  ;;  %v1912_v19 = vmul.f32 0.2, %v1656_v56  ;;  %vm1689_vm9 = vcmp.ge.f32.partialorder %v1561_v26, 0.0 }
 0x1a6   : > { %v1624_v30 = vadd.f32 %v4060_v61, %v1492_v28  ;;  %v1817_v52 = vmul.f32 0.2, %v1561_v26  ;;  %vm1721_vm10 = vcmp.ge.f32.partialorder %v1593_v15, 0.0  ;;  %v1849_v33 = vmul.f32 0.2, %v1593_v15 }
 0x1a7   : > { %v2040_v63 = vsel %vm1784_vm8, %v1656_v56, %v1912_v19  ;;  %v1370_v34 = vpop.f32.mrf.mxu3 }
 0x1a8   : > { %vm1752_vm2 = vcmp.ge.f32.partialorder %v1624_v30, 0.0  ;;  %v1880_v55 = vmul.f32 0.2, %v1624_v30  ;;  %v1945_v38 = vsel %vm1689_vm9, %v1561_v26, %v1817_v52  ;;  %v2168_v61 = vmul.f32 1.4142135, %v2040_v63  ;;  %v1133_v48 = vpop.f32.mrf.mxu0  ;;  %v1213_v47 = vpop.f32.mrf.mxu1 }
 0x1a9   : > { %v2073_v42 = vmul.f32 1.4142135, %v1945_v38  ;;  %v1977_v5 = vsel %vm1721_vm10, %v1593_v15, %v1849_v33  ;;  %v1525_v23 = vmul.f32 %v4055_v50, %v1370_v34  ;;  %v1430_v3 = vmul.f32 %v4055_v50, %v1133_v48 }
 0x1aa   : > { %v2008_v43 = vsel %vm1752_vm2, %v1624_v30, %v1880_v55  ;;  %v2105_v6 = vmul.f32 1.4142135, %v1977_v5  ;;  %v1462_v24 = vmul.f32 %v4055_v50, %v1213_v47  ;;  %2296 = vst.msk [vmem:[%s4080_s13 + $0x370] sm:$0xff] %vm335_vm1, %v2168_v61 }
 0x1ab   : > { %v2136_v62 = vmul.f32 1.4142135, %v2008_v43  ;;  %v1290_v57 = vpop.f32.mrf.mxu2  ;;  %2201 = vst.msk [vmem:[%s4080_s13 + $0x78] sm:$0xff] %vm335_vm1, %v2073_v42  ;;  %v1657_v1 = vadd.f32 %v4432_v7, %v1525_v23  ;;  %v1562_v54 = vadd.f32 %v4432_v7, %v1430_v3 }
 0x1ac   : > { %v1493_v8 = vmul.f32 %v4055_v50, %v1290_v57  ;;  %v1594_v20 = vadd.f32 %v4432_v7, %v1462_v24  ;;  %2233 = vst.msk [vmem:[%s4080_s13 + $0x178] sm:$0xff] %vm335_vm1, %v2105_v6 }
 0x1ad   : > { %2264 = vst.msk [vmem:[%s4080_s13 + $0x270] sm:$0xff] %vm335_vm1, %v2136_v62  ;;  %vm1785_vm12 = vcmp.ge.f32.partialorder %v1657_v1, 0.0  ;;  %v1913_v11 = vmul.f32 0.2, %v1657_v1  ;;  %vm1690_vm13 = vcmp.ge.f32.partialorder %v1562_v54, 0.0 }
 0x1ae   : > { %v1625_v10 = vadd.f32 %v4432_v7, %v1493_v8  ;;  %v1818_v31 = vmul.f32 0.2, %v1562_v54  ;;  %vm1722_vm14 = vcmp.ge.f32.partialorder %v1594_v20, 0.0  ;;  %v1850_v17 = vmul.f32 0.2, %v1594_v20 }
 0x1af   : > { %v2041_v44 = vsel %vm1785_vm12, %v1657_v1, %v1913_v11  ;;  %v1373_v12 = vpop.f32.mrf.mxu3 }
 0x1b0   : > { %vm1753_vm11 = vcmp.ge.f32.partialorder %v1625_v10, 0.0  ;;  %v1881_v25 = vmul.f32 0.2, %v1625_v10  ;;  %v1946_v39 = vsel %vm1690_vm13, %v1562_v54, %v1818_v31  ;;  %v2169_v32 = vmul.f32 1.4142135, %v2041_v44  ;;  %v1135_v22 = vpop.f32.mrf.mxu0  ;;  %v1215_v36 = vpop.f32.mrf.mxu1 }
 0x1b1   : > { %v2074_v41 = vmul.f32 1.4142135, %v1946_v39  ;;  %v1978_v9 = vsel %vm1722_vm14, %v1594_v20, %v1850_v17  ;;  %v1526_v58 = vmul.f32 %v4055_v50, %v1373_v12  ;;  %v1431_v2 = vmul.f32 %v4055_v50, %v1135_v22 }
 0x1b2   : > { %v2009_v18 = vsel %vm1753_vm11, %v1625_v10, %v1881_v25  ;;  %v2106_v27 = vmul.f32 1.4142135, %v1978_v9  ;;  %v1463_v16 = vmul.f32 %v4055_v50, %v1215_v36  ;;  %2297 = vst.msk [vmem:[%s4080_s13 + $0x378] sm:$0xff] %vm335_vm1, %v2169_v32 }
 0x1b3   : > { %v2137_v45 = vmul.f32 1.4142135, %v2009_v18  ;;  %v1293_v29 = vpop.f32.mrf.mxu2  ;;  %2202 = vst.msk [vmem:[%s4080_s13 + $0x80] sm:$0xff] %vm335_vm1, %v2074_v41  ;;  %v1658_v37 = vadd.f32 %v4432_v7, %v1526_v58  ;;  %v1563_v53 = vadd.f32 %v4432_v7, %v1431_v2 }
 0x1b4   : > { %v1494_v60 = vmul.f32 %v4055_v50, %v1293_v29  ;;  %v1595_v14 = vadd.f32 %v4432_v7, %v1463_v16  ;;  %2234 = vst.msk [vmem:[%s4080_s13 + $0x180] sm:$0xff] %vm335_vm1, %v2106_v27 }
 0x1b5   : > { %2265 = vst.msk [vmem:[%s4080_s13 + $0x278] sm:$0xff] %vm335_vm1, %v2137_v45  ;;  %vm1786_vm0 = vcmp.ge.f32.partialorder %v1658_v37, 0.0  ;;  %v1914_v35 = vmul.f32 0.2, %v1658_v37  ;;  %vm1691_vm3 = vcmp.ge.f32.partialorder %v1563_v53, 0.0 }
 0x1b6   : > { %v1626_v51 = vadd.f32 %v4432_v7, %v1494_v60  ;;  %v1819_v40 = vmul.f32 0.2, %v1563_v53  ;;  %vm1723_vm4 = vcmp.ge.f32.partialorder %v1595_v14, 0.0  ;;  %v1851_v49 = vmul.f32 0.2, %v1595_v14 }
 0x1b7   : > { %v2042_v0 = vsel %vm1786_vm0, %v1658_v37, %v1914_v35  ;;  %v1375_v4 = vpop.f32.mrf.mxu3 }
 0x1b8   : > { %vm1754_vm15 = vcmp.ge.f32.partialorder %v1626_v51, 0.0  ;;  %v1882_v46 = vmul.f32 0.2, %v1626_v51  ;;  %v1947_v59 = vsel %vm1691_vm3, %v1563_v53, %v1819_v40  ;;  %v2170_v30 = vmul.f32 1.4142135, %v2042_v0  ;;  %v1138_v55 = vpop.f32.mrf.mxu0  ;;  %v1218_v19 = vpop.f32.mrf.mxu1 }
 0x1b9   : > { %v2075_v56 = vmul.f32 1.4142135, %v1947_v59  ;;  %v1979_v26 = vsel %vm1723_vm4, %v1595_v14, %v1851_v49  ;;  %v1527_v43 = vmul.f32 %v4055_v50, %v1375_v4  ;;  %v1432_v33 = vmul.f32 %v4055_v50, %v1138_v55 }
 0x1ba   : > { %v2010_v28 = vsel %vm1754_vm15, %v1626_v51, %v1882_v46  ;;  %v2107_v52 = vmul.f32 1.4142135, %v1979_v26  ;;  %v1464_v62 = vmul.f32 %v4055_v50, %v1218_v19  ;;  %2298 = vst.msk [vmem:[%s4080_s13 + $0x380] sm:$0xff] %vm335_vm1, %v2170_v30 }
 0x1bb   : > { %v2138_v21 = vmul.f32 1.4142135, %v2010_v28  ;;  %v1295_v13 = vpop.f32.mrf.mxu2  ;;  %2203 = vst.msk [vmem:[%s4080_s13 + $0x88] sm:$0xff] %vm335_vm1, %v2075_v56  ;;  %v1659_v38 = vadd.f32 %v4432_v7, %v1527_v43  ;;  %v1564_v57 = vadd.f32 %v4432_v7, %v1432_v33 }
 0x1bc   : > { %v1495_v15 = vmul.f32 %v4055_v50, %v1295_v13  ;;  %v1596_v34 = vadd.f32 %v4432_v7, %v1464_v62  ;;  %2235 = vst.msk [vmem:[%s4080_s13 + $0x188] sm:$0xff] %vm335_vm1, %v2107_v52 }
 0x1bd   : > { %2266 = vst.msk [vmem:[%s4080_s13 + $0x280] sm:$0xff] %vm335_vm1, %v2138_v21  ;;  %vm1787_vm6 = vcmp.ge.f32.partialorder %v1659_v38, 0.0  ;;  %v1915_v42 = vmul.f32 0.2, %v1659_v38  ;;  %vm1692_vm7 = vcmp.ge.f32.partialorder %v1564_v57, 0.0 }
 0x1be   : > { %v1627_v63 = vadd.f32 %v4432_v7, %v1495_v15  ;;  %v1820_v5 = vmul.f32 0.2, %v1564_v57  ;;  %vm1724_vm2 = vcmp.ge.f32.partialorder %v1596_v34, 0.0  ;;  %v1852_v48 = vmul.f32 0.2, %v1596_v34 }
 0x1bf   : > { %v2043_v6 = vsel %vm1787_vm6, %v1659_v38, %v1915_v42  ;;  %v1378_v24 = vpop.f32.mrf.mxu3 }
 0x1c0   : > { %vm1755_vm5 = vcmp.ge.f32.partialorder %v1627_v63, 0.0  ;;  %v1883_v61 = vmul.f32 0.2, %v1627_v63  ;;  %v1948_v23 = vsel %vm1692_vm7, %v1564_v57, %v1820_v5  ;;  %v2171_v10 = vmul.f32 1.4142135, %v2043_v6  ;;  %v1140_v25 = vpop.f32.mrf.mxu0  ;;  %v1220_v11 = vpop.f32.mrf.mxu1 }
 0x1c1   : > { %v2076_v1 = vmul.f32 1.4142135, %v1948_v23  ;;  %v1980_v54 = vsel %vm1724_vm2, %v1596_v34, %v1852_v48  ;;  %v1528_v18 = vmul.f32 %v4055_v50, %v1378_v24  ;;  %v1433_v17 = vmul.f32 %v4055_v50, %v1140_v25 }
 0x1c2   : > { %v2011_v8 = vsel %vm1755_vm5, %v1627_v63, %v1883_v61  ;;  %v2108_v31 = vmul.f32 1.4142135, %v1980_v54  ;;  %v1465_v45 = vmul.f32 %v4055_v50, %v1220_v11  ;;  %2299 = vst.msk [vmem:[%s4080_s13 + $0x388] sm:$0xff] %vm335_vm1, %v2171_v10 }
 0x1c3   : > { %v2139_v47 = vmul.f32 1.4142135, %v2011_v8  ;;  %v1298_v3 = vpop.f32.mrf.mxu2  ;;  %2204 = vst.msk [vmem:[%s4080_s13 + $0x90] sm:$0xff] %vm335_vm1, %v2076_v1  ;;  %v1660_v39 = vadd.f32 %v4432_v7, %v1528_v18  ;;  %v1565_v29 = vadd.f32 %v4432_v7, %v1433_v17 }
 0x1c4   : > { %v1496_v20 = vmul.f32 %v4055_v50, %v1298_v3  ;;  %v1597_v12 = vadd.f32 %v4432_v7, %v1465_v45  ;;  %2236 = vst.msk [vmem:[%s4080_s13 + $0x190] sm:$0xff] %vm335_vm1, %v2108_v31 }
 0x1c5   : > { %2267 = vst.msk [vmem:[%s4080_s13 + $0x288] sm:$0xff] %vm335_vm1, %v2139_v47  ;;  %vm1788_vm9 = vcmp.ge.f32.partialorder %v1660_v39, 0.0  ;;  %v1916_v41 = vmul.f32 0.2, %v1660_v39  ;;  %vm1693_vm10 = vcmp.ge.f32.partialorder %v1565_v29, 0.0 }
 0x1c6   : > { %v1628_v44 = vadd.f32 %v4432_v7, %v1496_v20  ;;  %v1821_v9 = vmul.f32 0.2, %v1565_v29  ;;  %vm1725_vm11 = vcmp.ge.f32.partialorder %v1597_v12, 0.0  ;;  %v1853_v22 = vmul.f32 0.2, %v1597_v12 }
 0x1c7   : > { %v2044_v27 = vsel %vm1788_vm9, %v1660_v39, %v1916_v41  ;;  %v1380_v16 = vpop.f32.mrf.mxu3 }
 0x1c8   : > { %vm1756_vm8 = vcmp.ge.f32.partialorder %v1628_v44, 0.0  ;;  %v1884_v32 = vmul.f32 0.2, %v1628_v44  ;;  %v1949_v58 = vsel %vm1693_vm10, %v1565_v29, %v1821_v9  ;;  %v2172_v51 = vmul.f32 1.4142135, %v2044_v27  ;;  %v1143_v46 = vpop.f32.mrf.mxu0  ;;  %v1223_v49 = vpop.f32.mrf.mxu1 }
 0x1c9   : > { %v2077_v37 = vmul.f32 1.4142135, %v1949_v58  ;;  %v1981_v53 = vsel %vm1725_vm11, %v1597_v12, %v1853_v22  ;;  %v1529_v40 = vmul.f32 %v4055_v50, %v1380_v16  ;;  %v1434_v28 = vmul.f32 %v4055_v50, %v1143_v46 }
 0x1ca   : > { %v2012_v60 = vsel %vm1756_vm8, %v1628_v44, %v1884_v32  ;;  %v2109_v35 = vmul.f32 1.4142135, %v1981_v53  ;;  %2300 = vst.msk [vmem:[%s4080_s13 + $0x390] sm:$0xff] %vm335_vm1, %v2172_v51  ;;  %v1466_v0 = vmul.f32 %v4055_v50, %v1223_v49 }
 0x1cb   : > { %v2140_v36 = vmul.f32 1.4142135, %v2012_v60  ;;  %v1300_v2 = vpop.f32.mrf.mxu2  ;;  %2205 = vst.msk [vmem:[%s4080_s13 + $0x98] sm:$0xff] %vm335_vm1, %v2077_v37  ;;  %v1661_v59 = vadd.f32 %v4432_v7, %v1529_v40  ;;  %v1566_v13 = vadd.f32 %v4432_v7, %v1434_v28 }
 0x1cc   : > { %v1497_v14 = vmul.f32 %v4055_v50, %v1300_v2  ;;  %2237 = vst.msk [vmem:[%s4080_s13 + $0x198] sm:$0xff] %vm335_vm1, %v2109_v35  ;;  %v1598_v30 = vadd.f32 %v4432_v7, %v1466_v0 }
 0x1cd   : > { %2268 = vst.msk [vmem:[%s4080_s13 + $0x290] sm:$0xff] %vm335_vm1, %v2140_v36  ;;  %vm1789_vm13 = vcmp.ge.f32.partialorder %v1661_v59, 0.0  ;;  %v1917_v56 = vmul.f32 0.2, %v1661_v59  ;;  %vm1694_vm14 = vcmp.ge.f32.partialorder %v1566_v13, 0.0 }
 0x1ce   : > { %v1629_v21 = vadd.f32 %v4432_v7, %v1497_v14  ;;  %v1822_v26 = vmul.f32 0.2, %v1566_v13  ;;  %vm1726_vm15 = vcmp.ge.f32.partialorder %v1598_v30, 0.0  ;;  %v1854_v55 = vmul.f32 0.2, %v1598_v30 }
 0x1cf   : > { %v2045_v52 = vsel %vm1789_vm13, %v1661_v59, %v1917_v56  ;;  %v1383_v34 = vpop.f32.mrf.mxu3 }
 0x1d0   : > { %vm1757_vm12 = vcmp.ge.f32.partialorder %v1629_v21, 0.0  ;;  %v1885_v4 = vmul.f32 0.2, %v1629_v21  ;;  %v1950_v43 = vsel %vm1694_vm14, %v1566_v13, %v1822_v26  ;;  %v2173_v62 = vmul.f32 1.4142135, %v2045_v52  ;;  %v1145_v61 = vpop.f32.mrf.mxu0  ;;  %v1225_v48 = vpop.f32.mrf.mxu1 }
 0x1d1   : > { %v2078_v63 = vmul.f32 1.4142135, %v1950_v43  ;;  %v1982_v38 = vsel %vm1726_vm15, %v1598_v30, %v1854_v55  ;;  %v1530_v5 = vmul.f32 %v4055_v50, %v1383_v34  ;;  %v1435_v8 = vmul.f32 %v4055_v50, %v1145_v61 }
 0x1d2   : > { %v2013_v15 = vsel %vm1757_vm12, %v1629_v21, %v1885_v4  ;;  %v2110_v42 = vmul.f32 1.4142135, %v1982_v38  ;;  %2301 = vst.msk [vmem:[%s4080_s13 + $0x398] sm:$0xff] %vm335_vm1, %v2173_v62  ;;  %v1467_v6 = vmul.f32 %v4055_v50, %v1225_v48 }
 0x1d3   : > { %v2141_v19 = vmul.f32 1.4142135, %v2013_v15  ;;  %v1303_v33 = vpop.f32.mrf.mxu2  ;;  %2206 = vst.msk [vmem:[%s4080_s13 + $0xa0] sm:$0xff] %vm335_vm1, %v2078_v63  ;;  %v1662_v23 = vadd.f32 %v4432_v7, %v1530_v5  ;;  %v1567_v3 = vadd.f32 %v4432_v7, %v1435_v8 }
 0x1d4   : > { %v1498_v57 = vmul.f32 %v4055_v50, %v1303_v33  ;;  %2238 = vst.msk [vmem:[%s4080_s13 + $0x1a0] sm:$0xff] %vm335_vm1, %v2110_v42  ;;  %v1599_v10 = vadd.f32 %v4432_v7, %v1467_v6 }
 0x1d5   : > { %2269 = vst.msk [vmem:[%s4080_s13 + $0x298] sm:$0xff] %vm335_vm1, %v2141_v19  ;;  %vm1790_vm3 = vcmp.ge.f32.partialorder %v1662_v23, 0.0  ;;  %v1918_v1 = vmul.f32 0.2, %v1662_v23  ;;  %vm1695_vm4 = vcmp.ge.f32.partialorder %v1567_v3, 0.0 }
 0x1d6   : > { %v1630_v47 = vadd.f32 %v4432_v7, %v1498_v57  ;;  %v1823_v54 = vmul.f32 0.2, %v1567_v3  ;;  %vm1727_vm5 = vcmp.ge.f32.partialorder %v1599_v10, 0.0  ;;  %v1855_v25 = vmul.f32 0.2, %v1599_v10 }
 0x1d7   : > { %v2046_v31 = vsel %vm1790_vm3, %v1662_v23, %v1918_v1  ;;  %v1385_v12 = vpop.f32.mrf.mxu3 }
 0x1d8   : > { %vm1758_vm0 = vcmp.ge.f32.partialorder %v1630_v47, 0.0  ;;  %v1886_v24 = vmul.f32 0.2, %v1630_v47  ;;  %v1951_v18 = vsel %vm1695_vm4, %v1567_v3, %v1823_v54  ;;  %v2174_v45 = vmul.f32 1.4142135, %v2046_v31  ;;  %v1148_v32 = vpop.f32.mrf.mxu0  ;;  %v1228_v22 = vpop.f32.mrf.mxu1 }
 0x1d9   : > { %v2079_v44 = vmul.f32 1.4142135, %v1951_v18  ;;  %v1983_v39 = vsel %vm1727_vm5, %v1599_v10, %v1855_v25  ;;  %v1531_v9 = vmul.f32 %v4055_v50, %v1385_v12  ;;  %v1436_v60 = vmul.f32 %v4055_v50, %v1148_v32 }
 0x1da   : > { %v2014_v20 = vsel %vm1758_vm0, %v1630_v47, %v1886_v24  ;;  %v2111_v41 = vmul.f32 1.4142135, %v1983_v39  ;;  %2302 = vst.msk [vmem:[%s4080_s13 + $0x3a0] sm:$0xff] %vm335_vm1, %v2174_v45  ;;  %v1468_v27 = vmul.f32 %v4055_v50, %v1228_v22 }
 0x1db   : > { %v2142_v11 = vmul.f32 1.4142135, %v2014_v20  ;;  %v1305_v17 = vpop.f32.mrf.mxu2  ;;  %2207 = vst.msk [vmem:[%s4080_s13 + $0xa8] sm:$0xff] %vm335_vm1, %v2079_v44  ;;  %v1663_v58 = vadd.f32 %v4432_v7, %v1531_v9  ;;  %v1568_v2 = vadd.f32 %v4432_v7, %v1436_v60 }
 0x1dc   : > { %v1499_v29 = vmul.f32 %v4055_v50, %v1305_v17  ;;  %2239 = vst.msk [vmem:[%s4080_s13 + $0x1a8] sm:$0xff] %vm335_vm1, %v2111_v41  ;;  %v1600_v51 = vadd.f32 %v4432_v7, %v1468_v27 }
 0x1dd   : > { %2270 = vst.msk [vmem:[%s4080_s13 + $0x2a0] sm:$0xff] %vm335_vm1, %v2142_v11  ;;  %vm1791_vm7 = vcmp.ge.f32.partialorder %v1663_v58, 0.0  ;;  %v1919_v37 = vmul.f32 0.2, %v1663_v58  ;;  %vm1696_vm2 = vcmp.ge.f32.partialorder %v1568_v2, 0.0 }
 0x1de   : > { %v1631_v36 = vadd.f32 %v4432_v7, %v1499_v29  ;;  %v1824_v53 = vmul.f32 0.2, %v1568_v2  ;;  %vm1728_vm8 = vcmp.ge.f32.partialorder %v1600_v51, 0.0  ;;  %v1856_v46 = vmul.f32 0.2, %v1600_v51 }
 0x1df   : > { %v2047_v40 = vsel %vm1791_vm7, %v1663_v58, %v1919_v37  ;;  %v1388_v4 = vpop.f32.mrf.mxu3 }
 0x1e0   : > { %vm1759_vm6 = vcmp.ge.f32.partialorder %v1631_v36, 0.0  ;;  %v1887_v16 = vmul.f32 0.2, %v1631_v36  ;;  %v1952_v28 = vsel %vm1696_vm2, %v1568_v2, %v1824_v53  ;;  %v2175_v21 = vmul.f32 1.4142135, %v2047_v40  ;;  %v1150_v30 = vpop.f32.mrf.mxu0  ;;  %v1230_v55 = vpop.f32.mrf.mxu1 }
 0x1e1   : > { %v2080_v0 = vmul.f32 1.4142135, %v1952_v28  ;;  %v1984_v59 = vsel %vm1728_vm8, %v1600_v51, %v1856_v46  ;;  %v1532_v26 = vmul.f32 %v4055_v50, %v1388_v4  ;;  %v1437_v15 = vmul.f32 %v4055_v50, %v1150_v30 }
 0x1e2   : > { %v2015_v14 = vsel %vm1759_vm6, %v1631_v36, %v1887_v16  ;;  %v2112_v56 = vmul.f32 1.4142135, %v1984_v59  ;;  %2303 = vst.msk [vmem:[%s4080_s13 + $0x3a8] sm:$0xff] %vm335_vm1, %v2175_v21  ;;  %v1469_v52 = vmul.f32 %v4055_v50, %v1230_v55 }
 0x1e3   : > { %v2143_v35 = vmul.f32 1.4142135, %v2015_v14  ;;  %v1308_v49 = vpop.f32.mrf.mxu2  ;;  %2208 = vst.msk [vmem:[%s4080_s13 + $0xb0] sm:$0xff] %vm335_vm1, %v2080_v0  ;;  %v1664_v43 = vadd.f32 %v4432_v7, %v1532_v26  ;;  %v1569_v33 = vadd.f32 %v4432_v7, %v1437_v15 }
 0x1e4   : > { %v1500_v13 = vmul.f32 %v4055_v50, %v1308_v49  ;;  %2240 = vst.msk [vmem:[%s4080_s13 + $0x1b0] sm:$0xff] %vm335_vm1, %v2112_v56  ;;  %v1601_v63 = vadd.f32 %v4432_v7, %v1469_v52 }
 0x1e5   : > { %2271 = vst.msk [vmem:[%s4080_s13 + $0x2a8] sm:$0xff] %vm335_vm1, %v2143_v35  ;;  %vm1792_vm10 = vcmp.ge.f32.partialorder %v1664_v43, 0.0  ;;  %v1920_v38 = vmul.f32 0.2, %v1664_v43  ;;  %vm1697_vm11 = vcmp.ge.f32.partialorder %v1569_v33, 0.0 }
 0x1e6   : > { %v1632_v19 = vadd.f32 %v4432_v7, %v1500_v13  ;;  %v1825_v57 = vmul.f32 0.2, %v1569_v33  ;;  %vm1729_vm12 = vcmp.ge.f32.partialorder %v1601_v63, 0.0  ;;  %v1857_v61 = vmul.f32 0.2, %v1601_v63 }
 0x1e7   : > { %v2048_v5 = vsel %vm1792_vm10, %v1664_v43, %v1920_v38  ;;  %v1390_v24 = vpop.f32.mrf.mxu3 }
 0x1e8   : > { %vm1760_vm9 = vcmp.ge.f32.partialorder %v1632_v19, 0.0  ;;  %v1888_v62 = vmul.f32 0.2, %v1632_v19  ;;  %v1953_v8 = vsel %vm1697_vm11, %v1569_v33, %v1825_v57  ;;  %v2176_v47 = vmul.f32 1.4142135, %v2048_v5  ;;  %v1153_v10 = vpop.f32.mrf.mxu0  ;;  %v1233_v25 = vpop.f32.mrf.mxu1 }
 0x1e9   : > { %v2081_v6 = vmul.f32 1.4142135, %v1953_v8  ;;  %v1985_v23 = vsel %vm1729_vm12, %v1601_v63, %v1857_v61  ;;  %v1533_v54 = vmul.f32 %v4055_v50, %v1390_v24  ;;  %v1438_v20 = vmul.f32 %v4055_v50, %v1153_v10 }
 0x1ea   : > { %v2016_v34 = vsel %vm1760_vm9, %v1632_v19, %v1888_v62  ;;  %v2113_v1 = vmul.f32 1.4142135, %v1985_v23  ;;  %2304 = vst.msk [vmem:[%s4080_s13 + $0x3b0] sm:$0xff] %vm335_vm1, %v2176_v47  ;;  %v1470_v31 = vmul.f32 %v4055_v50, %v1233_v25 }
 0x1eb   : > { %v2144_v42 = vmul.f32 1.4142135, %v2016_v34  ;;  %v1310_v48 = vpop.f32.mrf.mxu2  ;;  %2209 = vst.msk [vmem:[%s4080_s13 + $0xb8] sm:$0xff] %vm335_vm1, %v2081_v6  ;;  %v1665_v18 = vadd.f32 %v4432_v7, %v1533_v54  ;;  %v1570_v17 = vadd.f32 %v4432_v7, %v1438_v20 }
 0x1ec   : > { %v1501_v3 = vmul.f32 %v4055_v50, %v1310_v48  ;;  %2241 = vst.msk [vmem:[%s4080_s13 + $0x1b8] sm:$0xff] %vm335_vm1, %v2113_v1  ;;  %v1602_v44 = vadd.f32 %v4432_v7, %v1470_v31 }
 0x1ed   : > { %2272 = vst.msk [vmem:[%s4080_s13 + $0x2b0] sm:$0xff] %vm335_vm1, %v2144_v42  ;;  %vm1793_vm14 = vcmp.ge.f32.partialorder %v1665_v18, 0.0  ;;  %v1921_v39 = vmul.f32 0.2, %v1665_v18  ;;  %vm1698_vm15 = vcmp.ge.f32.partialorder %v1570_v17, 0.0 }
 0x1ee   : > { %v1633_v11 = vadd.f32 %v4432_v7, %v1501_v3  ;;  %v1826_v29 = vmul.f32 0.2, %v1570_v17  ;;  %vm1730_vm0 = vcmp.ge.f32.partialorder %v1602_v44, 0.0  ;;  %v1858_v32 = vmul.f32 0.2, %v1602_v44 }
 0x1ef   : > { %v2049_v9 = vsel %vm1793_vm14, %v1665_v18, %v1921_v39  ;;  %v1393_v16 = vpop.f32.mrf.mxu3 }
 0x1f0   : > { %vm1761_vm13 = vcmp.ge.f32.partialorder %v1633_v11, 0.0  ;;  %v1889_v45 = vmul.f32 0.2, %v1633_v11  ;;  %v1954_v60 = vsel %vm1698_vm15, %v1570_v17, %v1826_v29  ;;  %v2177_v36 = vmul.f32 1.4142135, %v2049_v9  ;;  %v1155_v51 = vpop.f32.mrf.mxu0  ;;  %v1235_v46 = vpop.f32.mrf.mxu1 }
 0x1f1   : > { %v2082_v27 = vmul.f32 1.4142135, %v1954_v60  ;;  %v1986_v58 = vsel %vm1730_vm0, %v1602_v44, %v1858_v32  ;;  %v1534_v53 = vmul.f32 %v4055_v50, %v1393_v16  ;;  %v1439_v14 = vmul.f32 %v4055_v50, %v1155_v51 }
 0x1f2   : > { %v2017_v12 = vsel %vm1761_vm13, %v1633_v11, %v1889_v45  ;;  %v2114_v37 = vmul.f32 1.4142135, %v1986_v58  ;;  %2305 = vst.msk [vmem:[%s4080_s13 + $0x3b8] sm:$0xff] %vm335_vm1, %v2177_v36  ;;  %v1471_v40 = vmul.f32 %v4055_v50, %v1235_v46 }
 0x1f3   : > { %v2145_v41 = vmul.f32 1.4142135, %v2017_v12  ;;  %v1313_v22 = vpop.f32.mrf.mxu2  ;;  %2210 = vst.msk [vmem:[%s4080_s13 + $0xc0] sm:$0xff] %vm335_vm1, %v2082_v27  ;;  %v1666_v28 = vadd.f32 %v4432_v7, %v1534_v53  ;;  %v1571_v49 = vadd.f32 %v4432_v7, %v1439_v14 }
 0x1f4   : > { %v1502_v2 = vmul.f32 %v4055_v50, %v1313_v22  ;;  %2242 = vst.msk [vmem:[%s4080_s13 + $0x1c0] sm:$0xff] %vm335_vm1, %v2114_v37  ;;  %v1603_v0 = vadd.f32 %v4432_v7, %v1471_v40 }
 0x1f5   : > { %2273 = vst.msk [vmem:[%s4080_s13 + $0x2b8] sm:$0xff] %vm335_vm1, %v2145_v41  ;;  %vm1794_vm4 = vcmp.ge.f32.partialorder %v1666_v28, 0.0  ;;  %v1922_v59 = vmul.f32 0.2, %v1666_v28  ;;  %vm1699_vm5 = vcmp.ge.f32.partialorder %v1571_v49, 0.0 }
 0x1f6   : > { %v1634_v35 = vadd.f32 %v4432_v7, %v1502_v2  ;;  %v1827_v13 = vmul.f32 0.2, %v1571_v49  ;;  %vm1731_vm6 = vcmp.ge.f32.partialorder %v1603_v0, 0.0  ;;  %v1859_v30 = vmul.f32 0.2, %v1603_v0 }
 0x1f7   : > { %v2050_v26 = vsel %vm1794_vm4, %v1666_v28, %v1922_v59  ;;  %v1395_v62 = vpop.f32.mrf.mxu3 }
 0x1f8   : > { %vm1762_vm3 = vcmp.ge.f32.partialorder %v1634_v35, 0.0  ;;  %v1890_v21 = vmul.f32 0.2, %v1634_v35  ;;  %v1955_v15 = vsel %vm1699_vm5, %v1571_v49, %v1827_v13  ;;  %v2178_v19 = vmul.f32 1.4142135, %v2050_v26  ;;  %v1158_v63 = vpop.f32.mrf.mxu0  ;;  %v1238_v61 = vpop.f32.mrf.mxu1 }
 0x1f9   : > { %v2083_v52 = vmul.f32 1.4142135, %v1955_v15  ;;  %v1987_v43 = vsel %vm1731_vm6, %v1603_v0, %v1859_v30  ;;  %v1535_v57 = vmul.f32 %v4055_v50, %v1395_v62  ;;  %v1440_v34 = vmul.f32 %v4055_v50, %v1158_v63 }
 0x1fa   : > { %v2018_v4 = vsel %vm1762_vm3, %v1634_v35, %v1890_v21  ;;  %v2115_v38 = vmul.f32 1.4142135, %v1987_v43  ;;  %2306 = vst.msk [vmem:[%s4080_s13 + $0x3c0] sm:$0xff] %vm335_vm1, %v2178_v19  ;;  %v1472_v5 = vmul.f32 %v4055_v50, %v1238_v61 }
 0x1fb   : > { %v2146_v56 = vmul.f32 1.4142135, %v2018_v4  ;;  %v1315_v55 = vpop.f32.mrf.mxu2  ;;  %2211 = vst.msk [vmem:[%s4080_s13 + $0xc8] sm:$0xff] %vm335_vm1, %v2083_v52  ;;  %v1667_v8 = vadd.f32 %v4432_v7, %v1535_v57  ;;  %v1572_v48 = vadd.f32 %v4432_v7, %v1440_v34 }
 0x1fc   : > { %v1503_v33 = vmul.f32 %v4055_v50, %v1315_v55  ;;  %2243 = vst.msk [vmem:[%s4080_s13 + $0x1c8] sm:$0xff] %vm335_vm1, %v2115_v38  ;;  %v1604_v6 = vadd.f32 %v4432_v7, %v1472_v5 }
 0x1fd   : > { %2274 = vst.msk [vmem:[%s4080_s13 + $0x2c0] sm:$0xff] %vm335_vm1, %v2146_v56  ;;  %vm1795_vm2 = vcmp.ge.f32.partialorder %v1667_v8, 0.0  ;;  %v1923_v23 = vmul.f32 0.2, %v1667_v8  ;;  %vm1700_vm8 = vcmp.ge.f32.partialorder %v1572_v48, 0.0 }
 0x1fe   : > { %v1635_v42 = vadd.f32 %v4432_v7, %v1503_v33  ;;  %v1828_v3 = vmul.f32 0.2, %v1572_v48  ;;  %vm1732_vm9 = vcmp.ge.f32.partialorder %v1604_v6, 0.0  ;;  %v1860_v10 = vmul.f32 0.2, %v1604_v6 }
 0x1ff   : > { %v2051_v54 = vsel %vm1795_vm2, %v1667_v8, %v1923_v23  ;;  %v1398_v45 = vpop.f32.mrf.mxu3 }
 0x200   : > { %vm1763_vm7 = vcmp.ge.f32.partialorder %v1635_v42, 0.0  ;;  %v1891_v47 = vmul.f32 0.2, %v1635_v42  ;;  %v1956_v20 = vsel %vm1700_vm8, %v1572_v48, %v1828_v3  ;;  %v2179_v11 = vmul.f32 1.4142135, %v2051_v54  ;;  %v1160_v44 = vpop.f32.mrf.mxu0  ;;  %v1240_v32 = vpop.f32.mrf.mxu1 }
 0x201   : > { %v2084_v31 = vmul.f32 1.4142135, %v1956_v20  ;;  %v1988_v18 = vsel %vm1732_vm9, %v1604_v6, %v1860_v10  ;;  %v1536_v29 = vmul.f32 %v4055_v50, %v1398_v45  ;;  %v1441_v12 = vmul.f32 %v4055_v50, %v1160_v44 }
 0x202   : > { %v2019_v24 = vsel %vm1763_vm7, %v1635_v42, %v1891_v47  ;;  %v2116_v39 = vmul.f32 1.4142135, %v1988_v18  ;;  %2307 = vst.msk [vmem:[%s4080_s13 + $0x3c8] sm:$0xff] %vm335_vm1, %v2179_v11  ;;  %v1473_v9 = vmul.f32 %v4055_v50, %v1240_v32 }
 0x203   : > { %v2147_v1 = vmul.f32 1.4142135, %v2019_v24  ;;  %v1318_v25 = vpop.f32.mrf.mxu2  ;;  %2212 = vst.msk [vmem:[%s4080_s13 + $0xd0] sm:$0xff] %vm335_vm1, %v2084_v31  ;;  %v1668_v60 = vadd.f32 %v4432_v7, %v1536_v29  ;;  %v1573_v22 = vadd.f32 %v4432_v7, %v1441_v12 }
 0x204   : > { %v1504_v17 = vmul.f32 %v4055_v50, %v1318_v25  ;;  %2244 = vst.msk [vmem:[%s4080_s13 + $0x1d0] sm:$0xff] %vm335_vm1, %v2116_v39  ;;  %v1605_v27 = vadd.f32 %v4432_v7, %v1473_v9 }
 0x205   : > { %2275 = vst.msk [vmem:[%s4080_s13 + $0x2c8] sm:$0xff] %vm335_vm1, %v2147_v1  ;;  %vm1796_vm11 = vcmp.ge.f32.partialorder %v1668_v60, 0.0  ;;  %v1924_v58 = vmul.f32 0.2, %v1668_v60  ;;  %vm1701_vm12 = vcmp.ge.f32.partialorder %v1573_v22, 0.0 }
 0x206   : > { %v1636_v41 = vadd.f32 %v4432_v7, %v1504_v17  ;;  %v1829_v2 = vmul.f32 0.2, %v1573_v22  ;;  %vm1733_vm13 = vcmp.ge.f32.partialorder %v1605_v27, 0.0  ;;  %v1861_v51 = vmul.f32 0.2, %v1605_v27 }
 0x207   : > { %v2052_v53 = vsel %vm1796_vm11, %v1668_v60, %v1924_v58  ;;  %v1400_v21 = vpop.f32.mrf.mxu3 }
 0x208   : > { %vm1764_vm10 = vcmp.ge.f32.partialorder %v1636_v41, 0.0  ;;  %v1892_v36 = vmul.f32 0.2, %v1636_v41  ;;  %v1957_v14 = vsel %vm1701_vm12, %v1573_v22, %v1829_v2  ;;  %v2180_v35 = vmul.f32 1.4142135, %v2052_v53  ;;  %v1163_v0 = vpop.f32.mrf.mxu0  ;;  %v1243_v30 = vpop.f32.mrf.mxu1 }
 0x209   : > { %v2085_v40 = vmul.f32 1.4142135, %v1957_v14  ;;  %v1989_v28 = vsel %vm1733_vm13, %v1605_v27, %v1861_v51  ;;  %v1537_v13 = vmul.f32 %v4055_v50, %v1400_v21  ;;  %v1442_v4 = vmul.f32 %v4055_v50, %v1163_v0 }
 0x20a   : > { %v2020_v16 = vsel %vm1764_vm10, %v1636_v41, %v1892_v36  ;;  %v2117_v59 = vmul.f32 1.4142135, %v1989_v28  ;;  %2308 = vst.msk [vmem:[%s4080_s13 + $0x3d0] sm:$0xff] %vm335_vm1, %v2180_v35  ;;  %v1474_v26 = vmul.f32 %v4055_v50, %v1243_v30 }
 0x20b   : > { %v2148_v37 = vmul.f32 1.4142135, %v2020_v16  ;;  %v1320_v46 = vpop.f32.mrf.mxu2  ;;  %2213 = vst.msk [vmem:[%s4080_s13 + $0xd8] sm:$0xff] %vm335_vm1, %v2085_v40  ;;  %v1669_v15 = vadd.f32 %v4432_v7, %v1537_v13  ;;  %v1574_v55 = vadd.f32 %v4432_v7, %v1442_v4 }
 0x20c   : > { %v1505_v49 = vmul.f32 %v4055_v50, %v1320_v46  ;;  %2245 = vst.msk [vmem:[%s4080_s13 + $0x1d8] sm:$0xff] %vm335_vm1, %v2117_v59  ;;  %v1606_v52 = vadd.f32 %v4432_v7, %v1474_v26 }
 0x20d   : > { %2276 = vst.msk [vmem:[%s4080_s13 + $0x2d0] sm:$0xff] %vm335_vm1, %v2148_v37  ;;  %vm1797_vm15 = vcmp.ge.f32.partialorder %v1669_v15, 0.0  ;;  %v1925_v43 = vmul.f32 0.2, %v1669_v15  ;;  %vm1702_vm0 = vcmp.ge.f32.partialorder %v1574_v55, 0.0 }
 0x20e   : > { %v1637_v56 = vadd.f32 %v4432_v7, %v1505_v49  ;;  %v1830_v33 = vmul.f32 0.2, %v1574_v55  ;;  %vm1734_vm3 = vcmp.ge.f32.partialorder %v1606_v52, 0.0  ;;  %v1862_v63 = vmul.f32 0.2, %v1606_v52 }
 0x20f   : > { %v2053_v57 = vsel %vm1797_vm15, %v1669_v15, %v1925_v43  ;;  %v1403_v47 = vpop.f32.mrf.mxu3 }
 0x210   : > { %vm1765_vm14 = vcmp.ge.f32.partialorder %v1637_v56, 0.0  ;;  %v1893_v19 = vmul.f32 0.2, %v1637_v56  ;;  %v1958_v34 = vsel %vm1702_vm0, %v1574_v55, %v1830_v33  ;;  %v2181_v42 = vmul.f32 1.4142135, %v2053_v57  ;;  %v1165_v6 = vpop.f32.mrf.mxu0  ;;  %v1245_v10 = vpop.f32.mrf.mxu1 }
 0x211   : > { %v2086_v5 = vmul.f32 1.4142135, %v1958_v34  ;;  %v1990_v8 = vsel %vm1734_vm3, %v1606_v52, %v1862_v63  ;;  %v1538_v3 = vmul.f32 %v4055_v50, %v1403_v47  ;;  %v1443_v24 = vmul.f32 %v4055_v50, %v1165_v6 }
 0x212   : > { %v2021_v62 = vsel %vm1765_vm14, %v1637_v56, %v1893_v19  ;;  %v2118_v23 = vmul.f32 1.4142135, %v1990_v8  ;;  %2309 = vst.msk [vmem:[%s4080_s13 + $0x3d8] sm:$0xff] %vm335_vm1, %v2181_v42  ;;  %v1475_v54 = vmul.f32 %v4055_v50, %v1245_v10 }
 0x213   : > { %v2149_v38 = vmul.f32 1.4142135, %v2021_v62  ;;  %v1323_v61 = vpop.f32.mrf.mxu2  ;;  %2214 = vst.msk [vmem:[%s4080_s13 + $0xe0] sm:$0xff] %vm335_vm1, %v2086_v5  ;;  %v1670_v20 = vadd.f32 %v4432_v7, %v1538_v3  ;;  %v1575_v25 = vadd.f32 %v4432_v7, %v1443_v24 }
 0x214   : > { %v1506_v48 = vmul.f32 %v4055_v50, %v1323_v61  ;;  %2246 = vst.msk [vmem:[%s4080_s13 + $0x1e0] sm:$0xff] %vm335_vm1, %v2118_v23  ;;  %v1607_v31 = vadd.f32 %v4432_v7, %v1475_v54 }
 0x215   : > { %2277 = vst.msk [vmem:[%s4080_s13 + $0x2d8] sm:$0xff] %vm335_vm1, %v2149_v38  ;;  %vm1798_vm5 = vcmp.ge.f32.partialorder %v1670_v20, 0.0  ;;  %v1926_v18 = vmul.f32 0.2, %v1670_v20  ;;  %vm1703_vm6 = vcmp.ge.f32.partialorder %v1575_v25, 0.0 }
 0x216   : > { %v1638_v1 = vadd.f32 %v4432_v7, %v1506_v48  ;;  %v1831_v17 = vmul.f32 0.2, %v1575_v25  ;;  %vm1735_vm7 = vcmp.ge.f32.partialorder %v1607_v31, 0.0  ;;  %v1863_v44 = vmul.f32 0.2, %v1607_v31 }
 0x217   : > { %v2054_v29 = vsel %vm1798_vm5, %v1670_v20, %v1926_v18  ;;  %v1405_v36 = vpop.f32.mrf.mxu3 }
 0x218   : > { %vm1766_vm4 = vcmp.ge.f32.partialorder %v1638_v1, 0.0  ;;  %v1894_v11 = vmul.f32 0.2, %v1638_v1  ;;  %v1959_v12 = vsel %vm1703_vm6, %v1575_v25, %v1831_v17  ;;  %v2182_v41 = vmul.f32 1.4142135, %v2054_v29  ;;  %v1168_v27 = vpop.f32.mrf.mxu0  ;;  %v1248_v51 = vpop.f32.mrf.mxu1 }
 0x219   : > { %v2087_v9 = vmul.f32 1.4142135, %v1959_v12  ;;  %v1991_v60 = vsel %vm1735_vm7, %v1607_v31, %v1863_v44  ;;  %v1539_v2 = vmul.f32 %v4055_v50, %v1405_v36  ;;  %v1444_v16 = vmul.f32 %v4055_v50, %v1168_v27 }
 0x21a   : > { %v2022_v45 = vsel %vm1766_vm4, %v1638_v1, %v1894_v11  ;;  %v2119_v58 = vmul.f32 1.4142135, %v1991_v60  ;;  %2310 = vst.msk [vmem:[%s4080_s13 + $0x3e0] sm:$0xff] %vm335_vm1, %v2182_v41  ;;  %v1476_v53 = vmul.f32 %v4055_v50, %v1248_v51 }
 0x21b   : > { %v2150_v39 = vmul.f32 1.4142135, %v2022_v45  ;;  %v1325_v32 = vpop.f32.mrf.mxu2  ;;  %2215 = vst.msk [vmem:[%s4080_s13 + $0xe8] sm:$0xff] %vm335_vm1, %v2087_v9  ;;  %v1671_v14 = vadd.f32 %v4432_v7, %v1539_v2  ;;  %v1576_v46 = vadd.f32 %v4432_v7, %v1444_v16 }
 0x21c   : > { %v1507_v22 = vmul.f32 %v4055_v50, %v1325_v32  ;;  %2247 = vst.msk [vmem:[%s4080_s13 + $0x1e8] sm:$0xff] %vm335_vm1, %v2119_v58  ;;  %v1608_v40 = vadd.f32 %v4432_v7, %v1476_v53 }
 0x21d   : > { %2278 = vst.msk [vmem:[%s4080_s13 + $0x2e0] sm:$0xff] %vm335_vm1, %v2150_v39  ;;  %vm1799_vm8 = vcmp.ge.f32.partialorder %v1671_v14, 0.0  ;;  %v1927_v28 = vmul.f32 0.2, %v1671_v14  ;;  %vm1704_vm9 = vcmp.ge.f32.partialorder %v1576_v46, 0.0 }
 0x21e   : > { %v1639_v37 = vadd.f32 %v4432_v7, %v1507_v22  ;;  %v1832_v49 = vmul.f32 0.2, %v1576_v46  ;;  %vm1736_vm10 = vcmp.ge.f32.partialorder %v1608_v40, 0.0  ;;  %v1864_v0 = vmul.f32 0.2, %v1608_v40 }
 0x21f   : > { %v2055_v13 = vsel %vm1799_vm8, %v1671_v14, %v1927_v28  ;;  %v1408_v19 = vpop.f32.mrf.mxu3 }
 0x220   : > { %vm1767_vm2 = vcmp.ge.f32.partialorder %v1639_v37, 0.0  ;;  %v1895_v35 = vmul.f32 0.2, %v1639_v37  ;;  %v1960_v4 = vsel %vm1704_vm9, %v1576_v46, %v1832_v49  ;;  %v2183_v56 = vmul.f32 1.4142135, %v2055_v13  ;;  %v1170_v52 = vpop.f32.mrf.mxu0  ;;  %v1250_v63 = vpop.f32.mrf.mxu1 }
 0x221   : > { %v2088_v26 = vmul.f32 1.4142135, %v1960_v4  ;;  %v1992_v15 = vsel %vm1736_vm10, %v1608_v40, %v1864_v0  ;;  %v1540_v33 = vmul.f32 %v4055_v50, %v1408_v19  ;;  %v1445_v62 = vmul.f32 %v4055_v50, %v1170_v52 }
 0x222   : > { %v2023_v21 = vsel %vm1767_vm2, %v1639_v37, %v1895_v35  ;;  %v2120_v43 = vmul.f32 1.4142135, %v1992_v15  ;;  %2311 = vst.msk [vmem:[%s4080_s13 + $0x3e8] sm:$0xff] %vm335_vm1, %v2183_v56  ;;  %v1477_v57 = vmul.f32 %v4055_v50, %v1250_v63 }
 0x223   : > { %v2151_v59 = vmul.f32 1.4142135, %v2023_v21  ;;  %v1328_v30 = vpop.f32.mrf.mxu2  ;;  %2216 = vst.msk [vmem:[%s4080_s13 + $0xf0] sm:$0xff] %vm335_vm1, %v2088_v26  ;;  %v1672_v34 = vadd.f32 %v4432_v7, %v1540_v33  ;;  %v1577_v61 = vadd.f32 %v4432_v7, %v1445_v62 }
 0x224   : > { %v1508_v55 = vmul.f32 %v4055_v50, %v1328_v30  ;;  %2248 = vst.msk [vmem:[%s4080_s13 + $0x1f0] sm:$0xff] %vm335_vm1, %v2120_v43  ;;  %v1609_v5 = vadd.f32 %v4432_v7, %v1477_v57 }
 0x225   : > { %2279 = vst.msk [vmem:[%s4080_s13 + $0x2e8] sm:$0xff] %vm335_vm1, %v2151_v59  ;;  %vm1800_vm12 = vcmp.ge.f32.partialorder %v1672_v34, 0.0  ;;  %v1928_v8 = vmul.f32 0.2, %v1672_v34  ;;  %vm1705_vm13 = vcmp.ge.f32.partialorder %v1577_v61, 0.0 }
 0x226   : > { %v1640_v38 = vadd.f32 %v4432_v7, %v1508_v55  ;;  %v1833_v48 = vmul.f32 0.2, %v1577_v61  ;;  %vm1737_vm14 = vcmp.ge.f32.partialorder %v1609_v5, 0.0  ;;  %v1865_v6 = vmul.f32 0.2, %v1609_v5 }
 0x227   : > { %v2056_v3 = vsel %vm1800_vm12, %v1672_v34, %v1928_v8  ;;  %v1410_v11 = vpop.f32.mrf.mxu3 }
 0x228   : > { %vm1768_vm11 = vcmp.ge.f32.partialorder %v1640_v38, 0.0  ;;  %v1896_v42 = vmul.f32 0.2, %v1640_v38  ;;  %v1961_v24 = vsel %vm1705_vm13, %v1577_v61, %v1833_v48  ;;  %v2184_v1 = vmul.f32 1.4142135, %v2056_v3 }
 0x229   : > { %v2089_v54 = vmul.f32 1.4142135, %v1961_v24  ;;  %v1993_v20 = vsel %vm1737_vm14, %v1609_v5, %v1865_v6  ;;  %v1541_v18 = vmul.f32 %v4055_v50, %v1410_v11 }
 0x22a   : > { %v2024_v47 = vsel %vm1768_vm11, %v1640_v38, %v1896_v42  ;;  %v2121_v31 = vmul.f32 1.4142135, %v1993_v20  ;;  %2312 = vst.msk [vmem:[%s4080_s13 + $0x3f0] sm:$0xff] %vm335_vm1, %v2184_v1 }
 0x22b   : > { %v2152_v23 = vmul.f32 1.4142135, %v2024_v47  ;;  %v1330_v10 = vpop.f32.mrf.mxu2  ;;  %2217 = vst.msk [vmem:[%s4080_s13 + $0xf8] sm:$0xff] %vm335_vm1, %v2089_v54  ;;  %v1673_v45 = vadd.f32 %v4432_v7, %v1541_v18 }
 0x22c   : > { %v1509_v25 = vmul.f32 %v4055_v50, %v1330_v10  ;;  %2249 = vst.msk [vmem:[%s4080_s13 + $0x1f8] sm:$0xff] %vm335_vm1, %v2121_v31 }
 0x22d   : > { %2280 = vst.msk [vmem:[%s4080_s13 + $0x2f0] sm:$0xff] %vm335_vm1, %v2152_v23  ;;  %vm1801_vm0 = vcmp.ge.f32.partialorder %v1673_v45, 0.0  ;;  %v1929_v39 = vmul.f32 0.2, %v1673_v45 }
 0x22e   : > { %v1641_v17 = vadd.f32 %v4432_v7, %v1509_v25 }
 0x22f   : > { %v2057_v32 = vsel %vm1801_vm0, %v1673_v45, %v1929_v39 }
 0x230   : > { %vm1769_vm15 = vcmp.ge.f32.partialorder %v1641_v17, 0.0  ;;  %v1897_v44 = vmul.f32 0.2, %v1641_v17  ;;  %v2185_v41 = vmul.f32 1.4142135, %v2057_v32 }
 0x232   : > { %v2025_v29 = vsel %vm1769_vm15, %v1641_v17, %v1897_v44  ;;  %2313 = vst.msk [vmem:[%s4080_s13 + $0x3f8] sm:$0xff] %vm335_vm1, %v2185_v41 }
 0x233   : > { %v2153_v12 = vmul.f32 1.4142135, %v2025_v29 }
 0x235   : > { %2281 = vst.msk [vmem:[%s4080_s13 + $0x2f8] sm:$0xff] %vm335_vm1, %v2153_v12 }
 0x236 PF: > { %s17_s26 = sadd.s32 1, %s2893_s26   ;;  %s4993_s24 = smov %s2889_s25 }
 0x237   : > { %p14_p5 = scmp.ge.s32.totalorder %s17_s26, 4   ;;  %s4994_s25 = smov %s4996_s27 }
 0x239   :  { %16 = sbr.rel (!%p14_p5) target bundleno = 2 (0x2), region = 81 }

</bundles_post_ra>
